<compile_context>
chip_gen: v7x
topology: tpu7x:2x2x1
jax: 0.10.0
libtpu: 0.0.40
codegen_flags: <defaults>
</compile_context>

<pallas_src>
import functools

import jax
import jax.numpy as jnp
from jax.experimental import pallas as pl
from jax.experimental.pallas import tpu as pltpu

# Raised above the v5e (16 MiB) / v6e-v7x (32 MiB) default scoped limits while
# staying below v7x's 64 MiB physical VMEM.
_VMEM_LIMIT = 48 * 1024 * 1024


def _tile(n, target):
    """Full axis if it already fits, else the (8-aligned) target tile."""
    return n if n <= target else target


# ----------------------------------------------------------------------------
# Kernel 1: pointwise (1x1) conv == matmul over channels (+bias, optional ReLU)
# ----------------------------------------------------------------------------
def _linear_kernel(x_ref, w_ref, b_ref, o_ref, *, relu):
    y = jnp.dot(x_ref[...], w_ref[...], preferred_element_type=jnp.float32)
    y = y + b_ref[...]
    if relu:
        y = jnp.maximum(y, 0.0)
    o_ref[...] = y.astype(o_ref.dtype)


def pointwise_linear(x, w, b, relu=False, tm=2048):
    """x: (P, Cin), w: (Cin, Cout), b: (Cout,) -> (P, Cout)."""
    P, Cin = x.shape
    Cout = w.shape[1]
    tm = _tile(P, tm)                       # partial last block: masked on write
    return pl.pallas_call(
        functools.partial(_linear_kernel, relu=relu),
        out_shape=jax.ShapeDtypeStruct((P, Cout), jnp.float32),
        grid=(pl.cdiv(P, tm),),
        in_specs=[
            pl.BlockSpec((tm, Cin), lambda i: (i, 0)),
            pl.BlockSpec((Cin, Cout), lambda i: (0, 0)),
            pl.BlockSpec((1, Cout), lambda i: (0, 0)),
        ],
        out_specs=pl.BlockSpec((tm, Cout), lambda i: (i, 0)),
        compiler_params=pltpu.CompilerParams(
            dimension_semantics=("parallel",),
            vmem_limit_bytes=_VMEM_LIMIT),
    )(x, w, b.reshape(1, Cout))


# ----------------------------------------------------------------------------
# Kernel 2: fused KNN — tiled distances + streaming top-k (no (B,N,N) in HBM)
# ----------------------------------------------------------------------------
def _knn_kernel(q_ref, r_ref, sqr_ref, o_ref, bd_ref, bi_ref, *, k, n):
    qi = pl.program_id(1)
    ri = pl.program_id(2)

    @pl.when(ri == 0)
    def _():
        bd_ref[...] = jnp.full(bd_ref.shape, jnp.inf, jnp.float32)
        bi_ref[...] = jnp.zeros(bi_ref.shape, jnp.float32)

    q = q_ref[...]                                           # (TQ, C) f32
    r = r_ref[...]                                           # (TR, C) f32
    TQ, TR = q.shape[0], r.shape[0]

    # ||q||^2 is a per-row constant -> dropped (ordering unchanged).
    d = sqr_ref[...] - 2.0 * jax.lax.dot_general(
        q, r, (((1,), (1,)), ((), ())), preferred_element_type=jnp.float32)

    # Mask the self point and padded (out-of-range) reference rows.
    q_gidx = jax.lax.broadcasted_iota(jnp.int32, (TQ, TR), 0) + qi * TQ
    r_gidx = jax.lax.broadcasted_iota(jnp.int32, (TQ, TR), 1) + ri * TR
    d = jnp.where((q_gidx == r_gidx) | (r_gidx >= n), jnp.inf, d)

    # Merge the running top-k with this tile's candidates: k min+mask passes.
    cand_d = jnp.concatenate([bd_ref[...], d], axis=-1)                    # (TQ, k+TR)
    cand_i = jnp.concatenate([bi_ref[...], r_gidx.astype(jnp.float32)], axis=-1)

    new_d, new_i = [], []
    for _ in range(k):                                        # static unroll
        m = jnp.min(cand_d, axis=-1, keepdims=True)                        # (TQ, 1)
        hit = cand_d == m
        sel = jnp.min(jnp.where(hit, cand_i, jnp.float32(1e30)),
                      axis=-1, keepdims=True)                 # lowest index on ties
        new_d.append(m)
        new_i.append(sel)
        cand_d = jnp.where(hit & (cand_i == sel), jnp.inf, cand_d)

    bd_ref[...] = jnp.concatenate(new_d, axis=-1)
    bi_ref[...] = jnp.concatenate(new_i, axis=-1)

    @pl.when(ri == pl.num_programs(2) - 1)
    def _():
        o_ref[...] = bi_ref[...].astype(jnp.int32)


def knn_topk(points, k, tq=256, tr=256):
    """points: (B, N, C) f32 -> (B, N, k) int32 nearest-neighbor indices
    (self excluded). Distances are never materialized in HBM."""
    B, N, C = points.shape
    assert N >= k + 1, "need at least k+1 points"
    TQ = _tile(N, tq)
    TR = _tile(N, tr)
    # Hoisted reference norms (tiny XLA op), reused by every query tile.
    sqr = jnp.sum(points * points, axis=-1).reshape(B, 1, N)
    return pl.pallas_call(
        functools.partial(_knn_kernel, k=k, n=N),
        out_shape=jax.ShapeDtypeStruct((B, N, k), jnp.int32),
        grid=(B, pl.cdiv(N, TQ), pl.cdiv(N, TR)),
        in_specs=[
            pl.BlockSpec((None, TQ, C), lambda b, q, r: (b, q, 0)),
            pl.BlockSpec((None, TR, C), lambda b, q, r: (b, r, 0)),
            pl.BlockSpec((None, 1, TR), lambda b, q, r: (b, 0, r)),
        ],
        out_specs=pl.BlockSpec((None, TQ, k), lambda b, q, r: (b, q, 0)),
        scratch_shapes=[pltpu.VMEM((TQ, k), jnp.float32),     # running best dist
                        pltpu.VMEM((TQ, k), jnp.float32)],    # running best idx
        compiler_params=pltpu.CompilerParams(
            dimension_semantics=("parallel", "parallel", "arbitrary"),
            vmem_limit_bytes=_VMEM_LIMIT),
    )(points, points, sqr)


# ----------------------------------------------------------------------------
# Kernel 3: fused edge-feature MLP — all k neighbors batched into one matmul
# ----------------------------------------------------------------------------
def _edge_mlp_kernel(x_ref, nb_ref, w1cd_ref, w1d_ref, b1_ref, w2_ref, b2_ref,
                     w3_ref, b3_ref, o_ref, *, k):
    TN, C = x_ref.shape
    C4 = b1_ref.shape[1]

    x = x_ref[...]                                            # (TN, C) f32 (residual)
    xb = x.astype(jnp.bfloat16)

    # relu(central@w1c + (nb-central)@w1d + b1) == relu(central@(w1c-w1d) + nb@w1d + b1)
    h_c = jnp.dot(xb, w1cd_ref[...],
                  preferred_element_type=jnp.float32) + b1_ref[...]        # (TN, 4C)

    # One big MXU call over all k neighbors (no per-j loop).
    nb2 = nb_ref[...].reshape(k * TN, C)                                   # bf16
    g = jnp.dot(nb2, w1d_ref[...], preferred_element_type=jnp.float32)     # (k*TN, 4C)
    h1 = jnp.maximum(g.reshape(k, TN, C4) + h_c[None, :, :], 0.0)
    h1 = h1.reshape(k * TN, C4).astype(jnp.bfloat16)

    h2 = jnp.maximum(
        jnp.dot(h1, w2_ref[...], preferred_element_type=jnp.float32) + b2_ref[...],
        0.0).astype(jnp.bfloat16)
    h3 = jnp.dot(h2, w3_ref[...],
                 preferred_element_type=jnp.float32) + b3_ref[...]         # (k*TN, C)

    res = jnp.max(h3.reshape(k, TN, C), axis=0)               # k-way max (VPU)
    o_ref[...] = (res + x).astype(o_ref.dtype)                # fused residual add


def edge_mlp_fused(x4, nb, p, tn=256):
    """x4: (B, D, N, C) central/residual (f32); nb: (B, k, N, C) neighbors.

    Returns (B, D, N, C) = max_k MLP([central, nb - central]) + x4.
    Matmuls run in bf16 with f32 accumulation; max/residual stay f32.
    """
    B, D, N, C = x4.shape
    k = nb.shape[1]
    C4 = p["w1"].shape[1]
    TN = _tile(N, tn)
    w1c, w1d = p["w1"][:C], p["w1"][C:]          # [central | (neighbor-central)] halves
    w1cd = (w1c - w1d).astype(jnp.bfloat16)      # central half with -x@w1d folded in
    w1db = w1d.astype(jnp.bfloat16)
    w2b = p["w2"].astype(jnp.bfloat16)
    w3b = p["w3"].astype(jnp.bfloat16)
    nbb = nb.astype(jnp.bfloat16)
    # D innermost: the nb block index is independent of d, so it is not
    # re-fetched for the 3 directions of resconv.
    return pl.pallas_call(
        functools.partial(_edge_mlp_kernel, k=k),
        out_shape=jax.ShapeDtypeStruct((B, D, N, C), jnp.float32),
        grid=(B, pl.cdiv(N, TN), D),
        in_specs=[
            pl.BlockSpec((None, None, TN, C), lambda b, n, d: (b, d, n, 0)),
            pl.BlockSpec((None, k, TN, C), lambda b, n, d: (b, 0, n, 0)),
            pl.BlockSpec((C, C4), lambda b, n, d: (0, 0)),
            pl.BlockSpec((C, C4), lambda b, n, d: (0, 0)),
            pl.BlockSpec((1, C4), lambda b, n, d: (0, 0)),
            pl.BlockSpec((C4, C4), lambda b, n, d: (0, 0)),
            pl.BlockSpec((1, C4), lambda b, n, d: (0, 0)),
            pl.BlockSpec((C4, C), lambda b, n, d: (0, 0)),
            pl.BlockSpec((1, C), lambda b, n, d: (0, 0)),
        ],
        out_specs=pl.BlockSpec((None, None, TN, C), lambda b, n, d: (b, d, n, 0)),
        compiler_params=pltpu.CompilerParams(
            dimension_semantics=("parallel", "parallel", "parallel"),
            vmem_limit_bytes=_VMEM_LIMIT),
    )(x4, nbb, w1cd, w1db, p["b1"].reshape(1, C4), w2b,
      p["b2"].reshape(1, C4), w3b, p["b3"].reshape(1, C))


# ----------------------------------------------------------------------------
# Module blocks (channels-last glue around the kernels)
# ----------------------------------------------------------------------------
def _gather_neighbors(feat, idx):
    """feat: (B, N, C); idx: (B, N, k) -> (B, k, N, C) in bf16.

    TODO(synk): fuse this row-gather into the edge kernel (manual-DMA /
    dynamic-gather); for now it is a single XLA gather in bf16 (half-size).
    """
    B = feat.shape[0]
    idx_t = jnp.transpose(idx, (0, 2, 1))                     # (B, k, N), tiny
    bidx = jnp.arange(B)[:, None, None]
    return feat.astype(jnp.bfloat16)[bidx, idx_t]


def resconvori_forward(x, p, k=16):
    """x: (B, N, C) channels-last -> (B, N, C). (PyTorch: (B, C, N))."""
    idx = knn_topk(x, k)                                      # (B, N, k)
    nb = _gather_neighbors(x, idx)                            # (B, k, N, C)
    return edge_mlp_fused(x[:, None], nb, p)[:, 0]


def resconv_forward(x4, p, k=16):
    """x4: (B, 3, N, C) channels-last -> (B, 3, N, C). (PyTorch: (B, C, 3, N)).

    KNN + neighbor gather use the mean-over-direction features; the central /
    residual terms are per-direction (matches the PyTorch module).
    """
    mi = jnp.mean(x4, axis=1)                                 # (B, N, C)
    idx = knn_topk(mi, k)
    nb = _gather_neighbors(mi, idx)
    return edge_mlp_fused(x4, nb, p)


def feature_extraction_forward(x, params, k=16):
    """x: (B, 3, N) (PyTorch NCW).  Returns (B, C, 3, N) like the nn.Module."""
    B, D, N = x.shape
    C = params["conv1"][0].shape[1]                           # static (weight shape)
    x_cl = jnp.transpose(x, (0, 2, 1)).reshape(B * N, D)
    f0 = pointwise_linear(x_cl, *params["conv1"], relu=True).reshape(B, N, C)
    f1 = resconvori_forward(f0, params["res1"], k)
    f2 = resconvori_forward(f1, params["res2"], k)

    # conv2 with its output columns permuted so PyTorch channel (3*c + d)
    # lands at column (d*C + c): the subsequent reshape/transpose keeps the
    # 128-lane C axis in place (no lane relayout).
    w2, b2 = params["conv2"]
    perm = (jnp.arange(C)[None, :] * 3 + jnp.arange(3)[:, None]).reshape(-1)
    f2c = pointwise_linear(f2.reshape(B * N, C), w2[:, perm], b2[perm], relu=True)
    f2r = jnp.transpose(f2c.reshape(B, N, 3, C), (0, 2, 1, 3))  # (B, 3, N, C)

    f3 = resconv_forward(f2r, params["res3"], k)
    f4 = resconv_forward(f3, params["res4"], k)
    return jnp.transpose(f4, (0, 3, 1, 2))                    # (B, C, 3, N)


# ----------------------------------------------------------------------------
# Deterministic parameter initialization (PyTorch conv-style uniform bounds)
# ----------------------------------------------------------------------------
def _conv_params(key, cin, cout):
    k1, k2 = jax.random.split(key)
    bound = 1.0 / jnp.sqrt(jnp.float32(cin))
    w = jax.random.uniform(k1, (cin, cout), jnp.float32, -bound, bound)
    b = jax.random.uniform(k2, (cout,), jnp.float32, -bound, bound)
    return w, b


def _res_params(key, C):
    c2, c4 = 2 * C, 4 * C
    k1, k2, k3 = jax.random.split(key, 3)
    w1, b1 = _conv_params(k1, c2, c4)
    w2, b2 = _conv_params(k2, c4, c4)
    w3, b3 = _conv_params(k3, c4, C)
    return {"w1": w1, "b1": b1, "w2": w2, "b2": b2, "w3": w3, "b3": b3}


def init_params(key, C):
    ks = jax.random.split(key, 6)
    return {
        "conv1": _conv_params(ks[0], 3, C),
        "conv2": _conv_params(ks[1], C, 3 * C),
        "res1": _res_params(ks[2], C),
        "res2": _res_params(ks[3], C),
        "res3": _res_params(ks[4], C),
        "res4": _res_params(ks[5], C),
    }


if __name__ == "__main__":
    B, D, N = 2, 3, 32          # N must be >= k+1 = 17 for the KNN
    C = 32                      # "inchannel" / reschannel (small demo size;
                                #  production C=128 makes all stores lane-dense)
    k = 16

    key = jax.random.PRNGKey(0)
    kx, kp = jax.random.split(key)
    x = jax.random.normal(kx, (B, D, N), jnp.float32)
    params = init_params(kp, C)

    fwd = jax.jit(functools.partial(feature_extraction_forward, k=k))
    out = fwd(x, params)
    jax.block_until_ready(out)

    assert out.shape == (B, C, 3, N), out.shape
    assert bool(jnp.all(jnp.isfinite(out)))
    print("KERNEL_OK")
</pallas_src>

<mosaic_0001>
module attributes {stable_mosaic.version = 11 : i64} {
  func.func @_linear_kernel(%arg0: i32, %arg1: memref<64x3xf32, #tpu.memory_space<vmem>>, %arg2: memref<3x32xf32, #tpu.memory_space<vmem>>, %arg3: memref<1x32xf32, #tpu.memory_space<vmem>>, %arg4: memref<64x32xf32, #tpu.memory_space<vmem>>) attributes {dimension_semantics = [#tpu.dimension_semantics<parallel>], iteration_bounds = array<i64: 1>, scalar_prefetch = 0 : i64, scratch_operands = 0 : i64, tpu.core_type = #tpu.core_type<tc>, window_params = [{transform_indices = @transform_0, window_bounds = array<i64: 64, 3>}, {pipeline_mode = #tpu.pipeline_mode<synchronous>, transform_indices = @transform_1, window_bounds = array<i64: 3, 32>}, {pipeline_mode = #tpu.pipeline_mode<synchronous>, transform_indices = @transform_2, window_bounds = array<i64: 1, 32>}, {transform_indices = @transform_3, window_bounds = array<i64: 64, 32>}]} {
    %c0 = arith.constant 0 : index
    %c0_0 = arith.constant 0 : index
    %0 = vector.load %arg1[%c0, %c0_0] : memref<64x3xf32, #tpu.memory_space<vmem>>, vector<64x3xf32>
    %c0_1 = arith.constant 0 : index
    %c0_2 = arith.constant 0 : index
    %1 = vector.load %arg2[%c0_1, %c0_2] : memref<3x32xf32, #tpu.memory_space<vmem>>, vector<3x32xf32>
    %cst = arith.constant dense<0.000000e+00> : vector<64x32xf32>
    %2 = tpu.matmul %0, %1, %cst {dimension_numbers = #tpu.dot_dimension_numbers<[1], [0], [0], [1], [0, 0, 1, 1], [], []>} : vector<64x3xf32>, vector<3x32xf32>, vector<64x32xf32> -> vector<64x32xf32>
    %c0_3 = arith.constant 0 : index
    %c0_4 = arith.constant 0 : index
    %3 = vector.load %arg3[%c0_3, %c0_4] : memref<1x32xf32, #tpu.memory_space<vmem>>, vector<1x32xf32>
    %4 = vector.broadcast %3 : vector<1x32xf32> to vector<64x32xf32>
    %5 = arith.addf %2, %4 : vector<64x32xf32>
    %cst_5 = arith.constant 0.000000e+00 : f32
    %6 = vector.broadcast %cst_5 : f32 to vector<64x32xf32>
    %7 = arith.maximumf %5, %6 : vector<64x32xf32>
    %c0_6 = arith.constant 0 : index
    %c0_7 = arith.constant 0 : index
    %8 = vector.load %arg4[%c0_6, %c0_7] : memref<64x32xf32, #tpu.memory_space<vmem>>, vector<64x32xf32>
    tpu.vector_store %arg4[%c0_6, %c0_7], %7 {strides = array<i32>} : memref<64x32xf32, #tpu.memory_space<vmem>>, vector<64x32xf32>,
    return
  }
  func.func @transform_0(%arg0: i32) -> (i32, i32) {
    %c0_i32 = arith.constant 0 : i32
    %c0_i32_0 = arith.constant 0 : i32
    return %arg0, %c0_i32 : i32, i32
  }
  func.func @transform_1(%arg0: i32) -> (i32, i32) {
    %c0_i32 = arith.constant 0 : i32
    %c0_i32_0 = arith.constant 0 : i32
    %c0_i32_1 = arith.constant 0 : i32
    return %c0_i32, %c0_i32_0 : i32, i32
  }
  func.func @transform_2(%arg0: i32) -> (i32, i32) {
    %c0_i32 = arith.constant 0 : i32
    %c0_i32_0 = arith.constant 0 : i32
    %c0_i32_1 = arith.constant 0 : i32
    return %c0_i32, %c0_i32_0 : i32, i32
  }
  func.func @transform_3(%arg0: i32) -> (i32, i32) {
    %c0_i32 = arith.constant 0 : i32
    %c0_i32_0 = arith.constant 0 : i32
    return %arg0, %c0_i32 : i32, i32
  }
}

module attributes {stable_mosaic.version = 11 : i64} {
  func.func @_knn_kernel(%arg0: i32, %arg1: i32, %arg2: i32, %arg3: memref<1x32x32xf32, #tpu.memory_space<vmem>>, %arg4: memref<1x32x32xf32, #tpu.memory_space<vmem>>, %arg5: memref<1x1x32xf32, #tpu.memory_space<vmem>>, %arg6: memref<1x32x16xi32, #tpu.memory_space<vmem>>, %arg7: memref<32x16xf32, #tpu.memory_space<vmem>>, %arg8: memref<32x16xf32, #tpu.memory_space<vmem>>) attributes {dimension_semantics = [#tpu.dimension_semantics<parallel>, #tpu.dimension_semantics<parallel>, #tpu.dimension_semantics<arbitrary>], iteration_bounds = array<i64: 2, 1, 1>, scalar_prefetch = 0 : i64, scratch_operands = 2 : i64, tpu.core_type = #tpu.core_type<tc>, window_params = [{transform_indices = @transform_0, window_bounds = array<i64: 1, 32, 32>}, {transform_indices = @transform_1, window_bounds = array<i64: 1, 32, 32>}, {transform_indices = @transform_2, window_bounds = array<i64: 1, 1, 32>}, {transform_indices = @transform_3, window_bounds = array<i64: 1, 32, 16>}]} {
    %c0_i32 = arith.constant 0 : i32
    %0 = arith.cmpi eq, %arg2, %c0_i32 : i32
    %1 = arith.extui %0 : i1 to i32
    %c0_i32_0 = arith.constant 0 : i32
    %2 = arith.cmpi ne, %1, %c0_i32_0 : i32
    scf.if %2 {
      %cst_86 = arith.constant 0x7F800000 : f32
      %243 = vector.broadcast %cst_86 : f32 to vector<32x16xf32>
      %c0_87 = arith.constant 0 : index
      %c0_88 = arith.constant 0 : index
      %244 = vector.load %arg7[%c0_87, %c0_88] : memref<32x16xf32, #tpu.memory_space<vmem>>, vector<32x16xf32>
      tpu.vector_store %arg7[%c0_87, %c0_88], %243 {strides = array<i32>} : memref<32x16xf32, #tpu.memory_space<vmem>>, vector<32x16xf32>,
      %cst_89 = arith.constant 0.000000e+00 : f32
      %245 = vector.broadcast %cst_89 : f32 to vector<32x16xf32>
      %c0_90 = arith.constant 0 : index
      %c0_91 = arith.constant 0 : index
      %246 = vector.load %arg8[%c0_90, %c0_91] : memref<32x16xf32, #tpu.memory_space<vmem>>, vector<32x16xf32>
      tpu.vector_store %arg8[%c0_90, %c0_91], %245 {strides = array<i32>} : memref<32x16xf32, #tpu.memory_space<vmem>>, vector<32x16xf32>,
    } else {
    }
    %c0 = arith.constant 0 : index
    %c0_1 = arith.constant 0 : index
    %c0_2 = arith.constant 0 : index
    %3 = vector.load %arg3[%c0, %c0_1, %c0_2] : memref<1x32x32xf32, #tpu.memory_space<vmem>>, vector<1x32x32xf32>
    %4 = vector.shape_cast %3 : vector<1x32x32xf32> to vector<32x32xf32>
    %c0_3 = arith.constant 0 : index
    %c0_4 = arith.constant 0 : index
    %c0_5 = arith.constant 0 : index
    %5 = vector.load %arg4[%c0_3, %c0_4, %c0_5] : memref<1x32x32xf32, #tpu.memory_space<vmem>>, vector<1x32x32xf32>
    %6 = vector.shape_cast %5 : vector<1x32x32xf32> to vector<32x32xf32>
    %c0_6 = arith.constant 0 : index
    %c0_7 = arith.constant 0 : index
    %c0_8 = arith.constant 0 : index
    %7 = vector.load %arg5[%c0_6, %c0_7, %c0_8] : memref<1x1x32xf32, #tpu.memory_space<vmem>>, vector<1x1x32xf32>
    %8 = vector.shape_cast %7 : vector<1x1x32xf32> to vector<1x32xf32>
    %cst = arith.constant dense<0.000000e+00> : vector<32x32xf32>
    %9 = tpu.matmul %4, %6, %cst {dimension_numbers = #tpu.dot_dimension_numbers<[1], [1], [0], [0], [0, 0, 1, 0], [], []>} : vector<32x32xf32>, vector<32x32xf32>, vector<32x32xf32> -> vector<32x32xf32>
    %cst_9 = arith.constant 2.000000e+00 : f32
    %10 = vector.broadcast %cst_9 : f32 to vector<32x32xf32>
    %11 = arith.mulf %10, %9 : vector<32x32xf32>
    %12 = vector.broadcast %8 : vector<1x32xf32> to vector<32x32xf32>
    %13 = arith.subf %12, %11 : vector<32x32xf32>
    %14 = tpu.iota {dimensions = array<i32: 0>} : vector<32x32xi32>
    %c32_i32 = arith.constant 32 : i32
    %15 = arith.muli %arg1, %c32_i32 : i32
    %16 = vector.broadcast %15 : i32 to vector<32x32xi32>
    %17 = arith.addi %14, %16 : vector<32x32xi32>
    %18 = tpu.iota {dimensions = array<i32: 1>} : vector<32x32xi32>
    %c32_i32_10 = arith.constant 32 : i32
    %19 = arith.muli %arg2, %c32_i32_10 : i32
    %20 = vector.broadcast %19 : i32 to vector<32x32xi32>
    %21 = arith.addi %18, %20 : vector<32x32xi32>
    %22 = arith.cmpi eq, %17, %21 : vector<32x32xi32>
    %c32_i32_11 = arith.constant 32 : i32
    %23 = vector.broadcast %c32_i32_11 : i32 to vector<32x32xi32>
    %24 = arith.cmpi sge, %21, %23 : vector<32x32xi32>
    %25 = arith.ori %22, %24 : vector<32x32xi1>
    %cst_12 = arith.constant 0x7F800000 : f32
    %26 = vector.broadcast %cst_12 : f32 to vector<32x32xf32>
    %27 = arith.select %25, %26, %13 : vector<32x32xi1>, vector<32x32xf32>
    %c0_13 = arith.constant 0 : index
    %c0_14 = arith.constant 0 : index
    %28 = vector.load %arg7[%c0_13, %c0_14] : memref<32x16xf32, #tpu.memory_space<vmem>>, vector<32x16xf32>
    %29 = tpu.concatenate %28, %27 in 1 : vector<32x16xf32>, vector<32x32xf32> -> vector<32x48xf32>
    %c0_15 = arith.constant 0 : index
    %c0_16 = arith.constant 0 : index
    %30 = vector.load %arg8[%c0_15, %c0_16] : memref<32x16xf32, #tpu.memory_space<vmem>>, vector<32x16xf32>
    %31 = arith.sitofp %21 : vector<32x32xi32> to vector<32x32xf32>
    %32 = tpu.concatenate %30, %31 in 1 : vector<32x16xf32>, vector<32x32xf32> -> vector<32x48xf32>
    %cst_17 = arith.constant dense<0x7F800000> : vector<32xf32>
    %33 = vector.multi_reduction <minimumf>, %29, %cst_17 [1] : vector<32x48xf32> to vector<32xf32>
    %34 = vector.shape_cast %33 : vector<32xf32> to vector<32x1xf32>
    %35 = vector.broadcast %34 : vector<32x1xf32> to vector<32x48xf32>
    %36 = arith.cmpf oeq, %29, %35 : vector<32x48xf32>
    %cst_18 = arith.constant 1.000000e+30 : f32
    %37 = vector.broadcast %cst_18 : f32 to vector<32x48xf32>
    %38 = arith.select %36, %32, %37 : vector<32x48xi1>, vector<32x48xf32>
    %cst_19 = arith.constant dense<0x7F800000> : vector<32xf32>
    %39 = vector.multi_reduction <minimumf>, %38, %cst_19 [1] : vector<32x48xf32> to vector<32xf32>
    %40 = vector.shape_cast %39 : vector<32xf32> to vector<32x1xf32>
    %41 = vector.broadcast %40 : vector<32x1xf32> to vector<32x48xf32>
    %42 = arith.cmpf oeq, %32, %41 : vector<32x48xf32>
    %43 = arith.andi %36, %42 : vector<32x48xi1>
    %cst_20 = arith.constant 0x7F800000 : f32
    %44 = vector.broadcast %cst_20 : f32 to vector<32x48xf32>
    %45 = arith.select %43, %44, %29 : vector<32x48xi1>, vector<32x48xf32>
    %cst_21 = arith.constant dense<0x7F800000> : vector<32xf32>
    %46 = vector.multi_reduction <minimumf>, %45, %cst_21 [1] : vector<32x48xf32> to vector<32xf32>
    %47 = vector.shape_cast %46 : vector<32xf32> to vector<32x1xf32>
    %48 = vector.broadcast %47 : vector<32x1xf32> to vector<32x48xf32>
    %49 = arith.cmpf oeq, %45, %48 : vector<32x48xf32>
    %cst_22 = arith.constant 1.000000e+30 : f32
    %50 = vector.broadcast %cst_22 : f32 to vector<32x48xf32>
    %51 = arith.select %49, %32, %50 : vector<32x48xi1>, vector<32x48xf32>
    %cst_23 = arith.constant dense<0x7F800000> : vector<32xf32>
    %52 = vector.multi_reduction <minimumf>, %51, %cst_23 [1] : vector<32x48xf32> to vector<32xf32>
    %53 = vector.shape_cast %52 : vector<32xf32> to vector<32x1xf32>
    %54 = vector.broadcast %53 : vector<32x1xf32> to vector<32x48xf32>
    %55 = arith.cmpf oeq, %32, %54 : vector<32x48xf32>
    %56 = arith.andi %49, %55 : vector<32x48xi1>
    %cst_24 = arith.constant 0x7F800000 : f32
    %57 = vector.broadcast %cst_24 : f32 to vector<32x48xf32>
    %58 = arith.select %56, %57, %45 : vector<32x48xi1>, vector<32x48xf32>
    %cst_25 = arith.constant dense<0x7F800000> : vector<32xf32>
    %59 = vector.multi_reduction <minimumf>, %58, %cst_25 [1] : vector<32x48xf32> to vector<32xf32>
    %60 = vector.shape_cast %59 : vector<32xf32> to vector<32x1xf32>
    %61 = vector.broadcast %60 : vector<32x1xf32> to vector<32x48xf32>
    %62 = arith.cmpf oeq, %58, %61 : vector<32x48xf32>
    %cst_26 = arith.constant 1.000000e+30 : f32
    %63 = vector.broadcast %cst_26 : f32 to vector<32x48xf32>
    %64 = arith.select %62, %32, %63 : vector<32x48xi1>, vector<32x48xf32>
    %cst_27 = arith.constant dense<0x7F800000> : vector<32xf32>
    %65 = vector.multi_reduction <minimumf>, %64, %cst_27 [1] : vector<32x48xf32> to vector<32xf32>
    %66 = vector.shape_cast %65 : vector<32xf32> to vector<32x1xf32>
    %67 = vector.broadcast %66 : vector<32x1xf32> to vector<32x48xf32>
    %68 = arith.cmpf oeq, %32, %67 : vector<32x48xf32>
    %69 = arith.andi %62, %68 : vector<32x48xi1>
    %cst_28 = arith.constant 0x7F800000 : f32
    %70 = vector.broadcast %cst_28 : f32 to vector<32x48xf32>
    %71 = arith.select %69, %70, %58 : vector<32x48xi1>, vector<32x48xf32>
    %cst_29 = arith.constant dense<0x7F800000> : vector<32xf32>
    %72 = vector.multi_reduction <minimumf>, %71, %cst_29 [1] : vector<32x48xf32> to vector<32xf32>
    %73 = vector.shape_cast %72 : vector<32xf32> to vector<32x1xf32>
    %74 = vector.broadcast %73 : vector<32x1xf32> to vector<32x48xf32>
    %75 = arith.cmpf oeq, %71, %74 : vector<32x48xf32>
    %cst_30 = arith.constant 1.000000e+30 : f32
    %76 = vector.broadcast %cst_30 : f32 to vector<32x48xf32>
    %77 = arith.select %75, %32, %76 : vector<32x48xi1>, vector<32x48xf32>
    %cst_31 = arith.constant dense<0x7F800000> : vector<32xf32>
    %78 = vector.multi_reduction <minimumf>, %77, %cst_31 [1] : vector<32x48xf32> to vector<32xf32>
    %79 = vector.shape_cast %78 : vector<32xf32> to vector<32x1xf32>
    %80 = vector.broadcast %79 : vector<32x1xf32> to vector<32x48xf32>
    %81 = arith.cmpf oeq, %32, %80 : vector<32x48xf32>
    %82 = arith.andi %75, %81 : vector<32x48xi1>
    %cst_32 = arith.constant 0x7F800000 : f32
    %83 = vector.broadcast %cst_32 : f32 to vector<32x48xf32>
    %84 = arith.select %82, %83, %71 : vector<32x48xi1>, vector<32x48xf32>
    %cst_33 = arith.constant dense<0x7F800000> : vector<32xf32>
    %85 = vector.multi_reduction <minimumf>, %84, %cst_33 [1] : vector<32x48xf32> to vector<32xf32>
    %86 = vector.shape_cast %85 : vector<32xf32> to vector<32x1xf32>
    %87 = vector.broadcast %86 : vector<32x1xf32> to vector<32x48xf32>
    %88 = arith.cmpf oeq, %84, %87 : vector<32x48xf32>
    %cst_34 = arith.constant 1.000000e+30 : f32
    %89 = vector.broadcast %cst_34 : f32 to vector<32x48xf32>
    %90 = arith.select %88, %32, %89 : vector<32x48xi1>, vector<32x48xf32>
    %cst_35 = arith.constant dense<0x7F800000> : vector<32xf32>
    %91 = vector.multi_reduction <minimumf>, %90, %cst_35 [1] : vector<32x48xf32> to vector<32xf32>
    %92 = vector.shape_cast %91 : vector<32xf32> to vector<32x1xf32>
    %93 = vector.broadcast %92 : vector<32x1xf32> to vector<32x48xf32>
    %94 = arith.cmpf oeq, %32, %93 : vector<32x48xf32>
    %95 = arith.andi %88, %94 : vector<32x48xi1>
    %cst_36 = arith.constant 0x7F800000 : f32
    %96 = vector.broadcast %cst_36 : f32 to vector<32x48xf32>
    %97 = arith.select %95, %96, %84 : vector<32x48xi1>, vector<32x48xf32>
    %cst_37 = arith.constant dense<0x7F800000> : vector<32xf32>
    %98 = vector.multi_reduction <minimumf>, %97, %cst_37 [1] : vector<32x48xf32> to vector<32xf32>
    %99 = vector.shape_cast %98 : vector<32xf32> to vector<32x1xf32>
    %100 = vector.broadcast %99 : vector<32x1xf32> to vector<32x48xf32>
    %101 = arith.cmpf oeq, %97, %100 : vector<32x48xf32>
    %cst_38 = arith.constant 1.000000e+30 : f32
    %102 = vector.broadcast %cst_38 : f32 to vector<32x48xf32>
    %103 = arith.select %101, %32, %102 : vector<32x48xi1>, vector<32x48xf32>
    %cst_39 = arith.constant dense<0x7F800000> : vector<32xf32>
    %104 = vector.multi_reduction <minimumf>, %103, %cst_39 [1] : vector<32x48xf32> to vector<32xf32>
    %105 = vector.shape_cast %104 : vector<32xf32> to vector<32x1xf32>
    %106 = vector.broadcast %105 : vector<32x1xf32> to vector<32x48xf32>
    %107 = arith.cmpf oeq, %32, %106 : vector<32x48xf32>
    %108 = arith.andi %101, %107 : vector<32x48xi1>
    %cst_40 = arith.constant 0x7F800000 : f32
    %109 = vector.broadcast %cst_40 : f32 to vector<32x48xf32>
    %110 = arith.select %108, %109, %97 : vector<32x48xi1>, vector<32x48xf32>
    %cst_41 = arith.constant dense<0x7F800000> : vector<32xf32>
    %111 = vector.multi_reduction <minimumf>, %110, %cst_41 [1] : vector<32x48xf32> to vector<32xf32>
    %112 = vector.shape_cast %111 : vector<32xf32> to vector<32x1xf32>
    %113 = vector.broadcast %112 : vector<32x1xf32> to vector<32x48xf32>
    %114 = arith.cmpf oeq, %110, %113 : vector<32x48xf32>
    %cst_42 = arith.constant 1.000000e+30 : f32
    %115 = vector.broadcast %cst_42 : f32 to vector<32x48xf32>
    %116 = arith.select %114, %32, %115 : vector<32x48xi1>, vector<32x48xf32>
    %cst_43 = arith.constant dense<0x7F800000> : vector<32xf32>
    %117 = vector.multi_reduction <minimumf>, %116, %cst_43 [1] : vector<32x48xf32> to vector<32xf32>
    %118 = vector.shape_cast %117 : vector<32xf32> to vector<32x1xf32>
    %119 = vector.broadcast %118 : vector<32x1xf32> to vector<32x48xf32>
    %120 = arith.cmpf oeq, %32, %119 : vector<32x48xf32>
    %121 = arith.andi %114, %120 : vector<32x48xi1>
    %cst_44 = arith.constant 0x7F800000 : f32
    %122 = vector.broadcast %cst_44 : f32 to vector<32x48xf32>
    %123 = arith.select %121, %122, %110 : vector<32x48xi1>, vector<32x48xf32>
    %cst_45 = arith.constant dense<0x7F800000> : vector<32xf32>
    %124 = vector.multi_reduction <minimumf>, %123, %cst_45 [1] : vector<32x48xf32> to vector<32xf32>
    %125 = vector.shape_cast %124 : vector<32xf32> to vector<32x1xf32>
    %126 = vector.broadcast %125 : vector<32x1xf32> to vector<32x48xf32>
    %127 = arith.cmpf oeq, %123, %126 : vector<32x48xf32>
    %cst_46 = arith.constant 1.000000e+30 : f32
    %128 = vector.broadcast %cst_46 : f32 to vector<32x48xf32>
    %129 = arith.select %127, %32, %128 : vector<32x48xi1>, vector<32x48xf32>
    %cst_47 = arith.constant dense<0x7F800000> : vector<32xf32>
    %130 = vector.multi_reduction <minimumf>, %129, %cst_47 [1] : vector<32x48xf32> to vector<32xf32>
    %131 = vector.shape_cast %130 : vector<32xf32> to vector<32x1xf32>
    %132 = vector.broadcast %131 : vector<32x1xf32> to vector<32x48xf32>
    %133 = arith.cmpf oeq, %32, %132 : vector<32x48xf32>
    %134 = arith.andi %127, %133 : vector<32x48xi1>
    %cst_48 = arith.constant 0x7F800000 : f32
    %135 = vector.broadcast %cst_48 : f32 to vector<32x48xf32>
    %136 = arith.select %134, %135, %123 : vector<32x48xi1>, vector<32x48xf32>
    %cst_49 = arith.constant dense<0x7F800000> : vector<32xf32>
    %137 = vector.multi_reduction <minimumf>, %136, %cst_49 [1] : vector<32x48xf32> to vector<32xf32>
    %138 = vector.shape_cast %137 : vector<32xf32> to vector<32x1xf32>
    %139 = vector.broadcast %138 : vector<32x1xf32> to vector<32x48xf32>
    %140 = arith.cmpf oeq, %136, %139 : vector<32x48xf32>
    %cst_50 = arith.constant 1.000000e+30 : f32
    %141 = vector.broadcast %cst_50 : f32 to vector<32x48xf32>
    %142 = arith.select %140, %32, %141 : vector<32x48xi1>, vector<32x48xf32>
    %cst_51 = arith.constant dense<0x7F800000> : vector<32xf32>
    %143 = vector.multi_reduction <minimumf>, %142, %cst_51 [1] : vector<32x48xf32> to vector<32xf32>
    %144 = vector.shape_cast %143 : vector<32xf32> to vector<32x1xf32>
    %145 = vector.broadcast %144 : vector<32x1xf32> to vector<32x48xf32>
    %146 = arith.cmpf oeq, %32, %145 : vector<32x48xf32>
    %147 = arith.andi %140, %146 : vector<32x48xi1>
    %cst_52 = arith.constant 0x7F800000 : f32
    %148 = vector.broadcast %cst_52 : f32 to vector<32x48xf32>
    %149 = arith.select %147, %148, %136 : vector<32x48xi1>, vector<32x48xf32>
    %cst_53 = arith.constant dense<0x7F800000> : vector<32xf32>
    %150 = vector.multi_reduction <minimumf>, %149, %cst_53 [1] : vector<32x48xf32> to vector<32xf32>
    %151 = vector.shape_cast %150 : vector<32xf32> to vector<32x1xf32>
    %152 = vector.broadcast %151 : vector<32x1xf32> to vector<32x48xf32>
    %153 = arith.cmpf oeq, %149, %152 : vector<32x48xf32>
    %cst_54 = arith.constant 1.000000e+30 : f32
    %154 = vector.broadcast %cst_54 : f32 to vector<32x48xf32>
    %155 = arith.select %153, %32, %154 : vector<32x48xi1>, vector<32x48xf32>
    %cst_55 = arith.constant dense<0x7F800000> : vector<32xf32>
    %156 = vector.multi_reduction <minimumf>, %155, %cst_55 [1] : vector<32x48xf32> to vector<32xf32>
    %157 = vector.shape_cast %156 : vector<32xf32> to vector<32x1xf32>
    %158 = vector.broadcast %157 : vector<32x1xf32> to vector<32x48xf32>
    %159 = arith.cmpf oeq, %32, %158 : vector<32x48xf32>
    %160 = arith.andi %153, %159 : vector<32x48xi1>
    %cst_56 = arith.constant 0x7F800000 : f32
    %161 = vector.broadcast %cst_56 : f32 to vector<32x48xf32>
    %162 = arith.select %160, %161, %149 : vector<32x48xi1>, vector<32x48xf32>
    %cst_57 = arith.constant dense<0x7F800000> : vector<32xf32>
    %163 = vector.multi_reduction <minimumf>, %162, %cst_57 [1] : vector<32x48xf32> to vector<32xf32>
    %164 = vector.shape_cast %163 : vector<32xf32> to vector<32x1xf32>
    %165 = vector.broadcast %164 : vector<32x1xf32> to vector<32x48xf32>
    %166 = arith.cmpf oeq, %162, %165 : vector<32x48xf32>
    %cst_58 = arith.constant 1.000000e+30 : f32
    %167 = vector.broadcast %cst_58 : f32 to vector<32x48xf32>
    %168 = arith.select %166, %32, %167 : vector<32x48xi1>, vector<32x48xf32>
    %cst_59 = arith.constant dense<0x7F800000> : vector<32xf32>
    %169 = vector.multi_reduction <minimumf>, %168, %cst_59 [1] : vector<32x48xf32> to vector<32xf32>
    %170 = vector.shape_cast %169 : vector<32xf32> to vector<32x1xf32>
    %171 = vector.broadcast %170 : vector<32x1xf32> to vector<32x48xf32>
    %172 = arith.cmpf oeq, %32, %171 : vector<32x48xf32>
    %173 = arith.andi %166, %172 : vector<32x48xi1>
    %cst_60 = arith.constant 0x7F800000 : f32
    %174 = vector.broadcast %cst_60 : f32 to vector<32x48xf32>
    %175 = arith.select %173, %174, %162 : vector<32x48xi1>, vector<32x48xf32>
    %cst_61 = arith.constant dense<0x7F800000> : vector<32xf32>
    %176 = vector.multi_reduction <minimumf>, %175, %cst_61 [1] : vector<32x48xf32> to vector<32xf32>
    %177 = vector.shape_cast %176 : vector<32xf32> to vector<32x1xf32>
    %178 = vector.broadcast %177 : vector<32x1xf32> to vector<32x48xf32>
    %179 = arith.cmpf oeq, %175, %178 : vector<32x48xf32>
    %cst_62 = arith.constant 1.000000e+30 : f32
    %180 = vector.broadcast %cst_62 : f32 to vector<32x48xf32>
    %181 = arith.select %179, %32, %180 : vector<32x48xi1>, vector<32x48xf32>
    %cst_63 = arith.constant dense<0x7F800000> : vector<32xf32>
    %182 = vector.multi_reduction <minimumf>, %181, %cst_63 [1] : vector<32x48xf32> to vector<32xf32>
    %183 = vector.shape_cast %182 : vector<32xf32> to vector<32x1xf32>
    %184 = vector.broadcast %183 : vector<32x1xf32> to vector<32x48xf32>
    %185 = arith.cmpf oeq, %32, %184 : vector<32x48xf32>
    %186 = arith.andi %179, %185 : vector<32x48xi1>
    %cst_64 = arith.constant 0x7F800000 : f32
    %187 = vector.broadcast %cst_64 : f32 to vector<32x48xf32>
    %188 = arith.select %186, %187, %175 : vector<32x48xi1>, vector<32x48xf32>
    %cst_65 = arith.constant dense<0x7F800000> : vector<32xf32>
    %189 = vector.multi_reduction <minimumf>, %188, %cst_65 [1] : vector<32x48xf32> to vector<32xf32>
    %190 = vector.shape_cast %189 : vector<32xf32> to vector<32x1xf32>
    %191 = vector.broadcast %190 : vector<32x1xf32> to vector<32x48xf32>
    %192 = arith.cmpf oeq, %188, %191 : vector<32x48xf32>
    %cst_66 = arith.constant 1.000000e+30 : f32
    %193 = vector.broadcast %cst_66 : f32 to vector<32x48xf32>
    %194 = arith.select %192, %32, %193 : vector<32x48xi1>, vector<32x48xf32>
    %cst_67 = arith.constant dense<0x7F800000> : vector<32xf32>
    %195 = vector.multi_reduction <minimumf>, %194, %cst_67 [1] : vector<32x48xf32> to vector<32xf32>
    %196 = vector.shape_cast %195 : vector<32xf32> to vector<32x1xf32>
    %197 = vector.broadcast %196 : vector<32x1xf32> to vector<32x48xf32>
    %198 = arith.cmpf oeq, %32, %197 : vector<32x48xf32>
    %199 = arith.andi %192, %198 : vector<32x48xi1>
    %cst_68 = arith.constant 0x7F800000 : f32
    %200 = vector.broadcast %cst_68 : f32 to vector<32x48xf32>
    %201 = arith.select %199, %200, %188 : vector<32x48xi1>, vector<32x48xf32>
    %cst_69 = arith.constant dense<0x7F800000> : vector<32xf32>
    %202 = vector.multi_reduction <minimumf>, %201, %cst_69 [1] : vector<32x48xf32> to vector<32xf32>
    %203 = vector.shape_cast %202 : vector<32xf32> to vector<32x1xf32>
    %204 = vector.broadcast %203 : vector<32x1xf32> to vector<32x48xf32>
    %205 = arith.cmpf oeq, %201, %204 : vector<32x48xf32>
    %cst_70 = arith.constant 1.000000e+30 : f32
    %206 = vector.broadcast %cst_70 : f32 to vector<32x48xf32>
    %207 = arith.select %205, %32, %206 : vector<32x48xi1>, vector<32x48xf32>
    %cst_71 = arith.constant dense<0x7F800000> : vector<32xf32>
    %208 = vector.multi_reduction <minimumf>, %207, %cst_71 [1] : vector<32x48xf32> to vector<32xf32>
    %209 = vector.shape_cast %208 : vector<32xf32> to vector<32x1xf32>
    %210 = vector.broadcast %209 : vector<32x1xf32> to vector<32x48xf32>
    %211 = arith.cmpf oeq, %32, %210 : vector<32x48xf32>
    %212 = arith.andi %205, %211 : vector<32x48xi1>
    %cst_72 = arith.constant 0x7F800000 : f32
    %213 = vector.broadcast %cst_72 : f32 to vector<32x48xf32>
    %214 = arith.select %212, %213, %201 : vector<32x48xi1>, vector<32x48xf32>
    %cst_73 = arith.constant dense<0x7F800000> : vector<32xf32>
    %215 = vector.multi_reduction <minimumf>, %214, %cst_73 [1] : vector<32x48xf32> to vector<32xf32>
    %216 = vector.shape_cast %215 : vector<32xf32> to vector<32x1xf32>
    %217 = vector.broadcast %216 : vector<32x1xf32> to vector<32x48xf32>
    %218 = arith.cmpf oeq, %214, %217 : vector<32x48xf32>
    %cst_74 = arith.constant 1.000000e+30 : f32
    %219 = vector.broadcast %cst_74 : f32 to vector<32x48xf32>
    %220 = arith.select %218, %32, %219 : vector<32x48xi1>, vector<32x48xf32>
    %cst_75 = arith.constant dense<0x7F800000> : vector<32xf32>
    %221 = vector.multi_reduction <minimumf>, %220, %cst_75 [1] : vector<32x48xf32> to vector<32xf32>
    %222 = vector.shape_cast %221 : vector<32xf32> to vector<32x1xf32>
    %223 = vector.broadcast %222 : vector<32x1xf32> to vector<32x48xf32>
    %224 = arith.cmpf oeq, %32, %223 : vector<32x48xf32>
    %225 = arith.andi %218, %224 : vector<32x48xi1>
    %cst_76 = arith.constant 0x7F800000 : f32
    %226 = vector.broadcast %cst_76 : f32 to vector<32x48xf32>
    %227 = arith.select %225, %226, %214 : vector<32x48xi1>, vector<32x48xf32>
    %cst_77 = arith.constant dense<0x7F800000> : vector<32xf32>
    %228 = vector.multi_reduction <minimumf>, %227, %cst_77 [1] : vector<32x48xf32> to vector<32xf32>
    %229 = vector.shape_cast %228 : vector<32xf32> to vector<32x1xf32>
    %230 = vector.broadcast %229 : vector<32x1xf32> to vector<32x48xf32>
    %231 = arith.cmpf oeq, %227, %230 : vector<32x48xf32>
    %cst_78 = arith.constant 1.000000e+30 : f32
    %232 = vector.broadcast %cst_78 : f32 to vector<32x48xf32>
    %233 = arith.select %231, %32, %232 : vector<32x48xi1>, vector<32x48xf32>
    %cst_79 = arith.constant dense<0x7F800000> : vector<32xf32>
    %234 = vector.multi_reduction <minimumf>, %233, %cst_79 [1] : vector<32x48xf32> to vector<32xf32>
    %235 = vector.shape_cast %234 : vector<32xf32> to vector<32x1xf32>
    %236 = tpu.concatenate %34, %47, %60, %73, %86, %99, %112, %125, %138, %151, %164, %177, %190, %203, %216, %229 in 1 : vector<32x1xf32>, vector<32x1xf32>, vector<32x1xf32>, vector<32x1xf32>, vector<32x1xf32>, vector<32x1xf32>, vector<32x1xf32>, vector<32x1xf32>, vector<32x1xf32>, vector<32x1xf32>, vector<32x1xf32>, vector<32x1xf32>, vector<32x1xf32>, vector<32x1xf32>, vector<32x1xf32>, vector<32x1xf32> -> vector<32x16xf32>
    %c0_80 = arith.constant 0 : index
    %c0_81 = arith.constant 0 : index
    %237 = vector.load %arg7[%c0_80, %c0_81] : memref<32x16xf32, #tpu.memory_space<vmem>>, vector<32x16xf32>
    tpu.vector_store %arg7[%c0_80, %c0_81], %236 {strides = array<i32>} : memref<32x16xf32, #tpu.memory_space<vmem>>, vector<32x16xf32>,
    %238 = tpu.concatenate %40, %53, %66, %79, %92, %105, %118, %131, %144, %157, %170, %183, %196, %209, %222, %235 in 1 : vector<32x1xf32>, vector<32x1xf32>, vector<32x1xf32>, vector<32x1xf32>, vector<32x1xf32>, vector<32x1xf32>, vector<32x1xf32>, vector<32x1xf32>, vector<32x1xf32>, vector<32x1xf32>, vector<32x1xf32>, vector<32x1xf32>, vector<32x1xf32>, vector<32x1xf32>, vector<32x1xf32>, vector<32x1xf32> -> vector<32x16xf32>
    %c0_82 = arith.constant 0 : index
    %c0_83 = arith.constant 0 : index
    %239 = vector.load %arg8[%c0_82, %c0_83] : memref<32x16xf32, #tpu.memory_space<vmem>>, vector<32x16xf32>
    tpu.vector_store %arg8[%c0_82, %c0_83], %238 {strides = array<i32>} : memref<32x16xf32, #tpu.memory_space<vmem>>, vector<32x16xf32>,
    %c0_i32_84 = arith.constant 0 : i32
    %240 = arith.cmpi eq, %arg2, %c0_i32_84 : i32
    %241 = arith.extui %240 : i1 to i32
    %c0_i32_85 = arith.constant 0 : i32
    %242 = arith.cmpi ne, %241, %c0_i32_85 : i32
    scf.if %242 {
      %c0_86 = arith.constant 0 : index
      %c0_87 = arith.constant 0 : index
      %243 = vector.load %arg8[%c0_86, %c0_87] : memref<32x16xf32, #tpu.memory_space<vmem>>, vector<32x16xf32>
      %244 = arith.fptosi %243 : vector<32x16xf32> to vector<32x16xi32>
      %c0_88 = arith.constant 0 : index
      %c0_89 = arith.constant 0 : index
      %c0_90 = arith.constant 0 : index
      %245 = vector.load %arg6[%c0_88, %c0_89, %c0_90] : memref<1x32x16xi32, #tpu.memory_space<vmem>>, vector<1x32x16xi32>
      %246 = vector.shape_cast %245 : vector<1x32x16xi32> to vector<32x16xi32>
      %247 = vector.shape_cast %244 : vector<32x16xi32> to vector<1x32x16xi32>
      tpu.vector_store %arg6[%c0_88, %c0_89, %c0_90], %247 {strides = array<i32>} : memref<1x32x16xi32, #tpu.memory_space<vmem>>, vector<1x32x16xi32>,
    } else {
    }
    return
  }
  func.func @transform_0(%arg0: i32, %arg1: i32, %arg2: i32) -> (i32, i32, i32) {
    %c0_i32 = arith.constant 0 : i32
    %c0_i32_0 = arith.constant 0 : i32
    return %arg0, %arg1, %c0_i32 : i32, i32, i32
  }
  func.func @transform_1(%arg0: i32, %arg1: i32, %arg2: i32) -> (i32, i32, i32) {
    %c0_i32 = arith.constant 0 : i32
    %c0_i32_0 = arith.constant 0 : i32
    return %arg0, %arg2, %c0_i32 : i32, i32, i32
  }
  func.func @transform_2(%arg0: i32, %arg1: i32, %arg2: i32) -> (i32, i32, i32) {
    %c0_i32 = arith.constant 0 : i32
    %c0_i32_0 = arith.constant 0 : i32
    return %arg0, %c0_i32, %arg2 : i32, i32, i32
  }
  func.func @transform_3(%arg0: i32, %arg1: i32, %arg2: i32) -> (i32, i32, i32) {
    %c0_i32 = arith.constant 0 : i32
    %c0_i32_0 = arith.constant 0 : i32
    return %arg0, %arg1, %c0_i32 : i32, i32, i32
  }
}

module attributes {stable_mosaic.version = 11 : i64} {
  func.func @_edge_mlp_kernel(%arg0: i32, %arg1: i32, %arg2: i32, %arg3: memref<1x1x32x32xf32, #tpu.memory_space<vmem>>, %arg4: memref<1x16x32x32xbf16, #tpu.memory_space<vmem>>, %arg5: memref<32x128xbf16, #tpu.memory_space<vmem>>, %arg6: memref<32x128xbf16, #tpu.memory_space<vmem>>, %arg7: memref<1x128xf32, #tpu.memory_space<vmem>>, %arg8: memref<128x128xbf16, #tpu.memory_space<vmem>>, %arg9: memref<1x128xf32, #tpu.memory_space<vmem>>, %arg10: memref<128x32xbf16, #tpu.memory_space<vmem>>, %arg11: memref<1x32xf32, #tpu.memory_space<vmem>>, %arg12: memref<1x1x32x32xf32, #tpu.memory_space<vmem>>) attributes {dimension_semantics = [#tpu.dimension_semantics<parallel>, #tpu.dimension_semantics<parallel>, #tpu.dimension_semantics<parallel>], iteration_bounds = array<i64: 2, 1, 1>, scalar_prefetch = 0 : i64, scratch_operands = 0 : i64, tpu.core_type = #tpu.core_type<tc>, window_params = [{transform_indices = @transform_0, window_bounds = array<i64: 1, 1, 32, 32>}, {transform_indices = @transform_1, window_bounds = array<i64: 1, 16, 32, 32>}, {pipeline_mode = #tpu.pipeline_mode<synchronous>, transform_indices = @transform_2, window_bounds = array<i64: 32, 128>}, {pipeline_mode = #tpu.pipeline_mode<synchronous>, transform_indices = @transform_3, window_bounds = array<i64: 32, 128>}, {pipeline_mode = #tpu.pipeline_mode<synchronous>, transform_indices = @transform_4, window_bounds = array<i64: 1, 128>}, {pipeline_mode = #tpu.pipeline_mode<synchronous>, transform_indices = @transform_5, window_bounds = array<i64: 128, 128>}, {pipeline_mode = #tpu.pipeline_mode<synchronous>, transform_indices = @transform_6, window_bounds = array<i64: 1, 128>}, {pipeline_mode = #tpu.pipeline_mode<synchronous>, transform_indices = @transform_7, window_bounds = array<i64: 128, 32>}, {pipeline_mode = #tpu.pipeline_mode<synchronous>, transform_indices = @transform_8, window_bounds = array<i64: 1, 32>}, {transform_indices = @transform_9, window_bounds = array<i64: 1, 1, 32, 32>}]} {
    %c0 = arith.constant 0 : index
    %c0_0 = arith.constant 0 : index
    %c0_1 = arith.constant 0 : index
    %c0_2 = arith.constant 0 : index
    %0 = vector.load %arg3[%c0, %c0_0, %c0_1, %c0_2] : memref<1x1x32x32xf32, #tpu.memory_space<vmem>>, vector<1x1x32x32xf32>
    %1 = vector.shape_cast %0 : vector<1x1x32x32xf32> to vector<32x32xf32>
    %2 = arith.truncf %1 : vector<32x32xf32> to vector<32x32xbf16>
    %c0_3 = arith.constant 0 : index
    %c0_4 = arith.constant 0 : index
    %3 = vector.load %arg5[%c0_3, %c0_4] : memref<32x128xbf16, #tpu.memory_space<vmem>>, vector<32x128xbf16>
    %cst = arith.constant dense<0.000000e+00> : vector<32x128xf32>
    %4 = tpu.matmul %2, %3, %cst {dimension_numbers = #tpu.dot_dimension_numbers<[1], [0], [0], [1], [0, 0, 1, 1], [], []>} : vector<32x32xbf16>, vector<32x128xbf16>, vector<32x128xf32> -> vector<32x128xf32>
    %c0_5 = arith.constant 0 : index
    %c0_6 = arith.constant 0 : index
    %5 = vector.load %arg7[%c0_5, %c0_6] : memref<1x128xf32, #tpu.memory_space<vmem>>, vector<1x128xf32>
    %6 = vector.broadcast %5 : vector<1x128xf32> to vector<32x128xf32>
    %7 = arith.addf %4, %6 : vector<32x128xf32>
    %c0_7 = arith.constant 0 : index
    %c0_8 = arith.constant 0 : index
    %c0_9 = arith.constant 0 : index
    %c0_10 = arith.constant 0 : index
    %8 = vector.load %arg4[%c0_7, %c0_8, %c0_9, %c0_10] : memref<1x16x32x32xbf16, #tpu.memory_space<vmem>>, vector<1x16x32x32xbf16>
    %9 = vector.shape_cast %8 : vector<1x16x32x32xbf16> to vector<16x32x32xbf16>
    %10 = vector.shape_cast %9 : vector<16x32x32xbf16> to vector<512x32xbf16>
    %c0_11 = arith.constant 0 : index
    %c0_12 = arith.constant 0 : index
    %11 = vector.load %arg6[%c0_11, %c0_12] : memref<32x128xbf16, #tpu.memory_space<vmem>>, vector<32x128xbf16>
    %cst_13 = arith.constant dense<0.000000e+00> : vector<512x128xf32>
    %12 = tpu.matmul %10, %11, %cst_13 {dimension_numbers = #tpu.dot_dimension_numbers<[1], [0], [0], [1], [0, 0, 1, 1], [], []>} : vector<512x32xbf16>, vector<32x128xbf16>, vector<512x128xf32> -> vector<512x128xf32>
    %13 = vector.shape_cast %12 : vector<512x128xf32> to vector<16x32x128xf32>
    %14 = vector.shape_cast %7 : vector<32x128xf32> to vector<1x32x128xf32>
    %15 = vector.broadcast %14 : vector<1x32x128xf32> to vector<16x32x128xf32>
    %16 = arith.addf %13, %15 : vector<16x32x128xf32>
    %cst_14 = arith.constant 0.000000e+00 : f32
    %17 = vector.broadcast %cst_14 : f32 to vector<16x32x128xf32>
    %18 = arith.maximumf %16, %17 : vector<16x32x128xf32>
    %19 = vector.shape_cast %18 : vector<16x32x128xf32> to vector<512x128xf32>
    %20 = arith.truncf %19 : vector<512x128xf32> to vector<512x128xbf16>
    %c0_15 = arith.constant 0 : index
    %c0_16 = arith.constant 0 : index
    %21 = vector.load %arg8[%c0_15, %c0_16] : memref<128x128xbf16, #tpu.memory_space<vmem>>, vector<128x128xbf16>
    %cst_17 = arith.constant dense<0.000000e+00> : vector<512x128xf32>
    %22 = tpu.matmul %20, %21, %cst_17 {dimension_numbers = #tpu.dot_dimension_numbers<[1], [0], [0], [1], [0, 0, 1, 1], [], []>} : vector<512x128xbf16>, vector<128x128xbf16>, vector<512x128xf32> -> vector<512x128xf32>
    %c0_18 = arith.constant 0 : index
    %c0_19 = arith.constant 0 : index
    %23 = vector.load %arg9[%c0_18, %c0_19] : memref<1x128xf32, #tpu.memory_space<vmem>>, vector<1x128xf32>
    %24 = vector.broadcast %23 : vector<1x128xf32> to vector<512x128xf32>
    %25 = arith.addf %22, %24 : vector<512x128xf32>
    %cst_20 = arith.constant 0.000000e+00 : f32
    %26 = vector.broadcast %cst_20 : f32 to vector<512x128xf32>
    %27 = arith.maximumf %25, %26 : vector<512x128xf32>
    %28 = arith.truncf %27 : vector<512x128xf32> to vector<512x128xbf16>
    %c0_21 = arith.constant 0 : index
    %c0_22 = arith.constant 0 : index
    %29 = vector.load %arg10[%c0_21, %c0_22] : memref<128x32xbf16, #tpu.memory_space<vmem>>, vector<128x32xbf16>
    %cst_23 = arith.constant dense<0.000000e+00> : vector<512x32xf32>
    %30 = tpu.matmul %28, %29, %cst_23 {dimension_numbers = #tpu.dot_dimension_numbers<[1], [0], [0], [1], [0, 0, 1, 1], [], []>} : vector<512x128xbf16>, vector<128x32xbf16>, vector<512x32xf32> -> vector<512x32xf32>
    %c0_24 = arith.constant 0 : index
    %c0_25 = arith.constant 0 : index
    %31 = vector.load %arg11[%c0_24, %c0_25] : memref<1x32xf32, #tpu.memory_space<vmem>>, vector<1x32xf32>
    %32 = vector.broadcast %31 : vector<1x32xf32> to vector<512x32xf32>
    %33 = arith.addf %30, %32 : vector<512x32xf32>
    %34 = vector.shape_cast %33 : vector<512x32xf32> to vector<16x32x32xf32>
    %cst_26 = arith.constant dense<0xFF800000> : vector<32x32xf32>
    %35 = vector.multi_reduction <maximumf>, %34, %cst_26 [0] : vector<16x32x32xf32> to vector<32x32xf32>
    %36 = arith.addf %35, %1 : vector<32x32xf32>
    %c0_27 = arith.constant 0 : index
    %c0_28 = arith.constant 0 : index
    %c0_29 = arith.constant 0 : index
    %c0_30 = arith.constant 0 : index
    %37 = vector.load %arg12[%c0_27, %c0_28, %c0_29, %c0_30] : memref<1x1x32x32xf32, #tpu.memory_space<vmem>>, vector<1x1x32x32xf32>
    %38 = vector.shape_cast %37 : vector<1x1x32x32xf32> to vector<32x32xf32>
    %39 = vector.shape_cast %36 : vector<32x32xf32> to vector<1x1x32x32xf32>
    tpu.vector_store %arg12[%c0_27, %c0_28, %c0_29, %c0_30], %39 {strides = array<i32>} : memref<1x1x32x32xf32, #tpu.memory_space<vmem>>, vector<1x1x32x32xf32>,
    return
  }
  func.func @transform_0(%arg0: i32, %arg1: i32, %arg2: i32) -> (i32, i32, i32, i32) {
    %c0_i32 = arith.constant 0 : i32
    %c0_i32_0 = arith.constant 0 : i32
    return %arg0, %arg2, %arg1, %c0_i32 : i32, i32, i32, i32
  }
  func.func @transform_1(%arg0: i32, %arg1: i32, %arg2: i32) -> (i32, i32, i32, i32) {
    %c0_i32 = arith.constant 0 : i32
    %c0_i32_0 = arith.constant 0 : i32
    %c0_i32_1 = arith.constant 0 : i32
    return %arg0, %c0_i32, %arg1, %c0_i32_0 : i32, i32, i32, i32
  }
  func.func @transform_2(%arg0: i32, %arg1: i32, %arg2: i32) -> (i32, i32) {
    %c0_i32 = arith.constant 0 : i32
    %c0_i32_0 = arith.constant 0 : i32
    %c0_i32_1 = arith.constant 0 : i32
    return %c0_i32, %c0_i32_0 : i32, i32
  }
  func.func @transform_3(%arg0: i32, %arg1: i32, %arg2: i32) -> (i32, i32) {
    %c0_i32 = arith.constant 0 : i32
    %c0_i32_0 = arith.constant 0 : i32
    %c0_i32_1 = arith.constant 0 : i32
    return %c0_i32, %c0_i32_0 : i32, i32
  }
  func.func @transform_4(%arg0: i32, %arg1: i32, %arg2: i32) -> (i32, i32) {
    %c0_i32 = arith.constant 0 : i32
    %c0_i32_0 = arith.constant 0 : i32
    %c0_i32_1 = arith.constant 0 : i32
    return %c0_i32, %c0_i32_0 : i32, i32
  }
  func.func @transform_5(%arg0: i32, %arg1: i32, %arg2: i32) -> (i32, i32) {
    %c0_i32 = arith.constant 0 : i32
    %c0_i32_0 = arith.constant 0 : i32
    %c0_i32_1 = arith.constant 0 : i32
    return %c0_i32, %c0_i32_0 : i32, i32
  }
  func.func @transform_6(%arg0: i32, %arg1: i32, %arg2: i32) -> (i32, i32) {
    %c0_i32 = arith.constant 0 : i32
    %c0_i32_0 = arith.constant 0 : i32
    %c0_i32_1 = arith.constant 0 : i32
    return %c0_i32, %c0_i32_0 : i32, i32
  }
  func.func @transform_7(%arg0: i32, %arg1: i32, %arg2: i32) -> (i32, i32) {
    %c0_i32 = arith.constant 0 : i32
    %c0_i32_0 = arith.constant 0 : i32
    %c0_i32_1 = arith.constant 0 : i32
    return %c0_i32, %c0_i32_0 : i32, i32
  }
  func.func @transform_8(%arg0: i32, %arg1: i32, %arg2: i32) -> (i32, i32) {
    %c0_i32 = arith.constant 0 : i32
    %c0_i32_0 = arith.constant 0 : i32
    %c0_i32_1 = arith.constant 0 : i32
    return %c0_i32, %c0_i32_0 : i32, i32
  }
  func.func @transform_9(%arg0: i32, %arg1: i32, %arg2: i32) -> (i32, i32, i32, i32) {
    %c0_i32 = arith.constant 0 : i32
    %c0_i32_0 = arith.constant 0 : i32
    return %arg0, %arg2, %arg1, %c0_i32 : i32, i32, i32, i32
  }
}

module attributes {stable_mosaic.version = 11 : i64} {
  func.func @_linear_kernel(%arg0: i32, %arg1: memref<64x32xf32, #tpu.memory_space<vmem>>, %arg2: memref<32x96xf32, #tpu.memory_space<vmem>>, %arg3: memref<1x96xf32, #tpu.memory_space<vmem>>, %arg4: memref<64x96xf32, #tpu.memory_space<vmem>>) attributes {dimension_semantics = [#tpu.dimension_semantics<parallel>], iteration_bounds = array<i64: 1>, scalar_prefetch = 0 : i64, scratch_operands = 0 : i64, tpu.core_type = #tpu.core_type<tc>, window_params = [{transform_indices = @transform_0, window_bounds = array<i64: 64, 32>}, {pipeline_mode = #tpu.pipeline_mode<synchronous>, transform_indices = @transform_1, window_bounds = array<i64: 32, 96>}, {pipeline_mode = #tpu.pipeline_mode<synchronous>, transform_indices = @transform_2, window_bounds = array<i64: 1, 96>}, {transform_indices = @transform_3, window_bounds = array<i64: 64, 96>}]} {
    %c0 = arith.constant 0 : index
    %c0_0 = arith.constant 0 : index
    %0 = vector.load %arg1[%c0, %c0_0] : memref<64x32xf32, #tpu.memory_space<vmem>>, vector<64x32xf32>
    %c0_1 = arith.constant 0 : index
    %c0_2 = arith.constant 0 : index
    %1 = vector.load %arg2[%c0_1, %c0_2] : memref<32x96xf32, #tpu.memory_space<vmem>>, vector<32x96xf32>
    %cst = arith.constant dense<0.000000e+00> : vector<64x96xf32>
    %2 = tpu.matmul %0, %1, %cst {dimension_numbers = #tpu.dot_dimension_numbers<[1], [0], [0], [1], [0, 0, 1, 1], [], []>} : vector<64x32xf32>, vector<32x96xf32>, vector<64x96xf32> -> vector<64x96xf32>
    %c0_3 = arith.constant 0 : index
    %c0_4 = arith.constant 0 : index
    %3 = vector.load %arg3[%c0_3, %c0_4] : memref<1x96xf32, #tpu.memory_space<vmem>>, vector<1x96xf32>
    %4 = vector.broadcast %3 : vector<1x96xf32> to vector<64x96xf32>
    %5 = arith.addf %2, %4 : vector<64x96xf32>
    %cst_5 = arith.constant 0.000000e+00 : f32
    %6 = vector.broadcast %cst_5 : f32 to vector<64x96xf32>
    %7 = arith.maximumf %5, %6 : vector<64x96xf32>
    %c0_6 = arith.constant 0 : index
    %c0_7 = arith.constant 0 : index
    %8 = vector.load %arg4[%c0_6, %c0_7] : memref<64x96xf32, #tpu.memory_space<vmem>>, vector<64x96xf32>
    tpu.vector_store %arg4[%c0_6, %c0_7], %7 {strides = array<i32>} : memref<64x96xf32, #tpu.memory_space<vmem>>, vector<64x96xf32>,
    return
  }
  func.func @transform_0(%arg0: i32) -> (i32, i32) {
    %c0_i32 = arith.constant 0 : i32
    %c0_i32_0 = arith.constant 0 : i32
    return %arg0, %c0_i32 : i32, i32
  }
  func.func @transform_1(%arg0: i32) -> (i32, i32) {
    %c0_i32 = arith.constant 0 : i32
    %c0_i32_0 = arith.constant 0 : i32
    %c0_i32_1 = arith.constant 0 : i32
    return %c0_i32, %c0_i32_0 : i32, i32
  }
  func.func @transform_2(%arg0: i32) -> (i32, i32) {
    %c0_i32 = arith.constant 0 : i32
    %c0_i32_0 = arith.constant 0 : i32
    %c0_i32_1 = arith.constant 0 : i32
    return %c0_i32, %c0_i32_0 : i32, i32
  }
  func.func @transform_3(%arg0: i32) -> (i32, i32) {
    %c0_i32 = arith.constant 0 : i32
    %c0_i32_0 = arith.constant 0 : i32
    return %arg0, %c0_i32 : i32, i32
  }
}

module attributes {stable_mosaic.version = 11 : i64} {
  func.func @_edge_mlp_kernel(%arg0: i32, %arg1: i32, %arg2: i32, %arg3: memref<1x1x32x32xf32, #tpu.memory_space<vmem>>, %arg4: memref<1x16x32x32xbf16, #tpu.memory_space<vmem>>, %arg5: memref<32x128xbf16, #tpu.memory_space<vmem>>, %arg6: memref<32x128xbf16, #tpu.memory_space<vmem>>, %arg7: memref<1x128xf32, #tpu.memory_space<vmem>>, %arg8: memref<128x128xbf16, #tpu.memory_space<vmem>>, %arg9: memref<1x128xf32, #tpu.memory_space<vmem>>, %arg10: memref<128x32xbf16, #tpu.memory_space<vmem>>, %arg11: memref<1x32xf32, #tpu.memory_space<vmem>>, %arg12: memref<1x1x32x32xf32, #tpu.memory_space<vmem>>) attributes {dimension_semantics = [#tpu.dimension_semantics<parallel>, #tpu.dimension_semantics<parallel>, #tpu.dimension_semantics<parallel>], iteration_bounds = array<i64: 2, 1, 3>, scalar_prefetch = 0 : i64, scratch_operands = 0 : i64, tpu.core_type = #tpu.core_type<tc>, window_params = [{transform_indices = @transform_0, window_bounds = array<i64: 1, 1, 32, 32>}, {transform_indices = @transform_1, window_bounds = array<i64: 1, 16, 32, 32>}, {pipeline_mode = #tpu.pipeline_mode<synchronous>, transform_indices = @transform_2, window_bounds = array<i64: 32, 128>}, {pipeline_mode = #tpu.pipeline_mode<synchronous>, transform_indices = @transform_3, window_bounds = array<i64: 32, 128>}, {pipeline_mode = #tpu.pipeline_mode<synchronous>, transform_indices = @transform_4, window_bounds = array<i64: 1, 128>}, {pipeline_mode = #tpu.pipeline_mode<synchronous>, transform_indices = @transform_5, window_bounds = array<i64: 128, 128>}, {pipeline_mode = #tpu.pipeline_mode<synchronous>, transform_indices = @transform_6, window_bounds = array<i64: 1, 128>}, {pipeline_mode = #tpu.pipeline_mode<synchronous>, transform_indices = @transform_7, window_bounds = array<i64: 128, 32>}, {pipeline_mode = #tpu.pipeline_mode<synchronous>, transform_indices = @transform_8, window_bounds = array<i64: 1, 32>}, {transform_indices = @transform_9, window_bounds = array<i64: 1, 1, 32, 32>}]} {
    %c0 = arith.constant 0 : index
    %c0_0 = arith.constant 0 : index
    %c0_1 = arith.constant 0 : index
    %c0_2 = arith.constant 0 : index
    %0 = vector.load %arg3[%c0, %c0_0, %c0_1, %c0_2] : memref<1x1x32x32xf32, #tpu.memory_space<vmem>>, vector<1x1x32x32xf32>
    %1 = vector.shape_cast %0 : vector<1x1x32x32xf32> to vector<32x32xf32>
    %2 = arith.truncf %1 : vector<32x32xf32> to vector<32x32xbf16>
    %c0_3 = arith.constant 0 : index
    %c0_4 = arith.constant 0 : index
    %3 = vector.load %arg5[%c0_3, %c0_4] : memref<32x128xbf16, #tpu.memory_space<vmem>>, vector<32x128xbf16>
    %cst = arith.constant dense<0.000000e+00> : vector<32x128xf32>
    %4 = tpu.matmul %2, %3, %cst {dimension_numbers = #tpu.dot_dimension_numbers<[1], [0], [0], [1], [0, 0, 1, 1], [], []>} : vector<32x32xbf16>, vector<32x128xbf16>, vector<32x128xf32> -> vector<32x128xf32>
    %c0_5 = arith.constant 0 : index
    %c0_6 = arith.constant 0 : index
    %5 = vector.load %arg7[%c0_5, %c0_6] : memref<1x128xf32, #tpu.memory_space<vmem>>, vector<1x128xf32>
    %6 = vector.broadcast %5 : vector<1x128xf32> to vector<32x128xf32>
    %7 = arith.addf %4, %6 : vector<32x128xf32>
    %c0_7 = arith.constant 0 : index
    %c0_8 = arith.constant 0 : index
    %c0_9 = arith.constant 0 : index
    %c0_10 = arith.constant 0 : index
    %8 = vector.load %arg4[%c0_7, %c0_8, %c0_9, %c0_10] : memref<1x16x32x32xbf16, #tpu.memory_space<vmem>>, vector<1x16x32x32xbf16>
    %9 = vector.shape_cast %8 : vector<1x16x32x32xbf16> to vector<16x32x32xbf16>
    %10 = vector.shape_cast %9 : vector<16x32x32xbf16> to vector<512x32xbf16>
    %c0_11 = arith.constant 0 : index
    %c0_12 = arith.constant 0 : index
    %11 = vector.load %arg6[%c0_11, %c0_12] : memref<32x128xbf16, #tpu.memory_space<vmem>>, vector<32x128xbf16>
    %cst_13 = arith.constant dense<0.000000e+00> : vector<512x128xf32>
    %12 = tpu.matmul %10, %11, %cst_13 {dimension_numbers = #tpu.dot_dimension_numbers<[1], [0], [0], [1], [0, 0, 1, 1], [], []>} : vector<512x32xbf16>, vector<32x128xbf16>, vector<512x128xf32> -> vector<512x128xf32>
    %13 = vector.shape_cast %12 : vector<512x128xf32> to vector<16x32x128xf32>
    %14 = vector.shape_cast %7 : vector<32x128xf32> to vector<1x32x128xf32>
    %15 = vector.broadcast %14 : vector<1x32x128xf32> to vector<16x32x128xf32>
    %16 = arith.addf %13, %15 : vector<16x32x128xf32>
    %cst_14 = arith.constant 0.000000e+00 : f32
    %17 = vector.broadcast %cst_14 : f32 to vector<16x32x128xf32>
    %18 = arith.maximumf %16, %17 : vector<16x32x128xf32>
    %19 = vector.shape_cast %18 : vector<16x32x128xf32> to vector<512x128xf32>
    %20 = arith.truncf %19 : vector<512x128xf32> to vector<512x128xbf16>
    %c0_15 = arith.constant 0 : index
    %c0_16 = arith.constant 0 : index
    %21 = vector.load %arg8[%c0_15, %c0_16] : memref<128x128xbf16, #tpu.memory_space<vmem>>, vector<128x128xbf16>
    %cst_17 = arith.constant dense<0.000000e+00> : vector<512x128xf32>
    %22 = tpu.matmul %20, %21, %cst_17 {dimension_numbers = #tpu.dot_dimension_numbers<[1], [0], [0], [1], [0, 0, 1, 1], [], []>} : vector<512x128xbf16>, vector<128x128xbf16>, vector<512x128xf32> -> vector<512x128xf32>
    %c0_18 = arith.constant 0 : index
    %c0_19 = arith.constant 0 : index
    %23 = vector.load %arg9[%c0_18, %c0_19] : memref<1x128xf32, #tpu.memory_space<vmem>>, vector<1x128xf32>
    %24 = vector.broadcast %23 : vector<1x128xf32> to vector<512x128xf32>
    %25 = arith.addf %22, %24 : vector<512x128xf32>
    %cst_20 = arith.constant 0.000000e+00 : f32
    %26 = vector.broadcast %cst_20 : f32 to vector<512x128xf32>
    %27 = arith.maximumf %25, %26 : vector<512x128xf32>
    %28 = arith.truncf %27 : vector<512x128xf32> to vector<512x128xbf16>
    %c0_21 = arith.constant 0 : index
    %c0_22 = arith.constant 0 : index
    %29 = vector.load %arg10[%c0_21, %c0_22] : memref<128x32xbf16, #tpu.memory_space<vmem>>, vector<128x32xbf16>
    %cst_23 = arith.constant dense<0.000000e+00> : vector<512x32xf32>
    %30 = tpu.matmul %28, %29, %cst_23 {dimension_numbers = #tpu.dot_dimension_numbers<[1], [0], [0], [1], [0, 0, 1, 1], [], []>} : vector<512x128xbf16>, vector<128x32xbf16>, vector<512x32xf32> -> vector<512x32xf32>
    %c0_24 = arith.constant 0 : index
    %c0_25 = arith.constant 0 : index
    %31 = vector.load %arg11[%c0_24, %c0_25] : memref<1x32xf32, #tpu.memory_space<vmem>>, vector<1x32xf32>
    %32 = vector.broadcast %31 : vector<1x32xf32> to vector<512x32xf32>
    %33 = arith.addf %30, %32 : vector<512x32xf32>
    %34 = vector.shape_cast %33 : vector<512x32xf32> to vector<16x32x32xf32>
    %cst_26 = arith.constant dense<0xFF800000> : vector<32x32xf32>
    %35 = vector.multi_reduction <maximumf>, %34, %cst_26 [0] : vector<16x32x32xf32> to vector<32x32xf32>
    %36 = arith.addf %35, %1 : vector<32x32xf32>
    %c0_27 = arith.constant 0 : index
    %c0_28 = arith.constant 0 : index
    %c0_29 = arith.constant 0 : index
    %c0_30 = arith.constant 0 : index
    %37 = vector.load %arg12[%c0_27, %c0_28, %c0_29, %c0_30] : memref<1x1x32x32xf32, #tpu.memory_space<vmem>>, vector<1x1x32x32xf32>
    %38 = vector.shape_cast %37 : vector<1x1x32x32xf32> to vector<32x32xf32>
    %39 = vector.shape_cast %36 : vector<32x32xf32> to vector<1x1x32x32xf32>
    tpu.vector_store %arg12[%c0_27, %c0_28, %c0_29, %c0_30], %39 {strides = array<i32>} : memref<1x1x32x32xf32, #tpu.memory_space<vmem>>, vector<1x1x32x32xf32>,
    return
  }
  func.func @transform_0(%arg0: i32, %arg1: i32, %arg2: i32) -> (i32, i32, i32, i32) {
    %c0_i32 = arith.constant 0 : i32
    %c0_i32_0 = arith.constant 0 : i32
    return %arg0, %arg2, %arg1, %c0_i32 : i32, i32, i32, i32
  }
  func.func @transform_1(%arg0: i32, %arg1: i32, %arg2: i32) -> (i32, i32, i32, i32) {
    %c0_i32 = arith.constant 0 : i32
    %c0_i32_0 = arith.constant 0 : i32
    %c0_i32_1 = arith.constant 0 : i32
    return %arg0, %c0_i32, %arg1, %c0_i32_0 : i32, i32, i32, i32
  }
  func.func @transform_2(%arg0: i32, %arg1: i32, %arg2: i32) -> (i32, i32) {
    %c0_i32 = arith.constant 0 : i32
    %c0_i32_0 = arith.constant 0 : i32
    %c0_i32_1 = arith.constant 0 : i32
    return %c0_i32, %c0_i32_0 : i32, i32
  }
  func.func @transform_3(%arg0: i32, %arg1: i32, %arg2: i32) -> (i32, i32) {
    %c0_i32 = arith.constant 0 : i32
    %c0_i32_0 = arith.constant 0 : i32
    %c0_i32_1 = arith.constant 0 : i32
    return %c0_i32, %c0_i32_0 : i32, i32
  }
  func.func @transform_4(%arg0: i32, %arg1: i32, %arg2: i32) -> (i32, i32) {
    %c0_i32 = arith.constant 0 : i32
    %c0_i32_0 = arith.constant 0 : i32
    %c0_i32_1 = arith.constant 0 : i32
    return %c0_i32, %c0_i32_0 : i32, i32
  }
  func.func @transform_5(%arg0: i32, %arg1: i32, %arg2: i32) -> (i32, i32) {
    %c0_i32 = arith.constant 0 : i32
    %c0_i32_0 = arith.constant 0 : i32
    %c0_i32_1 = arith.constant 0 : i32
    return %c0_i32, %c0_i32_0 : i32, i32
  }
  func.func @transform_6(%arg0: i32, %arg1: i32, %arg2: i32) -> (i32, i32) {
    %c0_i32 = arith.constant 0 : i32
    %c0_i32_0 = arith.constant 0 : i32
    %c0_i32_1 = arith.constant 0 : i32
    return %c0_i32, %c0_i32_0 : i32, i32
  }
  func.func @transform_7(%arg0: i32, %arg1: i32, %arg2: i32) -> (i32, i32) {
    %c0_i32 = arith.constant 0 : i32
    %c0_i32_0 = arith.constant 0 : i32
    %c0_i32_1 = arith.constant 0 : i32
    return %c0_i32, %c0_i32_0 : i32, i32
  }
  func.func @transform_8(%arg0: i32, %arg1: i32, %arg2: i32) -> (i32, i32) {
    %c0_i32 = arith.constant 0 : i32
    %c0_i32_0 = arith.constant 0 : i32
    %c0_i32_1 = arith.constant 0 : i32
    return %c0_i32, %c0_i32_0 : i32, i32
  }
  func.func @transform_9(%arg0: i32, %arg1: i32, %arg2: i32) -> (i32, i32, i32, i32) {
    %c0_i32 = arith.constant 0 : i32
    %c0_i32_0 = arith.constant 0 : i32
    return %arg0, %arg2, %arg1, %c0_i32 : i32, i32, i32, i32
  }
}

</mosaic_0001>

<bundles_post_ra>
// kernel: feature_extraction_forward.10
= control target key start
LH: loop header
LB: loop body
LE: loop exit
PB: predicated region body
PF: predicated region fallthrough
CT: control target
= control target key end

     0   :  { %vm55_vm0 = vcmask 1042432   ;;  %vm30_vm1 = vcmask 23552   ;;  %vm172_vm2 = vcmask 261120   ;;  %s310_s1 = inlined_call_operand.vmem [shape: f32[3,32], index: 1, kind: input, shape index: {}]   ;;  %s311_s0 = inlined_call_operand.vmem [shape: f32[64,3], index: 0, kind: input, shape index: {}]   ;;  %s312_s2 = inlined_call_operand.vmem [shape: f32[1,32], index: 2, kind: input, shape index: {}]   ;;  %s313_s3 = inlined_call_operand.vmem [shape: f32[64,32], index: 3, kind: output, shape index: {}]  }
   0x1   :  { %v22_v0 = vld [vmem:[%s310_s1] sm:$0x7]  ;;  %v15_v3 = vld [vmem:[%s311_s0 + $0x8] sm:$0xff]  ;;  %v16_v5 = vld [vmem:[%s311_s0 + $0x10] sm:$0xff] }
   0x2   :  { %v14_v1 = vld [vmem:[%s311_s0] sm:$0xff]  ;;  %204 = vmatprep.subr.msk.mxu0 %vm55_vm0, %v22_v0  ;;  %218 = vmatprep.subr.msk.mxu1 %vm55_vm0, %v22_v0  ;;  %v19_v4 = vld [vmem:[%s311_s0 + $0x28] sm:$0xff]  ;;  %v20_v6 = vld [vmem:[%s311_s0 + $0x30] sm:$0xff] }
   0x3   :  { %v18_v2 = vld [vmem:[%s311_s0 + $0x20] sm:$0xff]  ;;  %205 = vmatpush3.msk.msra.mxu0 %vm55_vm0, %v22_v0  ;;  %219 = vmatpush3.msk.msra.mxu1 %vm55_vm0, %v22_v0  ;;  %v17_v7 = vld [vmem:[%s311_s0 + $0x18] sm:$0xff] }
   0x4   :  { %206 = vmatprep.mubr.msk.f32.mxu0 %vm30_vm1, %v14_v1  ;;  %212 = vmatprep.mubr.msk.f32.mxu1 %vm30_vm1, %v18_v2  ;;  %v21_v8 = vld [vmem:[%s311_s0 + $0x38] sm:$0xff]  ;;  %v185_v9 = vld [vmem:[%s312_s2] ss:$0 sm:$0xff] }
   0x5   :  { %207 = vmatmul.mubr.msk.f32.vlgmr.msra.gmra.mrb[0].mxu0 %vm30_vm1, %v15_v3  ;;  %213 = vmatmul.mubr.msk.f32.vlgmr.msra.gmra.mrb[0].mxu1 %vm30_vm1, %v19_v4 }
   0x6   :  { %209 = vmatprep.mubr.msk.f32.mxu0 %vm30_vm1, %v16_v5  ;;  %215 = vmatprep.mubr.msk.f32.mxu1 %vm30_vm1, %v20_v6 }
   0x9   :  { %210 = vmatmul.mubr.msk.f32.gmra.mrb[2].mxu0 %vm30_vm1, %v17_v7  ;;  %216 = vmatmul.mubr.msk.f32.gmra.mrb[2].mxu1 %vm30_vm1, %v21_v8 }
  0xd8   :  { %v208_v10 = vpop.f32.mrb[0].mxu0  ;;  %v214_v11 = vpop.f32.mrb[0].mxu1 }
  0xd9   :  { %v131_v12 = vadd.f32 %v208_v10, %v185_v9  ;;  %v151_v13 = vadd.f32 %v214_v11, %v185_v9  ;;  %v125_v14 = vpop.f32.mrb[1].mxu0  ;;  %v145_v15 = vpop.f32.mrb[1].mxu1 }
  0xda   :  { %v126_v16 = vadd.f32 %v185_v9, %v125_v14  ;;  %v146_v17 = vadd.f32 %v185_v9, %v145_v15 }
  0xdb   :  { %v165_v18 = vmax.f32 %v131_v12, 0.0  ;;  %v169_v19 = vmax.f32 %v151_v13, 0.0 }
  0xdc   :  { %v164_v20 = vmax.f32 %v126_v16, 0.0  ;;  %v168_v21 = vmax.f32 %v146_v17, 0.0  ;;  %v211_v22 = vpop.f32.mrb[2].mxu0  ;;  %v217_v23 = vpop.f32.mrb[2].mxu1 }
  0xdd   :  { %174 = vst.msk [vmem:[%s313_s3 + $0x8] sm:$0xff] %vm172_vm2, %v165_v18  ;;  %178 = vst.msk [vmem:[%s313_s3 + $0x28] sm:$0xff] %vm172_vm2, %v169_v19  ;;  %v141_v24 = vadd.f32 %v211_v22, %v185_v9  ;;  %v161_v25 = vadd.f32 %v217_v23, %v185_v9  ;;  %v135_v26 = vpop.f32.mrb[3].mxu0  ;;  %v155_v27 = vpop.f32.mrb[3].mxu1 }
  0xde   :  { %173 = vst.msk [vmem:[%s313_s3] sm:$0xff] %vm172_vm2, %v164_v20  ;;  %177 = vst.msk [vmem:[%s313_s3 + $0x20] sm:$0xff] %vm172_vm2, %v168_v21  ;;  %v136_v28 = vadd.f32 %v185_v9, %v135_v26  ;;  %v156_v29 = vadd.f32 %v185_v9, %v155_v27 }
  0xdf   :  { %v167_v30 = vmax.f32 %v141_v24, 0.0  ;;  %v171_v31 = vmax.f32 %v161_v25, 0.0 }
  0xe0   :  { %v166_v32 = vmax.f32 %v136_v28, 0.0  ;;  %v170_v33 = vmax.f32 %v156_v29, 0.0 }
  0xe1   :  { %176 = vst.msk [vmem:[%s313_s3 + $0x18] sm:$0xff] %vm172_vm2, %v167_v30  ;;  %180 = vst.msk [vmem:[%s313_s3 + $0x38] sm:$0xff] %vm172_vm2, %v171_v31 }
  0xe2   :  { %175 = vst.msk [vmem:[%s313_s3 + $0x10] sm:$0xff] %vm172_vm2, %v166_v32  ;;  %179 = vst.msk [vmem:[%s313_s3 + $0x30] sm:$0xff] %vm172_vm2, %v170_v33 }

// kernel: feature_extraction_forward.11
= control target key start
LH: loop header
LB: loop body
LE: loop exit
PB: predicated region body
PF: predicated region fallthrough
CT: control target
= control target key end

     0   :  { %s1607_s12 = smov 0   ;;  %s1609_s13 = smov 0   ;;  %s2669_s0 = inlined_call_operand.vmem [shape: f32[2,32,32], index: 0, kind: input, shape index: {}, may-alias: {0,1}]   ;;  %s2670_s1 = inlined_call_operand.vmem [shape: f32[2,32,32], index: 1, kind: input, shape index: {}, may-alias: {0,1}]   ;;  %s2671_s2 = inlined_call_operand.vmem [shape: f32[2,1,32], index: 2, kind: input, shape index: {}]   ;;  %s2672_s3 = inlined_call_operand.vmem [shape: s32[2,32,16], index: 3, kind: output, shape index: {}]  }
   0x1   :  { %s1611_s14 = smov 0  }
   0x2 LB: > { %s32_s15 = sadd.s32 1, %s1578_s13  ;;  %p1466_p0 = scmp.ge.s32.totalorder %s1582_s14, 1  ;;  %s1582_s14 = sphi %s1611_s14, %s13_s14   ;;  %s1578_s13 = sphi %s1609_s13, %s2769_s13   ;;  %s1574_s12 = sphi %s1607_s12, %s2768_s12  }
   0x3   : > { %p34_p1 = scmp.ge.s32.totalorder %s32_s15, 2  ;;  %p195_p2 = scmp.lt.s32.totalorder %s1582_s14, 3 }
   0x5   : > { %s2771_s15 = smov (%p34_p1, %s32_s15), 0  ;;  %p196_p3 = pnand %p1466_p0, %p195_p2 }
   0x7   : > { %199 = sbr.rel (%p196_p3) target bundleno = 5060 (0x13c4), region = 32 }
   0xe   : > { %p243_p4 = scmp.lt.s32.totalorder %s1574_s12, 1  ;;  %vm300_vm0 = vcmask 261120   ;;  %vm2673_vm2 = vcmask 130048   ;;  %v1584_v11 = vmov inf   ;;  %v424_v12 = vlaneseq  ;;  %s1585_s26 = smov 16  }
   0xf   : > { %vm1636_vm1 = vmpackc.low %vm300_vm0, %vm300_vm0  ;;  %283 = vst.msk [vmem:[#allocation2] sm:$0xff] %vm2673_vm2, %v1584_v11  ;;  %vm491_vm12 = vcmask 392192   ;;  %v1586_v51 = vmov 0.0  }
  0x10   : > { %s2773_s12 = smov (!%p243_p4, %s1574_s12), 1  ;;  %284 = vst.msk [vmem:[#allocation2 + $0x8] sm:$0xff] %vm2673_vm2, %v1584_v11  ;;  %285 = vst.msk [vmem:[#allocation2 + $0x10] sm:$0xff] %vm2673_vm2, %v1584_v11  ;;  %v425_v13 = vshrl.u32 %v424_v12, 7  ;;  %v1668_v14 = vand.u32 127, %v424_v12 }
  0x11   : > { %s1628_s16 = sshll.u32 %s2773_s12, 5  ;;  %286 = vst.msk [vmem:[#allocation2 + $0x18] sm:$0xff] %vm2673_vm2, %v1584_v11  ;;  %s267_s25 = scalar_lea.vmem %s2671_s2, %s2773_s12  ;;  %287 = vst.msk [vmem:[#allocation3] sm:$0xff] %vm2673_vm2, %v1586_v51 }
  0x12   : > { %s260_s19 = scalar_lea.vmem %s2670_s1, %s1628_s16  ;;  %s250_s22 = scalar_lea.vmem %s2669_s0, %s1628_s16  ;;  %v427_v15 = vadd.s32 16, %v425_v13  ;;  %v428_v16 = vadd.s32 24, %v425_v13  ;;  %vm440_vm3 = vcmp.eq.s32.totalorder %v425_v13, %v1668_v14  ;;  %vm444_vm4 = vcmp.ge.s32.totalorder %v1668_v14, 32  ;;  %v1481_v17 = vld [vmem:[%s267_s25] ss:$0 sm:$0xff]  ;;  %288 = vst.msk [vmem:[#allocation3 + $0x8] sm:$0xff] %vm2673_vm2, %v1586_v51 }
  0x13   : > { %v295_v1 = vld [vmem:[%s260_s19] sm:$0xff]  ;;  %v296_v2 = vld [vmem:[%s260_s19 + $0x8] sm:$0xff]  ;;  %v297_v3 = vld [vmem:[%s260_s19 + $0x10] sm:$0xff]  ;;  %v426_v20 = vadd.s32 8, %v425_v13  ;;  %289 = vst.msk [vmem:[#allocation3 + $0x10] sm:$0xff] %vm2673_vm2, %v1586_v51  ;;  %v482_v52 = vcvt.s32.f32 %v1668_v14  ;;  %s276_s29 = scalar_lea.vmem %s2672_s3, %s1628_s16 }
  0x14   : > { %v1509_v4 = vpack.c.bf16 %v296_v2, %v295_v1  ;;  %v298_v5 = vld [vmem:[%s260_s19 + $0x18] sm:$0xff]  ;;  %v291_v6 = vld [vmem:[%s250_s22] sm:$0xff]  ;;  %v293_v8 = vld [vmem:[%s250_s22 + $0x10] sm:$0xff]  ;;  %vm442_vm5 = vcmp.eq.s32.totalorder %v427_v15, %v1668_v14  ;;  %vm443_vm7 = vcmp.eq.s32.totalorder %v428_v16, %v1668_v14  ;;  %290 = vst.msk [vmem:[#allocation3 + $0x18] sm:$0xff] %vm2673_vm2, %v1586_v51 }
  0x15   : > { %v1515_v7 = vpack.c.bf16 %v298_v5, %v297_v3  ;;  %1503 = vmatprep.mubr.msk.f32.mxu0 %vm300_vm0, %v291_v6  ;;  %1506 = vmatprep.mubr.msk.f32.mxu1 %vm300_vm0, %v293_v8  ;;  %v292_v9 = vld [vmem:[%s250_s22 + $0x8] sm:$0xff]  ;;  %v294_v10 = vld [vmem:[%s250_s22 + $0x18] sm:$0xff]  ;;  %vm445_vm6 = vmor %vm440_vm3, %vm444_vm4  ;;  %vm441_vm9 = vcmp.eq.s32.totalorder %v426_v20, %v1668_v14 }
  0x16   : > { %1511 = vmatprep.subr.msk.bf16.mxu0 %vm1636_vm1, %v1509_v4  ;;  %1521 = vmatprep.subr.msk.bf16.mxu1 %vm1636_vm1, %v1509_v4  ;;  %vm447_vm8 = vmor %vm442_vm5, %vm444_vm4  ;;  %v453_v35 = vld [vmem:[#allocation2] sm:$0xff] }
  0x17   : > { %1514 = vmatpush3.bf16.xpose.msk.msra.mxu0 %vm1636_vm1, %v1509_v4  ;;  %1523 = vmatpush3.bf16.xpose.msk.msra.mxu1 %vm1636_vm1, %v1509_v4  ;;  %vm448_vm10 = vmor %vm443_vm7, %vm444_vm4  ;;  %v455_v36 = vld [vmem:[#allocation2 + $0x10] sm:$0xff]  ;;  %v454_v42 = vld [vmem:[#allocation2 + $0x8] sm:$0xff] }
  0x18   : > { %1517 = vmatprep.subr.msk.bf16.mxu0 %vm1636_vm1, %v1515_v7  ;;  %1522 = vmatprep.subr.msk.bf16.mxu1 %vm1636_vm1, %v1515_v7  ;;  %vm446_vm11 = vmor %vm441_vm9, %vm444_vm4  ;;  %v456_v43 = vld [vmem:[#allocation2 + $0x18] sm:$0xff]  ;;  %v478_v55 = vld [vmem:[#allocation3] sm:$0xff] }
  0x19   : > { %v479_v56 = vld [vmem:[#allocation3 + $0x8] sm:$0xff] }
  0x1a   : > { %v480_v61 = vld [vmem:[#allocation3 + $0x10] sm:$0xff] }
  0x1b   : > { %v481_v2 = vld [vmem:[#allocation3 + $0x18] sm:$0xff] }
  0x1f   : > { %1520 = vmatpush3.bf16.xpose.msk.msra.mxu0 %vm1636_vm1, %v1515_v7  ;;  %1524 = vmatpush3.bf16.xpose.msk.msra.mxu1 %vm1636_vm1, %v1515_v7 }
  0x26   : > { %1504 = vmatmul.mubr.msk.f32.vlgmr.msra.gmra.mrb[0].mxu0 %vm300_vm0, %v292_v9  ;;  %1507 = vmatmul.mubr.msk.f32.vlgmr.msra.gmra.mrb[0].mxu1 %vm300_vm0, %v294_v10 }
  0xf9   : > { %v1505_v18 = vpop.f32.mrb[0].mxu0  ;;  %v1508_v19 = vpop.f32.mrb[0].mxu1 }
  0xfa   : > { %v411_v21 = vmul.f32 2.0, %v1505_v18  ;;  %v391_v22 = vpop.f32.mrb[1].mxu0  ;;  %v413_v23 = vmul.f32 2.0, %v1508_v19  ;;  %v401_v24 = vpop.f32.mrb[1].mxu1 }
  0xfb   : > { %v410_v25 = vmul.f32 2.0, %v391_v22  ;;  %v412_v26 = vmul.f32 2.0, %v401_v24 }
  0xfc   : > { %v421_v27 = vsub.f32 %v1481_v17, %v411_v21  ;;  %v423_v28 = vsub.f32 %v1481_v17, %v413_v23 }
  0xfd   : > { %v420_v29 = vsub.f32 %v1481_v17, %v410_v25  ;;  %v422_v30 = vsub.f32 %v1481_v17, %v412_v26 }
  0xfe   : > { %v452_v33 = vsel %vm448_vm10, inf, %v423_v28  ;;  %v450_v34 = vsel %vm446_vm11, inf, %v421_v27 }
  0xff   : > { %v449_v31 = vsel %vm445_vm6, inf, %v420_v29  ;;  %v451_v32 = vsel %vm447_vm8, inf, %v422_v30 }
 0x100   : > { %461 = vrot.lane.b32.xlu0 %v449_v31, %s1585_s26  ;;  %465 = vrot.lane.b32.xlu1 %v451_v32, %s1585_s26 }
 0x104   : > { %463 = vrot.lane.b32.xlu0 %v450_v34, %s1585_s26  ;;  %467 = vrot.lane.b32.xlu1 %v452_v33, %s1585_s26 }
 0x172   : > { %v462_v37 = vpop.permute.xlu0 %461  ;;  %v466_v38 = vpop.permute.xlu1 %465 }
 0x173   : > { %v474_v39 = vsel %vm2673_vm2, %v453_v35, %v462_v37  ;;  %v1693_v40 = vsel %vm2673_vm2, %v455_v36, %v466_v38 }
 0x174   : > { %v492_v41 = vsel %vm491_vm12, %v474_v39, inf  ;;  %v498_v45 = vsel %vm491_vm12, %v1693_v40, inf }
 0x175   : > { %493 = vmin.xlane.f32.xlu0 %v492_v41 }
 0x176   : > { %v464_v44 = vpop.permute.xlu0 %463  ;;  %v468_v46 = vpop.permute.xlu1 %467 }
 0x177   : > { %v475_v47 = vsel %vm2673_vm2, %v454_v42, %v464_v44  ;;  %v1700_v48 = vsel %vm2673_vm2, %v456_v43, %v468_v46 }
 0x178   : > { %v495_v49 = vsel %vm491_vm12, %v475_v47, inf  ;;  %v501_v50 = vsel %vm491_vm12, %v1700_v48, inf }
 0x179   : > { %499 = vmin.xlane.f32.xlu0 %v498_v45  ;;  %496 = vmin.xlane.f32.xlu1 %v495_v49 }
 0x17d   : > { %502 = vmin.xlane.f32.xlu0 %v501_v50 }
 0x18a   : > { %484 = vrot.lane.b32.xlu1 %v482_v52, %s1585_s26 }
 0x202   : > { %v1711_v53 = vpop.xlane.xlu0 %493 }
 0x203   : > { %vm504_vm14 = vcmp.eq.f32.partialorder %v474_v39, %v1711_v53 }
 0x206   : > { %v1713_v54 = vpop.xlane.xlu1 %496  ;;  %v1715_v57 = vpop.xlane.xlu0 %499 }
 0x207   : > { %vm505_vm13 = vcmp.eq.f32.partialorder %v475_v47, %v1713_v54  ;;  %vm506_vm15 = vcmp.eq.f32.partialorder %v1693_v40, %v1715_v57 }
 0x20a   : > { %v485_v58 = vpop.permute.xlu1 %484  ;;  %v1735_v3 = vpop.xlane.xlu0 %502 }
 0x20b   : > { %v1718_v59 = vsel %vm2673_vm2, %v478_v55, %v485_v58  ;;  %v1721_v60 = vsel %vm2673_vm2, %v479_v56, %v485_v58  ;;  %v1733_v1 = vsel %vm2673_vm2, %v480_v61, %v485_v58  ;;  %v1745_v6 = vsel %vm2673_vm2, %v481_v2, %v485_v58 }
 0x20c   : > { %v509_v62 = vsel %vm505_vm13, %v1721_v60, 1e+30  ;;  %v508_v0 = vsel %vm504_vm14, %v1718_v59, 1e+30  ;;  %v510_v5 = vsel %vm506_vm15, %v1733_v1, 1e+30  ;;  %vm507_vm0 = vcmp.eq.f32.partialorder %v1700_v48, %v1735_v3 }
 0x20d   : > { %v515_v63 = vsel %vm491_vm12, %v509_v62, inf  ;;  %v512_v4 = vsel %vm491_vm12, %v508_v0, inf  ;;  %v518_v7 = vsel %vm491_vm12, %v510_v5, inf  ;;  %v511_v8 = vsel %vm507_vm0, %v1745_v6, 1e+30 }
 0x20e   : > { %516 = vmin.xlane.f32.xlu0 %v515_v63  ;;  %v521_v9 = vsel %vm491_vm12, %v511_v8, inf }
 0x212   : > { %513 = vmin.xlane.f32.xlu0 %v512_v4 }
 0x216   : > { %519 = vmin.xlane.f32.xlu0 %v518_v7 }
 0x21a   : > { %522 = vmin.xlane.f32.xlu0 %v521_v9 }
 0x29b   : > { %v1755_v10 = vpop.xlane.xlu0 %516 }
 0x29c   : > { %vm525_vm1 = vcmp.eq.f32.partialorder %v1721_v60, %v1755_v10 }
 0x29d   : > { %vm529_vm3 = vmand %vm505_vm13, %vm525_vm1 }
 0x29e   : > { %v533_v11 = vsel %vm529_vm3, inf, %v475_v47 }
 0x29f   : > { %v1761_v12 = vpop.xlane.xlu0 %513  ;;  %v539_v13 = vsel %vm491_vm12, %v533_v11, inf }
 0x2a0   : > { %vm524_vm4 = vcmp.eq.f32.partialorder %v1718_v59, %v1761_v12  ;;  %540 = vmin.xlane.f32.xlu0 %v539_v13 }
 0x2a1   : > { %vm528_vm5 = vmand %vm504_vm14, %vm524_vm4 }
 0x2a2   : > { %v532_v14 = vsel %vm528_vm5, inf, %v474_v39 }
 0x2a3   : > { %v1768_v15 = vpop.xlane.xlu0 %519  ;;  %v536_v16 = vsel %vm491_vm12, %v532_v14, inf }
 0x2a4   : > { %vm526_vm6 = vcmp.eq.f32.partialorder %v1733_v1, %v1768_v15  ;;  %537 = vmin.xlane.f32.xlu1 %v536_v16 }
 0x2a5   : > { %vm530_vm7 = vmand %vm506_vm15, %vm526_vm6 }
 0x2a6   : > { %v534_v17 = vsel %vm530_vm7, inf, %v1693_v40 }
 0x2a7   : > { %v1777_v18 = vpop.xlane.xlu0 %522  ;;  %v542_v19 = vsel %vm491_vm12, %v534_v17, inf }
 0x2a8   : > { %vm527_vm8 = vcmp.eq.f32.partialorder %v1745_v6, %v1777_v18  ;;  %543 = vmin.xlane.f32.xlu0 %v542_v19 }
 0x2a9   : > { %vm531_vm9 = vmand %vm507_vm0, %vm527_vm8 }
 0x2aa   : > { %v535_v20 = vsel %vm531_vm9, inf, %v1700_v48 }
 0x2ab   : > { %v545_v21 = vsel %vm491_vm12, %v535_v20, inf }
 0x2ac   : > { %546 = vmin.xlane.f32.xlu0 %v545_v21 }
 0x32d   : > { %v1787_v22 = vpop.xlane.xlu0 %540 }
 0x32e   : > { %vm549_vm10 = vcmp.eq.f32.partialorder %v533_v11, %v1787_v22 }
 0x32f   : > { %v553_v23 = vsel %vm549_vm10, %v1721_v60, 1e+30 }
 0x330   : > { %v559_v24 = vsel %vm491_vm12, %v553_v23, inf }
 0x331   : > { %v1794_v25 = vpop.xlane.xlu1 %537  ;;  %560 = vmin.xlane.f32.xlu0 %v559_v24 }
 0x332   : > { %vm548_vm11 = vcmp.eq.f32.partialorder %v532_v14, %v1794_v25 }
 0x333   : > { %v552_v26 = vsel %vm548_vm11, %v1718_v59, 1e+30 }
 0x334   : > { %v556_v27 = vsel %vm491_vm12, %v552_v26, inf }
 0x335   : > { %557 = vmin.xlane.f32.xlu0 %v556_v27  ;;  %v1801_v28 = vpop.xlane.xlu0 %543 }
 0x336   : > { %vm550_vm13 = vcmp.eq.f32.partialorder %v534_v17, %v1801_v28 }
 0x337   : > { %v554_v29 = vsel %vm550_vm13, %v1733_v1, 1e+30 }
 0x338   : > { %v562_v30 = vsel %vm491_vm12, %v554_v29, inf }
 0x339   : > { %563 = vmin.xlane.f32.xlu0 %v562_v30  ;;  %v1808_v31 = vpop.xlane.xlu0 %546 }
 0x33a   : > { %vm551_vm14 = vcmp.eq.f32.partialorder %v535_v20, %v1808_v31 }
 0x33b   : > { %v555_v32 = vsel %vm551_vm14, %v1745_v6, 1e+30 }
 0x33c   : > { %v565_v33 = vsel %vm491_vm12, %v555_v32, inf }
 0x33d   : > { %566 = vmin.xlane.f32.xlu0 %v565_v33 }
 0x3be   : > { %v1815_v34 = vpop.xlane.xlu0 %560 }
 0x3bf   : > { %vm569_vm15 = vcmp.eq.f32.partialorder %v1721_v60, %v1815_v34 }
 0x3c0   : > { %vm573_vm0 = vmand %vm549_vm10, %vm569_vm15 }
 0x3c1   : > { %v577_v35 = vsel %vm573_vm0, inf, %v533_v11 }
 0x3c2   : > { %v1821_v36 = vpop.xlane.xlu0 %557  ;;  %v583_v37 = vsel %vm491_vm12, %v577_v35, inf }
 0x3c3   : > { %vm568_vm1 = vcmp.eq.f32.partialorder %v1718_v59, %v1821_v36  ;;  %584 = vmin.xlane.f32.xlu0 %v583_v37 }
 0x3c4   : > { %vm572_vm3 = vmand %vm548_vm11, %vm568_vm1 }
 0x3c5   : > { %v576_v38 = vsel %vm572_vm3, inf, %v532_v14 }
 0x3c6   : > { %v1828_v39 = vpop.xlane.xlu0 %563  ;;  %v580_v40 = vsel %vm491_vm12, %v576_v38, inf }
 0x3c7   : > { %vm570_vm4 = vcmp.eq.f32.partialorder %v1733_v1, %v1828_v39  ;;  %581 = vmin.xlane.f32.xlu0 %v580_v40 }
 0x3c8   : > { %vm574_vm5 = vmand %vm550_vm13, %vm570_vm4 }
 0x3c9   : > { %v578_v41 = vsel %vm574_vm5, inf, %v534_v17 }
 0x3ca   : > { %v1835_v42 = vpop.xlane.xlu0 %566  ;;  %v586_v43 = vsel %vm491_vm12, %v578_v41, inf }
 0x3cb   : > { %vm571_vm6 = vcmp.eq.f32.partialorder %v1745_v6, %v1835_v42  ;;  %587 = vmin.xlane.f32.xlu1 %v586_v43 }
 0x3cc   : > { %vm575_vm7 = vmand %vm551_vm14, %vm571_vm6 }
 0x3cd   : > { %v579_v44 = vsel %vm575_vm7, inf, %v535_v20 }
 0x3ce   : > { %v589_v45 = vsel %vm491_vm12, %v579_v44, inf }
 0x3cf   : > { %590 = vmin.xlane.f32.xlu0 %v589_v45 }
 0x450   : > { %v1843_v46 = vpop.xlane.xlu0 %584 }
 0x451   : > { %vm593_vm8 = vcmp.eq.f32.partialorder %v577_v35, %v1843_v46 }
 0x452   : > { %v597_v47 = vsel %vm593_vm8, %v1721_v60, 1e+30 }
 0x453   : > { %v603_v48 = vsel %vm491_vm12, %v597_v47, inf }
 0x454   : > { %604 = vmin.xlane.f32.xlu0 %v603_v48  ;;  %v1850_v49 = vpop.xlane.xlu0 %581 }
 0x455   : > { %vm592_vm9 = vcmp.eq.f32.partialorder %v576_v38, %v1850_v49 }
 0x456   : > { %v596_v50 = vsel %vm592_vm9, %v1718_v59, 1e+30 }
 0x457   : > { %v600_v51 = vsel %vm491_vm12, %v596_v50, inf }
 0x458   : > { %v1857_v52 = vpop.xlane.xlu1 %587  ;;  %601 = vmin.xlane.f32.xlu1 %v600_v51 }
 0x459   : > { %vm594_vm10 = vcmp.eq.f32.partialorder %v578_v41, %v1857_v52 }
 0x45a   : > { %v598_v55 = vsel %vm594_vm10, %v1733_v1, 1e+30 }
 0x45b   : > { %v606_v56 = vsel %vm491_vm12, %v598_v55, inf }
 0x45c   : > { %607 = vmin.xlane.f32.xlu1 %v606_v56  ;;  %v1864_v58 = vpop.xlane.xlu0 %590 }
 0x45d   : > { %vm595_vm11 = vcmp.eq.f32.partialorder %v579_v44, %v1864_v58 }
 0x45e   : > { %v599_v61 = vsel %vm595_vm11, %v1745_v6, 1e+30 }
 0x45f   : > { %v609_v62 = vsel %vm491_vm12, %v599_v61, inf }
 0x460   : > { %610 = vmin.xlane.f32.xlu0 %v609_v62 }
 0x4e1   : > { %v1871_v63 = vpop.xlane.xlu0 %604 }
 0x4e2   : > { %vm613_vm13 = vcmp.eq.f32.partialorder %v1721_v60, %v1871_v63 }
 0x4e3   : > { %vm617_vm14 = vmand %vm593_vm8, %vm613_vm13 }
 0x4e4   : > { %v621_v0 = vsel %vm617_vm14, inf, %v577_v35 }
 0x4e5   : > { %v1877_v2 = vpop.xlane.xlu1 %601  ;;  %v627_v4 = vsel %vm491_vm12, %v621_v0, inf }
 0x4e6   : > { %vm612_vm15 = vcmp.eq.f32.partialorder %v1718_v59, %v1877_v2  ;;  %628 = vmin.xlane.f32.xlu0 %v627_v4 }
 0x4e7   : > { %vm616_vm0 = vmand %vm592_vm9, %vm612_vm15 }
 0x4e8   : > { %v620_v5 = vsel %vm616_vm0, inf, %v576_v38 }
 0x4e9   : > { %v1884_v7 = vpop.xlane.xlu1 %607  ;;  %v624_v8 = vsel %vm491_vm12, %v620_v5, inf }
 0x4ea   : > { %vm614_vm1 = vcmp.eq.f32.partialorder %v1733_v1, %v1884_v7  ;;  %625 = vmin.xlane.f32.xlu1 %v624_v8 }
 0x4eb   : > { %vm618_vm3 = vmand %vm594_vm10, %vm614_vm1 }
 0x4ec   : > { %v622_v9 = vsel %vm618_vm3, inf, %v578_v41 }
 0x4ed   : > { %v1891_v11 = vpop.xlane.xlu0 %610  ;;  %v630_v13 = vsel %vm491_vm12, %v622_v9, inf }
 0x4ee   : > { %vm615_vm4 = vcmp.eq.f32.partialorder %v1745_v6, %v1891_v11  ;;  %631 = vmin.xlane.f32.xlu1 %v630_v13 }
 0x4ef   : > { %vm619_vm5 = vmand %vm595_vm11, %vm615_vm4 }
 0x4f0   : > { %v623_v14 = vsel %vm619_vm5, inf, %v579_v44 }
 0x4f1   : > { %v633_v16 = vsel %vm491_vm12, %v623_v14, inf }
 0x4f2   : > { %634 = vmin.xlane.f32.xlu0 %v633_v16 }
 0x573   : > { %v1899_v17 = vpop.xlane.xlu0 %628 }
 0x574   : > { %vm637_vm6 = vcmp.eq.f32.partialorder %v621_v0, %v1899_v17 }
 0x575   : > { %v641_v19 = vsel %vm637_vm6, %v1721_v60, 1e+30 }
 0x576   : > { %v647_v20 = vsel %vm491_vm12, %v641_v19, inf }
 0x577   : > { %v1906_v21 = vpop.xlane.xlu1 %625  ;;  %648 = vmin.xlane.f32.xlu0 %v647_v20 }
 0x578   : > { %vm636_vm7 = vcmp.eq.f32.partialorder %v620_v5, %v1906_v21 }
 0x579   : > { %v640_v23 = vsel %vm636_vm7, %v1718_v59, 1e+30 }
 0x57a   : > { %v644_v24 = vsel %vm491_vm12, %v640_v23, inf }
 0x57b   : > { %645 = vmin.xlane.f32.xlu1 %v644_v24  ;;  %v1913_v26 = vpop.xlane.xlu1 %631 }
 0x57c   : > { %vm638_vm8 = vcmp.eq.f32.partialorder %v622_v9, %v1913_v26 }
 0x57d   : > { %v642_v27 = vsel %vm638_vm8, %v1733_v1, 1e+30 }
 0x57e   : > { %v650_v29 = vsel %vm491_vm12, %v642_v27, inf }
 0x57f   : > { %651 = vmin.xlane.f32.xlu1 %v650_v29  ;;  %v1920_v30 = vpop.xlane.xlu0 %634 }
 0x580   : > { %vm639_vm9 = vcmp.eq.f32.partialorder %v623_v14, %v1920_v30 }
 0x581   : > { %v643_v32 = vsel %vm639_vm9, %v1745_v6, 1e+30 }
 0x582   : > { %v653_v33 = vsel %vm491_vm12, %v643_v32, inf }
 0x583   : > { %654 = vmin.xlane.f32.xlu0 %v653_v33 }
 0x604   : > { %v1927_v35 = vpop.xlane.xlu0 %648 }
 0x605   : > { %vm657_vm10 = vcmp.eq.f32.partialorder %v1721_v60, %v1927_v35 }
 0x606   : > { %vm661_vm11 = vmand %vm637_vm6, %vm657_vm10 }
 0x607   : > { %v665_v37 = vsel %vm661_vm11, inf, %v621_v0 }
 0x608   : > { %v1933_v38 = vpop.xlane.xlu1 %645  ;;  %v671_v40 = vsel %vm491_vm12, %v665_v37, inf }
 0x609   : > { %vm656_vm13 = vcmp.eq.f32.partialorder %v1718_v59, %v1933_v38  ;;  %672 = vmin.xlane.f32.xlu0 %v671_v40 }
 0x60a   : > { %vm660_vm14 = vmand %vm636_vm7, %vm656_vm13 }
 0x60b   : > { %v664_v41 = vsel %vm660_vm14, inf, %v620_v5 }
 0x60c   : > { %v1940_v43 = vpop.xlane.xlu1 %651  ;;  %v668_v44 = vsel %vm491_vm12, %v664_v41, inf }
 0x60d   : > { %vm658_vm15 = vcmp.eq.f32.partialorder %v1733_v1, %v1940_v43  ;;  %669 = vmin.xlane.f32.xlu1 %v668_v44 }
 0x60e   : > { %vm662_vm0 = vmand %vm638_vm8, %vm658_vm15 }
 0x60f   : > { %v666_v45 = vsel %vm662_vm0, inf, %v622_v9 }
 0x610   : > { %v1947_v47 = vpop.xlane.xlu0 %654  ;;  %v674_v48 = vsel %vm491_vm12, %v666_v45, inf }
 0x611   : > { %vm659_vm1 = vcmp.eq.f32.partialorder %v1745_v6, %v1947_v47  ;;  %675 = vmin.xlane.f32.xlu1 %v674_v48 }
 0x612   : > { %vm663_vm3 = vmand %vm639_vm9, %vm659_vm1  ;;  %vm1184_vm1 = vcmask 7168  }
 0x613   : > { %v667_v50 = vsel %vm663_vm3, inf, %v623_v14  ;;  %vm1189_vm3 = vcmask 15360  }
 0x614   : > { %v677_v51 = vsel %vm491_vm12, %v667_v50, inf }
 0x615   : > { %678 = vmin.xlane.f32.xlu0 %v677_v51 }
 0x696   : > { %v673_v55 = vpop.xlane.xlu0 %672 }
 0x697   : > { %vm681_vm4 = vcmp.eq.f32.partialorder %v665_v37, %v673_v55 }
 0x698   : > { %v685_v56 = vsel %vm681_vm4, %v1721_v60, 1e+30 }
 0x699   : > { %v691_v61 = vsel %vm491_vm12, %v685_v56, inf }
 0x69a   : > { %v670_v62 = vpop.xlane.xlu1 %669  ;;  %692 = vmin.xlane.f32.xlu0 %v691_v61  ;;  %v1185_v61 = vsel %vm1184_vm1, %v1711_v53, %v1794_v25 }
 0x69b   : > { %vm680_vm5 = vcmp.eq.f32.partialorder %v664_v41, %v670_v62 }
 0x69c   : > { %v684_v0 = vsel %vm680_vm5, %v1718_v59, 1e+30 }
 0x69d   : > { %v688_v4 = vsel %vm491_vm12, %v684_v0, inf }
 0x69e   : > { %689 = vmin.xlane.f32.xlu1 %v688_v4  ;;  %v1961_v5 = vpop.xlane.xlu1 %675 }
 0x69f   : > { %vm682_vm6 = vcmp.eq.f32.partialorder %v666_v45, %v1961_v5 }
 0x6a0   : > { %v686_v8 = vsel %vm682_vm6, %v1733_v1, 1e+30 }
 0x6a1   : > { %v694_v9 = vsel %vm491_vm12, %v686_v8, inf }
 0x6a2   : > { %695 = vmin.xlane.f32.xlu1 %v694_v9  ;;  %v1968_v13 = vpop.xlane.xlu0 %678 }
 0x6a3   : > { %vm683_vm7 = vcmp.eq.f32.partialorder %v667_v50, %v1968_v13 }
 0x6a4   : > { %v687_v14 = vsel %vm683_vm7, %v1745_v6, 1e+30 }
 0x6a5   : > { %v697_v16 = vsel %vm491_vm12, %v687_v14, inf }
 0x6a6   : > { %698 = vmin.xlane.f32.xlu0 %v697_v16 }
 0x727   : > { %v1975_v19 = vpop.xlane.xlu0 %692 }
 0x728   : > { %vm701_vm8 = vcmp.eq.f32.partialorder %v1721_v60, %v1975_v19 }
 0x729   : > { %vm705_vm9 = vmand %vm681_vm4, %vm701_vm8  ;;  %vm1194_vm4 = vcmask 23552  }
 0x72a   : > { %v1980_v20 = vsel %vm705_vm9, inf, %v665_v37 }
 0x72b   : > { %v1982_v23 = vpop.xlane.xlu1 %689  ;;  %v715_v24 = vsel %vm491_vm12, %v1980_v20, inf }
 0x72c   : > { %vm700_vm10 = vcmp.eq.f32.partialorder %v1718_v59, %v1982_v23  ;;  %716 = vmin.xlane.f32.xlu0 %v715_v24  ;;  %v1264_v24 = vsel %vm1184_vm1, %v1755_v10, %v1815_v34 }
 0x72d   : > { %vm704_vm11 = vmand %vm680_vm5, %vm700_vm10  ;;  %vm1199_vm5 = vcmask 31744  }
 0x72e   : > { %v1989_v27 = vsel %vm704_vm11, inf, %v664_v41 }
 0x72f   : > { %v1991_v29 = vpop.xlane.xlu1 %695  ;;  %v712_v32 = vsel %vm491_vm12, %v1989_v27, inf }
 0x730   : > { %vm702_vm13 = vcmp.eq.f32.partialorder %v1733_v1, %v1991_v29  ;;  %713 = vmin.xlane.f32.xlu1 %v712_v32  ;;  %v1268_v32 = vsel %vm1189_vm3, %v1264_v24, %v1871_v63 }
 0x731   : > { %vm706_vm14 = vmand %vm682_vm6, %vm702_vm13  ;;  %vm1204_vm6 = vcmask 39936  }
 0x732   : > { %v1999_v33 = vsel %vm706_vm14, inf, %v666_v45  ;;  %v1186_v45 = vsel %vm1184_vm1, %v1713_v54, %v1787_v22  ;;  %v1190_v54 = vsel %vm1189_vm3, %v1185_v61, %v1850_v49 }
 0x733   : > { %v2001_v37 = vpop.xlane.xlu0 %698  ;;  %v718_v40 = vsel %vm491_vm12, %v1999_v33, inf  ;;  %v1191_v48 = vsel %vm1189_vm3, %v1186_v45, %v1843_v46  ;;  %v1195_v46 = vsel %vm1194_vm4, %v1190_v54, %v1906_v21 }
 0x734   : > { %2699 = vst [vmem:[#allocation4_spill] sm:$0xff] %v2001_v37  ;;  %vm703_vm15 = vcmp.eq.f32.partialorder %v1745_v6, %v2001_v37  ;;  %719 = vmin.xlane.f32.xlu1 %v718_v40  ;;  %v1272_v40 = vsel %vm1194_vm4, %v1268_v32, %v1927_v35 }
 0x735   : > { %vm707_vm0 = vmand %vm683_vm7, %vm703_vm15 }
 0x736   : > { %v2009_v41 = vsel %vm707_vm0, inf, %v667_v50  ;;  %v1196_v50 = vsel %vm1194_vm4, %v1191_v48, %v1899_v17  ;;  %v1263_v48 = vsel %vm1184_vm1, %v1761_v12, %v1821_v36 }
 0x737   : > { %v721_v44 = vsel %vm491_vm12, %v2009_v41, inf  ;;  %v1201_v51 = vsel %vm1199_vm5, %v1196_v50, %v673_v55  ;;  %v1200_v55 = vsel %vm1199_vm5, %v1195_v46, %v670_v62  ;;  %v1267_v10 = vsel %vm1189_vm3, %v1263_v48, %v1877_v2 }
 0x738   : > { %722 = vmin.xlane.f32.xlu0 %v721_v44  ;;  %v1276_v44 = vsel %vm1199_vm5, %v1272_v40, %v1975_v19  ;;  %v1271_v34 = vsel %vm1194_vm4, %v1267_v10, %v1933_v38 }
 0x739   : > { %v1275_v35 = vsel %vm1199_vm5, %v1271_v34, %v1982_v23 }
 0x7b9   : > { %v717_v56 = vpop.xlane.xlu0 %716 }
 0x7ba   : > { %vm725_vm7 = vcmp.eq.f32.partialorder %v1980_v20, %v717_v56  ;;  %v1206_v0 = vsel %vm1204_vm6, %v1201_v51, %v717_v56 }
 0x7bb   : > { %v729_v22 = vsel %vm725_vm7, %v1721_v60, 1e+30 }
 0x7bc   : > { %v735_v17 = vsel %vm491_vm12, %v729_v22, inf }
 0x7bd   : > { %v714_v4 = vpop.xlane.xlu1 %713  ;;  %736 = vmin.xlane.f32.xlu0 %v735_v17 }
 0x7be   : > { %vm724_vm8 = vcmp.eq.f32.partialorder %v1989_v27, %v714_v4  ;;  %v1205_v53 = vsel %vm1204_vm6, %v1200_v55, %v714_v4 }
 0x7bf   : > { %v728_v25 = vsel %vm724_vm8, %v1718_v59, 1e+30 }
 0x7c0   : > { %v732_v49 = vsel %vm491_vm12, %v728_v25, inf }
 0x7c1   : > { %733 = vmin.xlane.f32.xlu1 %v732_v49  ;;  %v2041_v8 = vpop.xlane.xlu1 %719 }
 0x7c2   : > { %vm726_vm9 = vcmp.eq.f32.partialorder %v1999_v33, %v2041_v8 }
 0x7c3   : > { %v730_v21 = vsel %vm726_vm9, %v1733_v1, 1e+30 }
 0x7c4   : > { %v738_v62 = vsel %vm491_vm12, %v730_v21, inf }
 0x7c5   : > { %739 = vmin.xlane.f32.xlu1 %v738_v62  ;;  %v2050_v9 = vpop.xlane.xlu0 %722 }
 0x7c6   : > { %vm727_vm10 = vcmp.eq.f32.partialorder %v2009_v41, %v2050_v9 }
 0x7c7   : > { %v731_v14 = vsel %vm727_vm10, %v1745_v6, 1e+30 }
 0x7c8   : > { %v741_v16 = vsel %vm491_vm12, %v731_v14, inf }
 0x7c9   : > { %742 = vmin.xlane.f32.xlu0 %v741_v16 }
 0x84a   : > { %v737_v45 = vpop.xlane.xlu0 %736 }
 0x84b   : > { %vm745_vm11 = vcmp.eq.f32.partialorder %v1721_v60, %v737_v45  ;;  %v1280_v50 = vsel %vm1204_vm6, %v1276_v44, %v737_v45 }
 0x84c   : > { %vm749_vm13 = vmand %vm725_vm7, %vm745_vm11 }
 0x84d   : > { %v753_v63 = vsel %vm749_vm13, inf, %v1980_v20 }
 0x84e   : > { %v734_v19 = vpop.xlane.xlu1 %733  ;;  %v759_v12 = vsel %vm491_vm12, %v753_v63, inf }
 0x84f   : > { %vm744_vm14 = vcmp.eq.f32.partialorder %v1718_v59, %v734_v19  ;;  %v1279_v36 = vsel %vm1204_vm6, %v1275_v35, %v734_v19  ;;  %760 = vmin.xlane.f32.xlu0 %v759_v12 }
 0x850   : > { %vm748_vm15 = vmand %vm724_vm8, %vm744_vm14 }
 0x851   : > { %v752_v2 = vsel %vm748_vm15, inf, %v1989_v27 }
 0x852   : > { %v2088_v51 = vpop.xlane.xlu1 %739  ;;  %v756_v38 = vsel %vm491_vm12, %v752_v2, inf }
 0x853   : > { %vm746_vm0 = vcmp.eq.f32.partialorder %v1733_v1, %v2088_v51  ;;  %757 = vmin.xlane.f32.xlu1 %v756_v38 }
 0x854   : > { %vm750_vm7 = vmand %vm726_vm9, %vm746_vm0  ;;  %vm2674_vm9 = vcmask 48128  }
 0x855   : > { %v754_v20 = vsel %vm750_vm7, inf, %v1999_v33 }
 0x856   : > { %v2097_v23 = vpop.xlane.xlu0 %742  ;;  %v762_v56 = vsel %vm491_vm12, %v754_v20, inf }
 0x857   : > { %2700 = vst [vmem:[#allocation5_spill] sm:$0xff] %v2097_v23  ;;  %vm747_vm8 = vcmp.eq.f32.partialorder %v1745_v6, %v2097_v23  ;;  %763 = vmin.xlane.f32.xlu1 %v762_v56 }
 0x858   : > { %vm751_vm11 = vmand %vm727_vm10, %vm747_vm8 }
 0x859   : > { %v755_v27 = vsel %vm751_vm11, inf, %v2009_v41 }
 0x85a   : > { %v765_v61 = vsel %vm491_vm12, %v755_v27, inf }
 0x85b   : > { %766 = vmin.xlane.f32.xlu0 %v765_v61 }
 0x8dc   : > { %v761_v54 = vpop.xlane.xlu0 %760 }
 0x8dd   : > { %vm769_vm13 = vcmp.eq.f32.partialorder %v753_v63, %v761_v54  ;;  %v1211_v33 = vsel %vm2674_vm9, %v1206_v0, %v761_v54 }
 0x8de   : > { %v773_v22 = vsel %vm769_vm13, %v1721_v60, 1e+30 }
 0x8df   : > { %v779_v46 = vsel %vm491_vm12, %v773_v22, inf }
 0x8e0   : > { %v758_v17 = vpop.xlane.xlu1 %757  ;;  %780 = vmin.xlane.f32.xlu0 %v779_v46 }
 0x8e1   : > { %vm768_vm14 = vcmp.eq.f32.partialorder %v752_v2, %v758_v17  ;;  %v1210_v55 = vsel %vm2674_vm9, %v1205_v53, %v758_v17 }
 0x8e2   : > { %v772_v41 = vsel %vm768_vm14, %v1718_v59, 1e+30 }
 0x8e3   : > { %v776_v4 = vsel %vm491_vm12, %v772_v41, inf }
 0x8e4   : > { %777 = vmin.xlane.f32.xlu1 %v776_v4  ;;  %v2115_v25 = vpop.xlane.xlu1 %763 }
 0x8e5   : > { %vm770_vm10 = vcmp.eq.f32.partialorder %v754_v20, %v2115_v25 }
 0x8e6   : > { %v774_v0 = vsel %vm770_vm10, %v1733_v1, 1e+30 }
 0x8e7   : > { %v782_v49 = vsel %vm491_vm12, %v774_v0, inf }
 0x8e8   : > { %783 = vmin.xlane.f32.xlu1 %v782_v49  ;;  %v2122_v21 = vpop.xlane.xlu0 %766 }
 0x8e9   : > { %vm771_vm15 = vcmp.eq.f32.partialorder %v755_v27, %v2122_v21 }
 0x8ea   : > { %v775_v53 = vsel %vm771_vm15, %v1745_v6, 1e+30 }
 0x8eb   : > { %v785_v62 = vsel %vm491_vm12, %v775_v53, inf }
 0x8ec   : > { %786 = vmin.xlane.f32.xlu0 %v785_v62 }
 0x96d   : > { %v781_v14 = vpop.xlane.xlu0 %780 }
 0x96e   : > { %vm789_vm0 = vcmp.eq.f32.partialorder %v1721_v60, %v781_v14  ;;  %v1284_v16 = vsel %vm2674_vm9, %v1280_v50, %v781_v14 }
 0x96f   : > { %vm793_vm7 = vmand %vm769_vm13, %vm789_vm0 }
 0x970   : > { %v797_v24 = vsel %vm793_vm7, inf, %v753_v63  ;;  %vm2675_vm7 = vcmask 56320  }
 0x971   : > { %v778_v32 = vpop.xlane.xlu1 %777  ;;  %v803_v40 = vsel %vm491_vm12, %v797_v24, inf }
 0x972   : > { %vm788_vm8 = vcmp.eq.f32.partialorder %v1718_v59, %v778_v32  ;;  %v1283_v44 = vsel %vm2674_vm9, %v1279_v36, %v778_v32  ;;  %804 = vmin.xlane.f32.xlu0 %v803_v40 }
 0x973   : > { %vm792_vm11 = vmand %vm768_vm14, %vm788_vm8 }
 0x974   : > { %v796_v45 = vsel %vm792_vm11, inf, %v752_v2 }
 0x975   : > { %v2136_v48 = vpop.xlane.xlu1 %783  ;;  %v800_v10 = vsel %vm491_vm12, %v796_v45, inf }
 0x976   : > { %vm790_vm2 = vcmp.eq.f32.partialorder %v1733_v1, %v2136_v48  ;;  %801 = vmin.xlane.f32.xlu1 %v800_v10 }
 0x977   : > { %vm794_vm13 = vmand %vm770_vm10, %vm790_vm2 }
 0x978   : > { %v798_v50 = vsel %vm794_vm13, inf, %v754_v20 }
 0x979   : > { %v2143_v34 = vpop.xlane.xlu0 %786  ;;  %v806_v63 = vsel %vm491_vm12, %v798_v50, inf }
 0x97a   : > { %2701 = vst [vmem:[#allocation6_spill] sm:$0xff] %v2143_v34  ;;  %vm791_vm14 = vcmp.eq.f32.partialorder %v1745_v6, %v2143_v34  ;;  %807 = vmin.xlane.f32.xlu1 %v806_v63 }
 0x97b   : > { %vm795_vm0 = vmand %vm771_vm15, %vm791_vm14 }
 0x97c   : > { %v799_v35 = vsel %vm795_vm0, inf, %v755_v27 }
 0x97d   : > { %v809_v19 = vsel %vm491_vm12, %v799_v35, inf }
 0x97e   : > { %810 = vmin.xlane.f32.xlu0 %v809_v19 }
 0x9ff   : > { %v805_v12 = vpop.xlane.xlu0 %804 }
 0xa00   : > { %vm813_vm8 = vcmp.eq.f32.partialorder %v797_v24, %v805_v12  ;;  %v1216_v36 = vsel %vm2675_vm7, %v1211_v33, %v805_v12 }
 0xa01   : > { %v817_v2 = vsel %vm813_vm8, %v1721_v60, 1e+30 }
 0xa02   : > { %v823_v38 = vsel %vm491_vm12, %v817_v2, inf }
 0xa03   : > { %v802_v20 = vpop.xlane.xlu1 %801  ;;  %824 = vmin.xlane.f32.xlu0 %v823_v38 }
 0xa04   : > { %vm812_vm2 = vcmp.eq.f32.partialorder %v796_v45, %v802_v20  ;;  %v1215_v56 = vsel %vm2675_vm7, %v1210_v55, %v802_v20 }
 0xa05   : > { %v816_v27 = vsel %vm812_vm2, %v1718_v59, 1e+30 }
 0xa06   : > { %v820_v61 = vsel %vm491_vm12, %v816_v27, inf }
 0xa07   : > { %821 = vmin.xlane.f32.xlu1 %v820_v61  ;;  %v2159_v54 = vpop.xlane.xlu1 %807 }
 0xa08   : > { %vm814_vm10 = vcmp.eq.f32.partialorder %v798_v50, %v2159_v54 }
 0xa09   : > { %v818_v33 = vsel %vm814_vm10, %v1733_v1, 1e+30 }
 0xa0a   : > { %v826_v22 = vsel %vm491_vm12, %v818_v33, inf }
 0xa0b   : > { %827 = vmin.xlane.f32.xlu1 %v826_v22  ;;  %v2166_v46 = vpop.xlane.xlu0 %810 }
 0xa0c   : > { %vm815_vm15 = vcmp.eq.f32.partialorder %v799_v35, %v2166_v46 }
 0xa0d   : > { %v819_v17 = vsel %vm815_vm15, %v1745_v6, 1e+30 }
 0xa0e   : > { %v829_v55 = vsel %vm491_vm12, %v819_v17, inf }
 0xa0f   : > { %830 = vmin.xlane.f32.xlu0 %v829_v55 }
 0xa90   : > { %v825_v41 = vpop.xlane.xlu0 %824 }
 0xa91   : > { %vm833_vm11 = vcmp.eq.f32.partialorder %v1721_v60, %v825_v41  ;;  %v1288_v4 = vsel %vm2675_vm7, %v1284_v16, %v825_v41 }
 0xa92   : > { %vm837_vm13 = vmand %vm813_vm8, %vm833_vm11 }
 0xa93   : > { %v841_v0 = vsel %vm837_vm13, inf, %v797_v24  ;;  %vm2676_vm13 = vcmask 64512  }
 0xa94   : > { %v822_v49 = vpop.xlane.xlu1 %821  ;;  %v847_v53 = vsel %vm491_vm12, %v841_v0, inf }
 0xa95   : > { %vm832_vm14 = vcmp.eq.f32.partialorder %v1718_v59, %v822_v49  ;;  %v1287_v62 = vsel %vm2675_vm7, %v1283_v44, %v822_v49  ;;  %848 = vmin.xlane.f32.xlu0 %v847_v53 }
 0xa96   : > { %vm836_vm0 = vmand %vm812_vm2, %vm832_vm14 }
 0xa97   : > { %v840_v14 = vsel %vm836_vm0, inf, %v796_v45 }
 0xa98   : > { %v2180_v32 = vpop.xlane.xlu1 %827  ;;  %v844_v40 = vsel %vm491_vm12, %v840_v14, inf }
 0xa99   : > { %vm834_vm9 = vcmp.eq.f32.partialorder %v1733_v1, %v2180_v32  ;;  %845 = vmin.xlane.f32.xlu1 %v844_v40 }
 0xa9a   : > { %vm838_vm8 = vmand %vm814_vm10, %vm834_vm9 }
 0xa9b   : > { %v842_v16 = vsel %vm838_vm8, inf, %v798_v50 }
 0xa9c   : > { %v2187_v24 = vpop.xlane.xlu0 %830  ;;  %v850_v44 = vsel %vm491_vm12, %v842_v16, inf }
 0xa9d   : > { %2702 = vst [vmem:[#allocation7_spill] sm:$0xff] %v2187_v24  ;;  %vm835_vm2 = vcmp.eq.f32.partialorder %v1745_v6, %v2187_v24  ;;  %851 = vmin.xlane.f32.xlu1 %v850_v44 }
 0xa9e   : > { %vm839_vm11 = vmand %vm815_vm15, %vm835_vm2 }
 0xa9f   : > { %v843_v45 = vsel %vm839_vm11, inf, %v799_v35 }
 0xaa0   : > { %v853_v10 = vsel %vm491_vm12, %v843_v45, inf }
 0xaa1   : > { %854 = vmin.xlane.f32.xlu0 %v853_v10 }
 0xb22   : > { %v849_v63 = vpop.xlane.xlu0 %848 }
 0xb23   : > { %vm857_vm14 = vcmp.eq.f32.partialorder %v841_v0, %v849_v63  ;;  %v1221_v50 = vsel %vm2676_vm13, %v1216_v36, %v849_v63 }
 0xb24   : > { %v861_v19 = vsel %vm857_vm14, %v1721_v60, 1e+30 }
 0xb25   : > { %v867_v12 = vsel %vm491_vm12, %v861_v19, inf }
 0xb26   : > { %v846_v2 = vpop.xlane.xlu1 %845  ;;  %868 = vmin.xlane.f32.xlu0 %v867_v12 }
 0xb27   : > { %vm856_vm9 = vcmp.eq.f32.partialorder %v840_v14, %v846_v2  ;;  %v1220_v38 = vsel %vm2676_vm13, %v1215_v56, %v846_v2 }
 0xb28   : > { %v860_v35 = vsel %vm856_vm9, %v1718_v59, 1e+30 }
 0xb29   : > { %v864_v20 = vsel %vm491_vm12, %v860_v35, inf }
 0xb2a   : > { %865 = vmin.xlane.f32.xlu1 %v864_v20  ;;  %v2203_v27 = vpop.xlane.xlu1 %851 }
 0xb2b   : > { %vm858_vm10 = vcmp.eq.f32.partialorder %v842_v16, %v2203_v27 }
 0xb2c   : > { %v862_v36 = vsel %vm858_vm10, %v1733_v1, 1e+30 }
 0xb2d   : > { %v870_v61 = vsel %vm491_vm12, %v862_v36, inf }
 0xb2e   : > { %871 = vmin.xlane.f32.xlu1 %v870_v61  ;;  %v2210_v33 = vpop.xlane.xlu0 %854 }
 0xb2f   : > { %vm859_vm15 = vcmp.eq.f32.partialorder %v843_v45, %v2210_v33 }
 0xb30   : > { %v863_v56 = vsel %vm859_vm15, %v1745_v6, 1e+30 }
 0xb31   : > { %v873_v22 = vsel %vm491_vm12, %v863_v56, inf }
 0xb32   : > { %874 = vmin.xlane.f32.xlu0 %v873_v22 }
 0xbb3   : > { %v869_v17 = vpop.xlane.xlu0 %868 }
 0xbb4   : > { %vm877_vm0 = vcmp.eq.f32.partialorder %v1721_v60, %v869_v17  ;;  %v1292_v55 = vsel %vm2676_vm13, %v1288_v4, %v869_v17 }
 0xbb5   : > { %vm881_vm8 = vmand %vm857_vm14, %vm877_vm0 }
 0xbb6   : > { %v885_v41 = vsel %vm881_vm8, inf, %v841_v0  ;;  %vm2678_vm8 = vcmask 72704  }
 0xbb7   : > { %v866_v49 = vpop.xlane.xlu1 %865  ;;  %v891_v53 = vsel %vm491_vm12, %v885_v41, inf }
 0xbb8   : > { %vm876_vm2 = vcmp.eq.f32.partialorder %v1718_v59, %v866_v49  ;;  %v1291_v40 = vsel %vm2676_vm13, %v1287_v62, %v866_v49  ;;  %892 = vmin.xlane.f32.xlu0 %v891_v53 }
 0xbb9   : > { %vm880_vm11 = vmand %vm856_vm9, %vm876_vm2 }
 0xbba   : > { %v884_v44 = vsel %vm880_vm11, inf, %v840_v14 }
 0xbbb   : > { %v2224_v10 = vpop.xlane.xlu1 %871  ;;  %v888_v19 = vsel %vm491_vm12, %v884_v44, inf }
 0xbbc   : > { %2703 = vst [vmem:[#allocation8_spill] sm:$0xff] %v2224_v10  ;;  %vm878_vm7 = vcmp.eq.f32.partialorder %v1733_v1, %v2224_v10  ;;  %889 = vmin.xlane.f32.xlu1 %v888_v19 }
 0xbbd   : > { %vm882_vm14 = vmand %vm858_vm10, %vm878_vm7 }
 0xbbe   : > { %v886_v4 = vsel %vm882_vm14, inf, %v842_v16 }
 0xbbf   : > { %v2231_v0 = vpop.xlane.xlu0 %874  ;;  %v894_v62 = vsel %vm491_vm12, %v886_v4, inf }
 0xbc0   : > { %2704 = vst [vmem:[#allocation9_spill] sm:$0xff] %v2231_v0  ;;  %vm879_vm9 = vcmp.eq.f32.partialorder %v1745_v6, %v2231_v0  ;;  %895 = vmin.xlane.f32.xlu1 %v894_v62 }
 0xbc1   : > { %vm883_vm0 = vmand %vm859_vm15, %vm879_vm9 }
 0xbc2   : > { %v887_v14 = vsel %vm883_vm0, inf, %v843_v45 }
 0xbc3   : > { %v897_v63 = vsel %vm491_vm12, %v887_v14, inf }
 0xbc4   : > { %898 = vmin.xlane.f32.xlu0 %v897_v63 }
 0xc45   : > { %v893_v12 = vpop.xlane.xlu0 %892 }
 0xc46   : > { %vm901_vm2 = vcmp.eq.f32.partialorder %v885_v41, %v893_v12  ;;  %v1226_v16 = vsel %vm2678_vm8, %v1221_v50, %v893_v12 }
 0xc47   : > { %v905_v2 = vsel %vm901_vm2, %v1721_v60, 1e+30 }
 0xc48   : > { %v911_v35 = vsel %vm491_vm12, %v905_v2, inf }
 0xc49   : > { %v890_v20 = vpop.xlane.xlu1 %889  ;;  %912 = vmin.xlane.f32.xlu0 %v911_v35 }
 0xc4a   : > { %vm900_vm7 = vcmp.eq.f32.partialorder %v884_v44, %v890_v20  ;;  %v1225_v36 = vsel %vm2678_vm8, %v1220_v38, %v890_v20 }
 0xc4b   : > { %v904_v45 = vsel %vm900_vm7, %v1718_v59, 1e+30 }
 0xc4c   : > { %v908_v61 = vsel %vm491_vm12, %v904_v45, inf }
 0xc4d   : > { %909 = vmin.xlane.f32.xlu1 %v908_v61  ;;  %v2247_v56 = vpop.xlane.xlu1 %895 }
 0xc4e   : > { %vm902_vm10 = vcmp.eq.f32.partialorder %v886_v4, %v2247_v56 }
 0xc4f   : > { %v906_v50 = vsel %vm902_vm10, %v1733_v1, 1e+30 }
 0xc50   : > { %v914_v22 = vsel %vm491_vm12, %v906_v50, inf }
 0xc51   : > { %915 = vmin.xlane.f32.xlu1 %v914_v22  ;;  %v2254_v17 = vpop.xlane.xlu0 %898 }
 0xc52   : > { %vm903_vm15 = vcmp.eq.f32.partialorder %v887_v14, %v2254_v17 }
 0xc53   : > { %v907_v38 = vsel %vm903_vm15, %v1745_v6, 1e+30 }
 0xc54   : > { %v917_v49 = vsel %vm491_vm12, %v907_v38, inf }
 0xc55   : > { %918 = vmin.xlane.f32.xlu0 %v917_v49 }
 0xcd6   : > { %v913_v53 = vpop.xlane.xlu0 %912 }
 0xcd7   : > { %vm921_vm11 = vcmp.eq.f32.partialorder %v1721_v60, %v913_v53  ;;  %v1296_v19 = vsel %vm2678_vm8, %v1292_v55, %v913_v53 }
 0xcd8   : > { %vm925_vm14 = vmand %vm901_vm2, %vm921_vm11 }
 0xcd9   : > { %v929_v62 = vsel %vm925_vm14, inf, %v885_v41  ;;  %vm2683_vm14 = vcmask 80896  }
 0xcda   : > { %v910_v63 = vpop.xlane.xlu1 %909  ;;  %v935_v2 = vsel %vm491_vm12, %v929_v62, inf }
 0xcdb   : > { %vm920_vm9 = vcmp.eq.f32.partialorder %v1718_v59, %v910_v63  ;;  %v1295_v35 = vsel %vm2678_vm8, %v1291_v40, %v910_v63  ;;  %936 = vmin.xlane.f32.xlu0 %v935_v2 }
 0xcdc   : > { %vm924_vm0 = vmand %vm900_vm7, %vm920_vm9 }
 0xcdd   : > { %v928_v45 = vsel %vm924_vm0, inf, %v884_v44 }
 0xcde   : > { %v2268_v61 = vpop.xlane.xlu1 %915  ;;  %v932_v50 = vsel %vm491_vm12, %v928_v45, inf }
 0xcdf   : > { %2705 = vst [vmem:[#allocation10_spill] sm:$0xff] %v2268_v61  ;;  %vm922_vm13 = vcmp.eq.f32.partialorder %v1733_v1, %v2268_v61  ;;  %933 = vmin.xlane.f32.xlu1 %v932_v50 }
 0xce0   : > { %vm926_vm2 = vmand %vm902_vm10, %vm922_vm13 }
 0xce1   : > { %v930_v55 = vsel %vm926_vm2, inf, %v886_v4 }
 0xce2   : > { %v2275_v41 = vpop.xlane.xlu0 %918  ;;  %v938_v40 = vsel %vm491_vm12, %v930_v55, inf }
 0xce3   : > { %2706 = vst [vmem:[#allocation11_spill] sm:$0xff] %v2275_v41  ;;  %vm923_vm7 = vcmp.eq.f32.partialorder %v1745_v6, %v2275_v41  ;;  %939 = vmin.xlane.f32.xlu1 %v938_v40 }
 0xce4   : > { %vm927_vm11 = vmand %vm903_vm15, %vm923_vm7 }
 0xce5   : > { %v931_v44 = vsel %vm927_vm11, inf, %v887_v14 }
 0xce6   : > { %v941_v12 = vsel %vm491_vm12, %v931_v44, inf }
 0xce7   : > { %942 = vmin.xlane.f32.xlu0 %v941_v12 }
 0xd68   : > { %v937_v20 = vpop.xlane.xlu0 %936 }
 0xd69   : > { %vm945_vm9 = vcmp.eq.f32.partialorder %v929_v62, %v937_v20  ;;  %v1231_v4 = vsel %vm2683_vm14, %v1226_v16, %v937_v20 }
 0xd6a   : > { %v949_v22 = vsel %vm945_vm9, %v1721_v60, 1e+30 }
 0xd6b   : > { %v955_v38 = vsel %vm491_vm12, %v949_v22, inf }
 0xd6c   : > { %v934_v49 = vpop.xlane.xlu1 %933  ;;  %956 = vmin.xlane.f32.xlu0 %v955_v38 }
 0xd6d   : > { %vm944_vm13 = vcmp.eq.f32.partialorder %v928_v45, %v934_v49  ;;  %v1230_v53 = vsel %vm2683_vm14, %v1225_v36, %v934_v49 }
 0xd6e   : > { %v948_v14 = vsel %vm944_vm13, %v1718_v59, 1e+30 }
 0xd6f   : > { %v952_v63 = vsel %vm491_vm12, %v948_v14, inf }
 0xd70   : > { %953 = vmin.xlane.f32.xlu1 %v952_v63  ;;  %v2291_v2 = vpop.xlane.xlu1 %939 }
 0xd71   : > { %vm946_vm10 = vcmp.eq.f32.partialorder %v930_v55, %v2291_v2 }
 0xd72   : > { %v950_v16 = vsel %vm946_vm10, %v1733_v1, 1e+30 }
 0xd73   : > { %v958_v50 = vsel %vm491_vm12, %v950_v16, inf }
 0xd74   : > { %959 = vmin.xlane.f32.xlu1 %v958_v50  ;;  %v2298_v40 = vpop.xlane.xlu0 %942 }
 0xd75   : > { %vm947_vm15 = vcmp.eq.f32.partialorder %v931_v44, %v2298_v40 }
 0xd76   : > { %v951_v36 = vsel %vm947_vm15, %v1745_v6, 1e+30 }
 0xd77   : > { %v961_v12 = vsel %vm491_vm12, %v951_v36, inf }
 0xd78   : > { %962 = vmin.xlane.f32.xlu0 %v961_v12 }
 0xdf9   : > { %v957_v22 = vpop.xlane.xlu0 %956 }
 0xdfa   : > { %vm965_vm0 = vcmp.eq.f32.partialorder %v1721_v60, %v957_v22  ;;  %v1300_v38 = vsel %vm2683_vm14, %v1296_v19, %v957_v22 }
 0xdfb   : > { %vm969_vm2 = vmand %vm945_vm9, %vm965_vm0 }
 0xdfc   : > { %v973_v14 = vsel %vm969_vm2, inf, %v929_v62  ;;  %vm2688_vm2 = vcmask 89088  }
 0xdfd   : > { %v954_v63 = vpop.xlane.xlu1 %953  ;;  %v979_v16 = vsel %vm491_vm12, %v973_v14, inf }
 0xdfe   : > { %vm964_vm7 = vcmp.eq.f32.partialorder %v1718_v59, %v954_v63  ;;  %v1299_v50 = vsel %vm2683_vm14, %v1295_v35, %v954_v63  ;;  %980 = vmin.xlane.f32.xlu0 %v979_v16 }
 0xdff   : > { %vm968_vm11 = vmand %vm944_vm13, %vm964_vm7 }
 0xe00   : > { %v972_v36 = vsel %vm968_vm11, inf, %v928_v45 }
 0xe01   : > { %v2312_v12 = vpop.xlane.xlu1 %959  ;;  %v976_v41 = vsel %vm491_vm12, %v972_v36, inf }
 0xe02   : > { %2707 = vst [vmem:[#allocation12_spill] sm:$0xff] %v2312_v12  ;;  %vm966_vm8 = vcmp.eq.f32.partialorder %v1733_v1, %v2312_v12  ;;  %977 = vmin.xlane.f32.xlu1 %v976_v41 }
 0xe03   : > { %vm970_vm9 = vmand %vm946_vm10, %vm966_vm8 }
 0xe04   : > { %v974_v19 = vsel %vm970_vm9, inf, %v930_v55 }
 0xe05   : > { %v2319_v62 = vpop.xlane.xlu0 %962  ;;  %v982_v35 = vsel %vm491_vm12, %v974_v19, inf }
 0xe06   : > { %2708 = vst [vmem:[#allocation13_spill] sm:$0xff] %v2319_v62  ;;  %vm967_vm13 = vcmp.eq.f32.partialorder %v1745_v6, %v2319_v62  ;;  %983 = vmin.xlane.f32.xlu1 %v982_v35 }
 0xe07   : > { %vm971_vm0 = vmand %vm947_vm15, %vm967_vm13 }
 0xe08   : > { %v975_v45 = vsel %vm971_vm0, inf, %v931_v44 }
 0xe09   : > { %v985_v20 = vsel %vm491_vm12, %v975_v45, inf }
 0xe0a   : > { %986 = vmin.xlane.f32.xlu0 %v985_v20 }
 0xe8b   : > { %v981_v41 = vpop.xlane.xlu0 %980 }
 0xe8c   : > { %vm989_vm7 = vcmp.eq.f32.partialorder %v973_v14, %v981_v41  ;;  %v1236_v55 = vsel %vm2688_vm2, %v1231_v4, %v981_v41 }
 0xe8d   : > { %v993_v49 = vsel %vm989_vm7, %v1721_v60, 1e+30 }
 0xe8e   : > { %v999_v22 = vsel %vm491_vm12, %v993_v49, inf }
 0xe8f   : > { %v978_v63 = vpop.xlane.xlu1 %977  ;;  %1000 = vmin.xlane.f32.xlu0 %v999_v22 }
 0xe90   : > { %vm988_vm8 = vcmp.eq.f32.partialorder %v972_v36, %v978_v63  ;;  %v1235_v16 = vsel %vm2688_vm2, %v1230_v53, %v978_v63 }
 0xe91   : > { %v992_v44 = vsel %vm988_vm8, %v1718_v59, 1e+30 }
 0xe92   : > { %v996_v35 = vsel %vm491_vm12, %v992_v44, inf }
 0xe93   : > { %997 = vmin.xlane.f32.xlu1 %v996_v35  ;;  %v2335_v20 = vpop.xlane.xlu1 %983 }
 0xe94   : > { %vm990_vm10 = vcmp.eq.f32.partialorder %v974_v19, %v2335_v20 }
 0xe95   : > { %v994_v4 = vsel %vm990_vm10, %v1733_v1, 1e+30 }
 0xe96   : > { %v1002_v49 = vsel %vm491_vm12, %v994_v4, inf }
 0xe97   : > { %1003 = vmin.xlane.f32.xlu1 %v1002_v49  ;;  %v2342_v22 = vpop.xlane.xlu0 %986 }
 0xe98   : > { %vm991_vm15 = vcmp.eq.f32.partialorder %v975_v45, %v2342_v22 }
 0xe99   : > { %v995_v53 = vsel %vm991_vm15, %v1745_v6, 1e+30 }
 0xe9a   : > { %v1005_v44 = vsel %vm491_vm12, %v995_v53, inf }
 0xe9b   : > { %1006 = vmin.xlane.f32.xlu0 %v1005_v44 }
 0xf1c   : > { %v1001_v35 = vpop.xlane.xlu0 %1000 }
 0xf1d   : > { %vm1009_vm11 = vcmp.eq.f32.partialorder %v1721_v60, %v1001_v35  ;;  %v1304_v62 = vsel %vm2688_vm2, %v1300_v38, %v1001_v35 }
 0xf1e   : > { %vm1013_vm9 = vmand %vm989_vm7, %vm1009_vm11 }
 0xf1f   : > { %v1017_v4 = vsel %vm1013_vm9, inf, %v973_v14  ;;  %vm2693_vm9 = vcmask 97280  }
 0xf20   : > { %v998_v49 = vpop.xlane.xlu1 %997  ;;  %v1023_v0 = vsel %vm491_vm12, %v1017_v4, inf }
 0xf21   : > { %vm1008_vm13 = vcmp.eq.f32.partialorder %v1718_v59, %v998_v49  ;;  %v1303_v24 = vsel %vm2688_vm2, %v1299_v50, %v998_v49  ;;  %1024 = vmin.xlane.f32.xlu0 %v1023_v0 }
 0xf22   : > { %vm1012_vm0 = vmand %vm988_vm8, %vm1008_vm13 }
 0xf23   : > { %v1016_v53 = vsel %vm1012_vm0, inf, %v972_v36 }
 0xf24   : > { %v2356_v44 = vpop.xlane.xlu1 %1003  ;;  %v1020_v12 = vsel %vm491_vm12, %v1016_v53, inf }
 0xf25   : > { %2709 = vst [vmem:[#allocation14_spill] sm:$0xff] %v2356_v44  ;;  %vm1010_vm14 = vcmp.eq.f32.partialorder %v1733_v1, %v2356_v44  ;;  %1021 = vmin.xlane.f32.xlu1 %v1020_v12 }
 0xf26   : > { %vm1014_vm7 = vmand %vm990_vm10, %vm1010_vm14 }
 0xf27   : > { %v1018_v38 = vsel %vm1014_vm7, inf, %v974_v19 }
 0xf28   : > { %v2363_v14 = vpop.xlane.xlu0 %1006  ;;  %v1026_v50 = vsel %vm491_vm12, %v1018_v38, inf }
 0xf29   : > { %2710 = vst [vmem:[#allocation15_spill] sm:$0xff] %v2363_v14  ;;  %vm1011_vm8 = vcmp.eq.f32.partialorder %v1745_v6, %v2363_v14  ;;  %1027 = vmin.xlane.f32.xlu1 %v1026_v50 }
 0xf2a   : > { %vm1015_vm11 = vmand %vm991_vm15, %vm1011_vm8 }
 0xf2b   : > { %v1019_v0 = vsel %vm1015_vm11, inf, %v975_v45 }
 0xf2c   : > { %v1029_v36 = vsel %vm491_vm12, %v1019_v0, inf }
 0xf2d   : > { %1030 = vmin.xlane.f32.xlu0 %v1029_v36 }
 0xfae   : > { %v1025_v12 = vpop.xlane.xlu0 %1024 }
 0xfaf   : > { %vm1033_vm13 = vcmp.eq.f32.partialorder %v1017_v4, %v1025_v12  ;;  %v1241_v19 = vsel %vm2693_vm9, %v1236_v55, %v1025_v12 }
 0xfb0   : > { %v1037_v41 = vsel %vm1033_vm13, %v1721_v60, 1e+30 }
 0xfb1   : > { %v1043_v63 = vsel %vm491_vm12, %v1037_v41, inf }
 0xfb2   : > { %v1022_v35 = vpop.xlane.xlu1 %1021  ;;  %1044 = vmin.xlane.f32.xlu0 %v1043_v63 }
 0xfb3   : > { %vm1032_vm14 = vcmp.eq.f32.partialorder %v1016_v53, %v1022_v35  ;;  %v1240_v49 = vsel %vm2693_vm9, %v1235_v16, %v1022_v35 }
 0xfb4   : > { %v1036_v45 = vsel %vm1032_vm14, %v1718_v59, 1e+30 }
 0xfb5   : > { %v1040_v50 = vsel %vm491_vm12, %v1036_v45, inf }
 0xfb6   : > { %1041 = vmin.xlane.f32.xlu1 %v1040_v50  ;;  %v2379_v36 = vpop.xlane.xlu1 %1027 }
 0xfb7   : > { %vm1034_vm10 = vcmp.eq.f32.partialorder %v1018_v38, %v2379_v36 }
 0xfb8   : > { %v1038_v55 = vsel %vm1034_vm10, %v1733_v1, 1e+30 }
 0xfb9   : > { %v1046_v41 = vsel %vm491_vm12, %v1038_v55, inf }
 0xfba   : > { %1047 = vmin.xlane.f32.xlu1 %v1046_v41  ;;  %v2386_v63 = vpop.xlane.xlu0 %1030 }
 0xfbb   : > { %vm1035_vm15 = vcmp.eq.f32.partialorder %v1019_v0, %v2386_v63 }
 0xfbc   : > { %v1039_v16 = vsel %vm1035_vm15, %v1745_v6, 1e+30 }
 0xfbd   : > { %v1049_v45 = vsel %vm491_vm12, %v1039_v16, inf }
 0xfbe   : > { %1050 = vmin.xlane.f32.xlu0 %v1049_v45 }
0x103f   : > { %v1045_v50 = vpop.xlane.xlu0 %1044 }
0x1040   : > { %vm1053_vm0 = vcmp.eq.f32.partialorder %v1721_v60, %v1045_v50  ;;  %v1308_v14 = vsel %vm2693_vm9, %v1304_v62, %v1045_v50 }
0x1041   : > { %vm1057_vm7 = vmand %vm1033_vm13, %vm1053_vm0 }
0x1042   : > { %v1061_v55 = vsel %vm1057_vm7, inf, %v1017_v4  ;;  %vm1244_vm7 = vcmask 105472  }
0x1043   : > { %v1042_v41 = vpop.xlane.xlu1 %1041  ;;  %v1067_v44 = vsel %vm491_vm12, %v1061_v55, inf }
0x1044   : > { %vm1052_vm8 = vcmp.eq.f32.partialorder %v1718_v59, %v1042_v41  ;;  %v1307_v34 = vsel %vm2693_vm9, %v1303_v24, %v1042_v41  ;;  %1068 = vmin.xlane.f32.xlu0 %v1067_v44 }
0x1045   : > { %vm1056_vm11 = vmand %vm1032_vm14, %vm1052_vm8 }
0x1046   : > { %v1060_v16 = vsel %vm1056_vm11, inf, %v1016_v53 }
0x1047   : > { %v2400_v45 = vpop.xlane.xlu1 %1047  ;;  %v1064_v61 = vsel %vm491_vm12, %v1060_v16, inf }
0x1048   : > { %2711 = vst [vmem:[#allocation16_spill] sm:$0xff] %v2400_v45  ;;  %vm1054_vm2 = vcmp.eq.f32.partialorder %v1733_v1, %v2400_v45  ;;  %1065 = vmin.xlane.f32.xlu1 %v1064_v61 }
0x1049   : > { %vm1058_vm13 = vmand %vm1034_vm10, %vm1054_vm2 }
0x104a   : > { %v1062_v62 = vsel %vm1058_vm13, inf, %v1018_v38 }
0x104b   : > { %v2407_v4 = vpop.xlane.xlu0 %1050  ;;  %v1070_v24 = vsel %vm491_vm12, %v1062_v62, inf }
0x104c   : > { %2712 = vst [vmem:[#allocation17_spill] sm:$0xff] %v2407_v4  ;;  %vm1055_vm14 = vcmp.eq.f32.partialorder %v1745_v6, %v2407_v4  ;;  %1071 = vmin.xlane.f32.xlu1 %v1070_v24 }
0x104d   : > { %vm1059_vm0 = vmand %vm1035_vm15, %vm1055_vm14 }
0x104e   : > { %v1063_v53 = vsel %vm1059_vm0, inf, %v1019_v0 }
0x104f   : > { %v1073_v44 = vsel %vm491_vm12, %v1063_v53, inf }
0x1050   : > { %1074 = vmin.xlane.f32.xlu0 %v1073_v44 }
0x10d1   : > { %v1069_v61 = vpop.xlane.xlu0 %1068 }
0x10d2   : > { %vm1077_vm8 = vcmp.eq.f32.partialorder %v1061_v55, %v1069_v61  ;;  %v1246_v38 = vsel %vm1244_vm7, %v1241_v19, %v1069_v61 }
0x10d3   : > { %v1081_v12 = vsel %vm1077_vm8, %v1721_v60, 1e+30 }
0x10d4   : > { %v1087_v35 = vsel %vm491_vm12, %v1081_v12, inf }
0x10d5   : > { %v1066_v50 = vpop.xlane.xlu1 %1065  ;;  %1088 = vmin.xlane.f32.xlu0 %v1087_v35 }
0x10d6   : > { %vm1076_vm2 = vcmp.eq.f32.partialorder %v1060_v16, %v1066_v50  ;;  %v1245_v41 = vsel %vm1244_vm7, %v1240_v49, %v1066_v50 }
0x10d7   : > { %v1080_v0 = vsel %vm1076_vm2, %v1718_v59, 1e+30 }
0x10d8   : > { %v1084_v24 = vsel %vm491_vm12, %v1080_v0, inf }
0x10d9   : > { %1085 = vmin.xlane.f32.xlu1 %v1084_v24  ;;  %v2423_v44 = vpop.xlane.xlu1 %1071 }
0x10da   : > { %vm1078_vm10 = vcmp.eq.f32.partialorder %v1062_v62, %v2423_v44 }
0x10db   : > { %v1082_v19 = vsel %vm1078_vm10, %v1733_v1, 1e+30 }
0x10dc   : > { %v1090_v12 = vsel %vm491_vm12, %v1082_v19, inf }
0x10dd   : > { %1091 = vmin.xlane.f32.xlu1 %v1090_v12  ;;  %v2430_v35 = vpop.xlane.xlu0 %1074 }
0x10de   : > { %vm1079_vm15 = vcmp.eq.f32.partialorder %v1063_v53, %v2430_v35 }
0x10df   : > { %v1083_v49 = vsel %vm1079_vm15, %v1745_v6, 1e+30 }
0x10e0   : > { %v1093_v0 = vsel %vm491_vm12, %v1083_v49, inf }
0x10e1   : > { %1094 = vmin.xlane.f32.xlu0 %v1093_v0 }
0x1162   : > { %v1089_v24 = vpop.xlane.xlu0 %1088 }
0x1163   : > { %vm1097_vm11 = vcmp.eq.f32.partialorder %v1721_v60, %v1089_v24  ;;  %v1312_v4 = vsel %vm1244_vm7, %v1308_v14, %v1089_v24 }
0x1164   : > { %vm1101_vm13 = vmand %vm1077_vm8, %vm1097_vm11 }
0x1165   : > { %v1105_v19 = vsel %vm1101_vm13, inf, %v1061_v55  ;;  %vm1249_vm13 = vcmask 113664  }
0x1166   : > { %v1086_v12 = vpop.xlane.xlu1 %1085  ;;  %v1111_v45 = vsel %vm491_vm12, %v1105_v19, inf }
0x1167   : > { %vm1096_vm14 = vcmp.eq.f32.partialorder %v1718_v59, %v1086_v12  ;;  %v1311_v23 = vsel %vm1244_vm7, %v1307_v34, %v1086_v12  ;;  %1112 = vmin.xlane.f32.xlu0 %v1111_v45 }
0x1168   : > { %vm1100_vm0 = vmand %vm1076_vm2, %vm1096_vm14 }
0x1169   : > { %v1104_v49 = vsel %vm1100_vm0, inf, %v1060_v16 }
0x116a   : > { %v2444_v0 = vpop.xlane.xlu1 %1091  ;;  %v1108_v10 = vsel %vm491_vm12, %v1104_v49, inf }
0x116b   : > { %2713 = vst [vmem:[#allocation18_spill] sm:$0xff] %v2444_v0  ;;  %vm1098_vm9 = vcmp.eq.f32.partialorder %v1733_v1, %v2444_v0  ;;  %1109 = vmin.xlane.f32.xlu1 %v1108_v10 }
0x116c   : > { %vm1102_vm8 = vmand %vm1078_vm10, %vm1098_vm9 }
0x116d   : > { %v1106_v14 = vsel %vm1102_vm8, inf, %v1062_v62 }
0x116e   : > { %v2451_v55 = vpop.xlane.xlu0 %1094  ;;  %v1114_v34 = vsel %vm491_vm12, %v1106_v14, inf }
0x116f   : > { %2714 = vst [vmem:[#allocation19_spill] sm:$0xff] %v2451_v55  ;;  %vm1099_vm2 = vcmp.eq.f32.partialorder %v1745_v6, %v2451_v55  ;;  %1115 = vmin.xlane.f32.xlu1 %v1114_v34 }
0x1170   : > { %vm1103_vm11 = vmand %vm1079_vm15, %vm1099_vm2 }
0x1171   : > { %v1107_v16 = vsel %vm1103_vm11, inf, %v1063_v53 }
0x1172   : > { %v1117_v45 = vsel %vm491_vm12, %v1107_v16, inf }
0x1173   : > { %1118 = vmin.xlane.f32.xlu0 %v1117_v45 }
0x11f4   : > { %v1113_v10 = vpop.xlane.xlu0 %1112 }
0x11f5   : > { %vm1121_vm14 = vcmp.eq.f32.partialorder %v1105_v19, %v1113_v10  ;;  %v1251_v62 = vsel %vm1249_vm13, %v1246_v38, %v1113_v10 }
0x11f6   : > { %v1125_v61 = vsel %vm1121_vm14, %v1721_v60, 1e+30 }
0x11f7   : > { %v1131_v50 = vsel %vm491_vm12, %v1125_v61, inf }
0x11f8   : > { %v1110_v24 = vpop.xlane.xlu1 %1109  ;;  %1132 = vmin.xlane.f32.xlu0 %v1131_v50 }
0x11f9   : > { %vm1120_vm9 = vcmp.eq.f32.partialorder %v1104_v49, %v1110_v24  ;;  %v2464_v12 = vsel %vm1249_vm13, %v1245_v41, %v1110_v24  ;;  %v1187_v24 = vsel %vm1184_vm1, %v1715_v57, %v1801_v28 }
0x11fa   : > { %v1124_v53 = vsel %vm1120_vm9, %v1718_v59, 1e+30 }
0x11fb   : > { %v1128_v34 = vsel %vm491_vm12, %v1124_v53, inf }
0x11fc   : > { %1129 = vmin.xlane.f32.xlu1 %v1128_v34  ;;  %v2469_v45 = vpop.xlane.xlu1 %1115 }
0x11fd   : > { %vm1122_vm10 = vcmp.eq.f32.partialorder %v1106_v14, %v2469_v45 }
0x11fe   : > { %v1126_v38 = vsel %vm1122_vm10, %v1733_v1, 1e+30 }
0x11ff   : > { %v1134_v61 = vsel %vm491_vm12, %v1126_v38, inf }
0x1200   : > { %1135 = vmin.xlane.f32.xlu1 %v1134_v61  ;;  %v2476_v50 = vpop.xlane.xlu0 %1118 }
0x1201   : > { %vm1123_vm15 = vcmp.eq.f32.partialorder %v1107_v16, %v2476_v50 }
0x1202   : > { %v1127_v41 = vsel %vm1123_vm15, %v1745_v6, 1e+30 }
0x1203   : > { %v1137_v53 = vsel %vm491_vm12, %v1127_v41, inf }
0x1204   : > { %1138 = vmin.xlane.f32.xlu0 %v1137_v53 }
0x1285   : > { %v1133_v34 = vpop.xlane.xlu0 %1132 }
0x1286   : > { %vm1141_vm0 = vcmp.eq.f32.partialorder %v1721_v60, %v1133_v34  ;;  %v2485_v55 = vsel %vm1249_vm13, %v1312_v4, %v1133_v34 }
0x1287   : > { %vm1145_vm8 = vmand %vm1121_vm14, %vm1141_vm0 }
0x1288   : > { %v1149_v38 = vsel %vm1145_vm8, inf, %v1105_v19 }
0x1289   : > { %v1130_v61 = vpop.xlane.xlu1 %1129  ;;  %v1155_v0 = vsel %vm491_vm12, %v1149_v38, inf }
0x128a   : > { %vm1140_vm2 = vcmp.eq.f32.partialorder %v1718_v59, %v1130_v61  ;;  %v2491_v37 = vsel %vm1249_vm13, %v1311_v23, %v1130_v61  ;;  %1156 = vmin.xlane.f32.xlu0 %v1155_v0 }
0x128b   : > { %vm1144_vm11 = vmand %vm1120_vm9, %vm1140_vm2  ;;  %vm2716_vm2 = vcmask 56320  }
0x128c   : > { %v1148_v41 = vsel %vm1144_vm11, inf, %v1104_v49 }
0x128d   : > { %v2494_v53 = vpop.xlane.xlu1 %1135  ;;  %v1152_v4 = vsel %vm491_vm12, %v1148_v41, inf }
0x128e   : > { %vm1142_vm14 = vcmp.eq.f32.partialorder %v1733_v1, %v2494_v53  ;;  %1153 = vmin.xlane.f32.xlu1 %v1152_v4 }
0x128f   : > { %vm1146_vm0 = vmand %vm1122_vm10, %vm1142_vm14  ;;  %vm1254_vm10 = vcmask 121856   ;;  %vm2717_vm14 = vcmask 64512  }
0x1290   : > { %v1150_v19 = vsel %vm1146_vm0, inf, %v1106_v14  ;;  %v1192_v14 = vsel %vm1189_vm3, %v1187_v24, %v1857_v52  ;;  %vm2718_vm0 = vcmask 130048  }
0x1291   : > { %v2501_v10 = vpop.xlane.xlu0 %1138  ;;  %v1158_v23 = vsel %vm491_vm12, %v1150_v19, inf  ;;  %v1197_v34 = vsel %vm1194_vm4, %v1192_v14, %v1913_v26 }
0x1292   : > { %vm1143_vm9 = vcmp.eq.f32.partialorder %v1745_v6, %v2501_v10  ;;  %1159 = vmin.xlane.f32.xlu1 %v1158_v23  ;;  %v1202_v61 = vsel %vm1199_vm5, %v1197_v34, %v1961_v5 }
0x1293   : > { %vm1147_vm8 = vmand %vm1123_vm15, %vm1143_vm9  ;;  %v1207_v4 = vsel %vm1204_vm6, %v1202_v61, %v2041_v8  ;;  %vm2715_vm15 = vcmask 48128   ;;  %vm2719_vm9 = vcmask 72704  }
0x1294   : > { %v1151_v49 = vsel %vm1147_vm8, inf, %v1107_v16  ;;  %v1188_v16 = vsel %vm1184_vm1, %v1735_v3, %v1808_v31  ;;  %v1212_v28 = vsel %vm2715_vm15, %v1207_v4, %v2115_v25  ;;  %vm2720_vm8 = vmmov %vm2715_vm15  ;;  %vm2721_vm15 = vcmask 80896   ;;  %v2740_v4 = vld [vmem:[#allocation6_spill] sm:$0xff] }
0x1295   : > { %v1161_v0 = vsel %vm491_vm12, %v1151_v49, inf  ;;  %v1193_v57 = vsel %vm1189_vm3, %v1188_v16, %v1864_v58  ;;  %v1217_v5 = vsel %vm2716_vm2, %v1212_v28, %v2159_v54  ;;  %v2738_v16 = vld [vmem:[#allocation10_spill] sm:$0xff] }
0x1296   : > { %1162 = vmin.xlane.f32.xlu0 %v1161_v0  ;;  %v1198_v26 = vsel %vm1194_vm4, %v1193_v57, %v1920_v30  ;;  %v1222_v31 = vsel %vm2717_vm14, %v1217_v5, %v2203_v27  ;;  %v2742_v57 = vld [vmem:[#allocation12_spill] sm:$0xff]  ;;  %v2746_v5 = vld [vmem:[#allocation14_spill] sm:$0xff] }
0x1297   : > { %v1203_v3 = vsel %vm1199_vm5, %v1198_v26, %v1968_v13  ;;  %v1227_v30 = vsel %vm2719_vm9, %v1222_v31, %v2247_v56  ;;  %vm2724_vm9 = vcmask 97280   ;;  %v2748_v31 = vld [vmem:[#allocation9_spill] sm:$0xff] }
0x1298   : > { %v1208_v8 = vsel %vm1204_vm6, %v1203_v3, %v2050_v9  ;;  %v1232_v13 = vsel %vm2721_vm15, %v1227_v30, %v2291_v2  ;;  %vm2726_vm15 = vcmask 72704  }
0x1299   : > { %v1213_v54 = vsel %vm2720_vm8, %v1208_v8, %v2122_v21  ;;  %vm2725_vm8 = vcmask 130048   ;;  %v2750_v8 = vld [vmem:[#allocation16_spill] sm:$0xff] }
0x129a   : > { %v1218_v27 = vsel %vm2716_vm2, %v1213_v54, %v2166_v46  ;;  %vm2727_vm2 = vcmask 80896  }
0x1317   : > { %v1157_v52 = vpop.xlane.xlu0 %1156 }
0x1318   : > { %vm1165_vm11 = vcmp.eq.f32.partialorder %v1149_v38, %v1157_v52  ;;  %v1256_v23 = vsel %vm1254_vm10, %v1251_v62, %v1157_v52  ;;  %v2744_v52 = vld [vmem:[#allocation7_spill] sm:$0xff] }
0x1319   : > { %1260 = vst.msk [vmem:[#allocation2 + $0x8] sm:$0xff] %vm2718_vm0, %v1256_v23  ;;  %v1169_v58 = vsel %vm1165_vm11, %v1721_v60, 1e+30  ;;  %vm2722_vm11 = vcmask 89088   ;;  %vm2723_vm0 = vcmask 64512  }
0x131a   : > { %v1175_v25 = vsel %vm491_vm12, %v1169_v58, inf  ;;  %v1237_v60 = vsel %vm2722_vm11, %v1232_v13, %v2335_v20  ;;  %v1223_v56 = vsel %vm2723_vm0, %v1218_v27, %v2210_v33  ;;  %vm2728_vm0 = vmmov %vm2724_vm9  ;;  %v2755_v13 = vld [vmem:[#allocation18_spill] sm:$0xff]  ;;  %v2756_v27 = vld [vmem:[#allocation13_spill] sm:$0xff] }
0x131b   : > { %v1154_v62 = vpop.xlane.xlu1 %1153  ;;  %1176 = vmin.xlane.f32.xlu0 %v1175_v25  ;;  %v1242_v21 = vsel %vm2724_vm9, %v1237_v60, %v2379_v36  ;;  %v1228_v46 = vsel %vm2726_vm15, %v1223_v56, %v2254_v17  ;;  %vm2729_vm9 = vmmov %vm2725_vm8  ;;  %v2753_v25 = vld [vmem:[#allocation11_spill] sm:$0xff] }
0x131c   : > { %vm1164_vm14 = vcmp.eq.f32.partialorder %v1148_v41, %v1154_v62  ;;  %v1255_v9 = vsel %vm1254_vm10, %v2464_v12, %v1154_v62  ;;  %v1247_v20 = vsel %vm1244_vm7, %v1242_v21, %v2423_v44  ;;  %v1233_v12 = vsel %vm2727_vm2, %v1228_v46, %v2298_v40  ;;  %vm2730_vm15 = vmmov %vm2729_vm9  ;;  %v2758_v56 = vld [vmem:[#allocation15_spill] sm:$0xff] }
0x131d   : > { %1259 = vst.msk [vmem:[#allocation2] sm:$0xff] %vm2725_vm8, %v1255_v9  ;;  %v1168_v2 = vsel %vm1164_vm14, %v1718_v59, 1e+30  ;;  %v1252_v33 = vsel %vm1249_vm13, %v1247_v20, %v2469_v45  ;;  %v1238_v41 = vsel %vm2722_vm11, %v1233_v12, %v2342_v22  ;;  %vm2732_vm2 = vcmask 56320   ;;  %v2760_v20 = vld [vmem:[#allocation17_spill] sm:$0xff] }
0x131e   : > { %v1172_v38 = vsel %vm491_vm12, %v1168_v2, inf  ;;  %v1243_v17 = vsel %vm2728_vm0, %v1238_v41, %v2386_v63  ;;  %vm2739_vm11 = vcmask 72704   ;;  %vm2747_vm0 = vcmask 89088  }
0x131f   : > { %1173 = vmin.xlane.f32.xlu1 %v1172_v38  ;;  %v1160_v36 = vpop.xlane.xlu1 %1159  ;;  %v1248_v40 = vsel %vm1244_vm7, %v1243_v17, %v2430_v35 }
0x1320   : > { %vm1166_vm14 = vcmp.eq.f32.partialorder %v1150_v19, %v1160_v36  ;;  %v1257_v59 = vsel %vm1254_vm10, %v1252_v33, %v1160_v36  ;;  %v1253_v0 = vsel %vm1249_vm13, %v1248_v40, %v2476_v50  ;;  %v2762_v33 = vld [vmem:[#allocation19_spill] sm:$0xff] }
0x1321   : > { %1261 = vst.msk [vmem:[#allocation2 + $0x10] sm:$0xff] %vm2729_vm9, %v1257_v59  ;;  %v1170_v44 = vsel %vm1166_vm14, %v1733_v1, 1e+30  ;;  %v1265_v1 = vsel %vm1184_vm1, %v1768_v15, %v1828_v39  ;;  %vm2743_vm14 = vcmask 80896  }
0x1322   : > { %v1178_v45 = vsel %vm491_vm12, %v1170_v44, inf  ;;  %v1269_v35 = vsel %vm1189_vm3, %v1265_v1, %v1884_v7 }
0x1323   : > { %1179 = vmin.xlane.f32.xlu1 %v1178_v45  ;;  %v1163_v22 = vpop.xlane.xlu0 %1162  ;;  %v1273_v50 = vsel %vm1194_vm4, %v1269_v35, %v1940_v43 }
0x1324   : > { %vm1167_vm8 = vcmp.eq.f32.partialorder %v1151_v49, %v1163_v22  ;;  %v1258_v19 = vsel %vm1254_vm10, %v1253_v0, %v1163_v22  ;;  %v1277_v49 = vsel %vm1199_vm5, %v1273_v50, %v1991_v29 }
0x1325   : > { %1262 = vst.msk [vmem:[#allocation2 + $0x18] sm:$0xff] %vm2730_vm15, %v1258_v19  ;;  %v1171_v63 = vsel %vm1167_vm8, %v1745_v6, 1e+30  ;;  %v1266_v6 = vsel %vm1184_vm1, %v1777_v18, %v1835_v42  ;;  %v1281_v14 = vsel %vm1204_vm6, %v1277_v49, %v2088_v51  ;;  %v2733_v18 = vld [vmem:[#allocation4_spill] sm:$0xff]  ;;  %vm2735_vm1 = vcmask 64512   ;;  %vm2754_vm15 = vmmov %vm2739_vm11 }
0x1326   : > { %v1181_v24 = vsel %vm491_vm12, %v1171_v63, inf  ;;  %v1270_v34 = vsel %vm1189_vm3, %v1266_v6, %v1891_v11  ;;  %vm2731_vm12 = vcmask 48128   ;;  %v2734_v51 = vld [vmem:[#allocation8_spill] sm:$0xff]  ;;  %vm2736_vm3 = vmmov %vm2729_vm9  ;;  %v2737_v11 = vld [vmem:[#allocation5_spill] sm:$0xff]  ;;  %vm2751_vm9 = vcmask 97280  }
0x1327   : > { %1182 = vmin.xlane.f32.xlu0 %v1181_v24  ;;  %v1285_v15 = vsel %vm2731_vm12, %v1281_v14, %v2136_v48  ;;  %v1274_v7 = vsel %vm1194_vm4, %v1270_v34, %v1947_v47  ;;  %vm2741_vm4 = vmmov %vm2731_vm12 }
0x1328   : > { %v1289_v43 = vsel %vm2732_vm2, %v1285_v15, %v2180_v32  ;;  %v1278_v42 = vsel %vm1199_vm5, %v1274_v7, %v2733_v18  ;;  %vm2745_vm5 = vmmov %vm2732_vm2 }
0x1329   : > { %v1293_v61 = vsel %vm2735_vm1, %v1289_v43, %v2734_v51  ;;  %v1282_v48 = vsel %vm1204_vm6, %v1278_v42, %v2737_v11  ;;  %vm2749_vm6 = vmmov %vm2735_vm1 }
0x132a   : > { %v1297_v47 = vsel %vm2739_vm11, %v1293_v61, %v2738_v16  ;;  %v1286_v32 = vsel %vm2741_vm4, %v1282_v48, %v2740_v4  ;;  %vm2752_vm8 = vmmov %vm2736_vm3 }
0x132b   : > { %v1290_v26 = vsel %vm2745_vm5, %v1286_v32, %v2744_v52  ;;  %vm2757_vm12 = vmmov %vm2743_vm14 }
0x132c   : > { %v1294_v58 = vsel %vm2749_vm6, %v1290_v26, %v2748_v31  ;;  %vm2759_vm2 = vmmov %vm2747_vm0 }
0x132d   : > { %v1298_v54 = vsel %vm2754_vm15, %v1294_v58, %v2753_v25  ;;  %vm2761_vm1 = vmmov %vm2751_vm9 }
0x132e   : > { %v1302_v60 = vsel %vm2757_vm12, %v1298_v54, %v2756_v27  ;;  %vm2763_vm11 = vmmov %vm2736_vm3 }
0x132f   : > { %v1306_v21 = vsel %vm2759_vm2, %v1302_v60, %v2758_v56  ;;  %vm2764_vm4 = vmmov %vm2736_vm3 }
0x1330   : > { %v1310_v38 = vsel %vm2761_vm1, %v1306_v21, %v2760_v20 }
0x13a8   : > { %v1177_v39 = vpop.xlane.xlu0 %1176 }
0x13a9   : > { %v1320_v29 = vsel %vm1254_vm10, %v2485_v55, %v1177_v39  ;;  %v1301_v55 = vsel %vm2743_vm14, %v1297_v47, %v2742_v57  ;;  %vm2765_vm14 = vmmov %vm2736_vm3 }
0x13aa   : > { %1324 = vst.msk [vmem:[#allocation3 + $0x8] sm:$0xff] %vm2736_vm3, %v1320_v29  ;;  %v1305_v23 = vsel %vm2747_vm0, %v1301_v55, %v2746_v5 }
0x13ab   : > { %v1309_v30 = vsel %vm2751_vm9, %v1305_v23, %v2750_v8 }
0x13ac   : > { %v1174_v28 = vpop.xlane.xlu1 %1173  ;;  %v1313_v62 = vsel %vm1244_vm7, %v1309_v30, %v2755_v13 }
0x13ad   : > { %v1319_v3 = vsel %vm1254_vm10, %v2491_v37, %v1174_v28  ;;  %v1317_v37 = vsel %vm1249_vm13, %v1313_v62, %v2494_v53  ;;  %v1314_v53 = vsel %vm1244_vm7, %v1310_v38, %v2762_v33  ;;  %vm2766_vm7 = vmmov %vm2736_vm3 }
0x13ae   : > { %1323 = vst.msk [vmem:[#allocation3] sm:$0xff] %vm2752_vm8, %v1319_v3  ;;  %v1318_v36 = vsel %vm1249_vm13, %v1314_v53, %v2501_v10  ;;  %vm2767_vm13 = vmmov %vm2736_vm3 }
0x13b0   : > { %v1180_v9 = vpop.xlane.xlu1 %1179 }
0x13b1   : > { %v1331_v2 = vld [vmem:[#allocation3 + $0x8] sm:$0xff]  ;;  %v1321_v46 = vsel %vm1254_vm10, %v1317_v37, %v1180_v9 }
0x13b2   : > { %v1527_v12 = vtrunc.f32 %v1331_v2  ;;  %1325 = vst.msk [vmem:[#allocation3 + $0x10] sm:$0xff] %vm2736_vm3, %v1321_v46 }
0x13b4   : > { %v1528_v41 = vcvt.f32.s32 %v1527_v12  ;;  %v1183_v59 = vpop.xlane.xlu0 %1182 }
0x13b5   : > { %v1330_v17 = vld [vmem:[#allocation3] sm:$0xff]  ;;  %v1322_v44 = vsel %vm1254_vm10, %v1318_v36, %v1183_v59 }
0x13b6   : > { %1339 = vst.msk [vmem:[%s276_s29 + $0x8] sm:$0xff] %vm2763_vm11, %v1528_v41  ;;  %v1525_v40 = vtrunc.f32 %v1330_v17 }
0x13b7   : > { %1326 = vst.msk [vmem:[#allocation3 + $0x18] sm:$0xff] %vm2764_vm4, %v1322_v44 }
0x13b8   : > { %v1526_v45 = vcvt.f32.s32 %v1525_v40 }
0x13b9   : > { %v1332_v0 = vld [vmem:[#allocation3 + $0x10] sm:$0xff] }
0x13ba   : > { %1338 = vst.msk [vmem:[%s276_s29] sm:$0xff] %vm2765_vm14, %v1526_v45  ;;  %v1529_v22 = vtrunc.f32 %v1332_v0 }
0x13bc   : > { %v1530_v19 = vcvt.f32.s32 %v1529_v22 }
0x13be   : > { %v1333_v63 = vld [vmem:[#allocation3 + $0x18] sm:$0xff]  ;;  %1340 = vst.msk [vmem:[%s276_s29 + $0x10] sm:$0xff] %vm2766_vm7, %v1530_v19 }
0x13bf   : > { %v1531_v10 = vtrunc.f32 %v1333_v63 }
0x13c1   : > { %v1532_v24 = vcvt.f32.s32 %v1531_v10 }
0x13c3   : > { %1341 = vst.msk [vmem:[%s276_s29 + $0x18] sm:$0xff] %vm2767_vm13, %v1532_v24 }
0x13c4 PF: > { %s13_s14 = sadd.s32 1, %s1582_s14   ;;  %s2768_s12 = smov %s1578_s13 }
0x13c5   : > { %p10_p5 = scmp.ge.s32.totalorder %s13_s14, 4   ;;  %s2769_s13 = smov %s2771_s15 }
0x13c7   :  { %12 = sbr.rel (!%p10_p5) target bundleno = 2 (0x2), region = 76 }

// kernel: feature_extraction_forward.12
= control target key start
LH: loop header
LB: loop body
LE: loop exit
PB: predicated region body
PF: predicated region fallthrough
CT: control target
= control target key end

     0   :  { %s3005_s30 = smov 0   ;;  %s3007_s10 = smov 0   ;;  %s3507_s0 = inlined_call_operand.vmem [shape: f32[2,1,32,32], index: 0, kind: input, shape index: {}]   ;;  %s3508_s1 = inlined_call_operand.vmem [shape: bf16[2,16,32,32], index: 1, kind: input, shape index: {}]   ;;  %s3509_s2 = inlined_call_operand.vmem [shape: bf16[32,128], index: 2, kind: input, shape index: {}]   ;;  %s3510_s3 = inlined_call_operand.vmem [shape: bf16[32,128], index: 3, kind: input, shape index: {}]   ;;  %s3511_s4 = inlined_call_operand.vmem [shape: f32[1,128], index: 4, kind: input, shape index: {}]   ;;  %s3512_s5 = inlined_call_operand.vmem [shape: bf16[128,128], index: 5, kind: input, shape index: {}]   ;;  %s3513_s6 = inlined_call_operand.vmem [shape: f32[1,128], index: 6, kind: input, shape index: {}]   ;;  %s3514_s7 = inlined_call_operand.vmem [shape: bf16[128,32], index: 7, kind: input, shape index: {}]   ;;  %s3515_s8 = inlined_call_operand.vmem [shape: f32[1,32], index: 8, kind: input, shape index: {}]   ;;  %s3516_s9 = inlined_call_operand.vmem [shape: f32[2,1,32,32], index: 9, kind: output, shape index: {}]  }
   0x1   :  { %s3009_s11 = smov 0  }
   0x2 LB: > { %s38_s12 = sadd.s32 1, %s2949_s10  ;;  %p2392_p0 = scmp.ge.s32.totalorder %s2953_s11, 1  ;;  %s2953_s11 = sphi %s3009_s11, %s19_s11   ;;  %s2949_s10 = sphi %s3007_s10, %s3518_s10   ;;  %s2945_s30 = sphi %s3005_s30, %s3517_s30  }
   0x3   : > { %p40_p1 = scmp.ge.s32.totalorder %s38_s12, 2  ;;  %p340_p2 = scmp.lt.s32.totalorder %s2953_s11, 3 }
   0x5   : > { %s3520_s12 = smov (%p40_p1, %s38_s12), 0  ;;  %p341_p3 = pnand %p2392_p0, %p340_p2 }
   0x6   : > { %v2875_v0 = vld [vmem:[%s3509_s2] sm:$0xff] (!%p341_p3)   ;;  %p402_p4 = scmp.lt.s32.totalorder (!%p341_p3), %s2945_s30, 1  ;;  %v2877_v2 = vld [vmem:[%s3509_s2 + $0x8] sm:$0xff] (!%p341_p3)   ;;  %vm469_vm0 = vcmask (!%p341_p3), 261120   ;;  %v2913_v32 = vld [vmem:[%s3512_s5 + $0x10] sm:$0xff] (!%p341_p3)  }
   0x7   : > { %344 = sbr.rel (%p341_p3) target bundleno = 816 (0x330), region = 56  ;;  %v2876_v1 = vld [vmem:[%s3510_s3] sm:$0xff] (!%p341_p3)   ;;  %2611 = vmatprep.subr.bf16.mxu0 (!%p341_p3), %v2875_v0  ;;  %v2878_v3 = vld [vmem:[%s3510_s3 + $0x8] sm:$0xff] (!%p341_p3)   ;;  %v2914_v33 = vld [vmem:[%s3512_s5 + $0x18] sm:$0xff] (!%p341_p3)  }
   0x8   : > { %2847 = vmatprep.subr.bf16.mxu1 (!%p341_p3), %v2876_v1  ;;  %2612 = vmatpush3.bf16.msra.mxu0 (!%p341_p3), %v2875_v0  ;;  %v2911_v14 = vld [vmem:[%s3512_s5] sm:$0xff] (!%p341_p3)   ;;  %v2912_v30 = vld [vmem:[%s3512_s5 + $0x8] sm:$0xff] (!%p341_p3)   ;;  %v2917_v48 = vld [vmem:[%s3512_s5 + $0x30] sm:$0xff] (!%p341_p3)  }
   0x9   : > { %2849 = vmatpush3.bf16.msra.mxu1 (!%p341_p3), %v2876_v1  ;;  %2613 = vmatprep.subr.bf16.mxu0 (!%p341_p3), %v2877_v2  ;;  %v2915_v38 = vld [vmem:[%s3512_s5 + $0x20] sm:$0xff] (!%p341_p3)   ;;  %v2916_v39 = vld [vmem:[%s3512_s5 + $0x28] sm:$0xff] (!%p341_p3)   ;;  %v2918_v49 = vld [vmem:[%s3512_s5 + $0x38] sm:$0xff] (!%p341_p3)  }
   0xa   : > { %2848 = vmatprep.subr.bf16.mxu1 (!%p341_p3), %v2878_v3  ;;  %v2399_v50 = vld [vmem:[%s3511_s4] ss:$0 sm:$0xff] (!%p341_p3) }
   0xc   : > { %2614 = vmatpush3.bf16.msra.mxu0 (!%p341_p3), %v2877_v2 }
   0xd   : > { %2850 = vmatpush3.bf16.msra.mxu1 (!%p341_p3), %v2878_v3  ;;  %2619 = vmatprep.subr.bf16.mxu0 (!%p341_p3), %v2876_v1 }
   0xe   : > { %s3522_s30 = smov (!%p402_p4, %s2945_s30), 1 }
   0xf   : > { %s2490_s21 = sshll.u32 %s3522_s30, 5  ;;  %s2491_s22 = sshll.u32 %s3522_s30, 8 }
  0x10   : > { %s3044_s25 = scalar_lea.vmem %s3507_s0, %s2490_s21  ;;  %s3049_s28 = scalar_lea.vmem %s3508_s1, %s2491_s22 }
  0x11   : > { %v440_v4 = vld [vmem:[%s3044_s25] sm:$0xff]  ;;  %v441_v5 = vld [vmem:[%s3044_s25 + $0x8] sm:$0xff]  ;;  %v2879_v7 = vld [vmem:[%s3049_s28 + $0x70] sm:$0xff]   ;;  %s437_s23 = scalar_lea.vmem %s3516_s9, %s2490_s21 }
  0x12   : > { %v444_v6 = vpack.c.bf16 %v441_v5, %v440_v4  ;;  %v442_v8 = vld [vmem:[%s3044_s25 + $0x10] sm:$0xff]  ;;  %v443_v9 = vld [vmem:[%s3044_s25 + $0x18] sm:$0xff]  ;;  %2651 = vmatprep.mubr.msk.bf16.mxu1 %vm469_vm0, %v2879_v7  ;;  %v2881_v12 = vld [vmem:[%s3049_s28] sm:$0xff]  }
  0x13   : > { %v445_v10 = vpack.c.bf16 %v443_v9, %v442_v8  ;;  %v2880_v11 = vld [vmem:[%s3049_s28 + $0x78] sm:$0xff]   ;;  %v2882_v13 = vld [vmem:[%s3049_s28 + $0x80] sm:$0xff]   ;;  %v2883_v15 = vld [vmem:[%s3049_s28 + $0x8] sm:$0xff]  }
  0x14   : > { %2615 = vmatprep.mubr.msk.bf16.mxu0 %vm469_vm0, %v444_v6  ;;  %2652 = vmatmul.mubr.msk.bf16.vlgmr.msra.gmra.mrb[0].mxu1 %vm469_vm0, %v2880_v11  ;;  %v2884_v16 = vld [vmem:[%s3049_s28 + $0x88] sm:$0xff]   ;;  %v2885_v17 = vld [vmem:[%s3049_s28 + $0x10] sm:$0xff]   ;;  %v2887_v19 = vld [vmem:[%s3049_s28 + $0x18] sm:$0xff]  }
  0x15   : > { %2616 = vmatmul.mubr.msk.bf16.vlgmr.msra.gmra.mrb[0].mxu0 %vm469_vm0, %v445_v10  ;;  %2655 = vmatprep.mubr.msk.bf16.mxu1 %vm469_vm0, %v2882_v13  ;;  %v2886_v18 = vld [vmem:[%s3049_s28 + $0x90] sm:$0xff]   ;;  %v2888_v20 = vld [vmem:[%s3049_s28 + $0x98] sm:$0xff]   ;;  %v2889_v21 = vld [vmem:[%s3049_s28 + $0x20] sm:$0xff]  }
  0x16   : > { %2620 = vmatpush3.bf16.msra.mxu0 %v2876_v1  ;;  %2623 = vmatprep.mubr.msk.bf16.mxu0 %vm469_vm0, %v2881_v12  ;;  %v2890_v22 = vld [vmem:[%s3049_s28 + $0xa0] sm:$0xff]   ;;  %v2891_v23 = vld [vmem:[%s3049_s28 + $0x28] sm:$0xff]   ;;  %v2893_v25 = vld [vmem:[%s3049_s28 + $0x30] sm:$0xff]  }
  0x17   : > { %2621 = vmatprep.subr.bf16.mxu0 %v2878_v3  ;;  %v2892_v24 = vld [vmem:[%s3049_s28 + $0xa8] sm:$0xff]   ;;  %v2894_v26 = vld [vmem:[%s3049_s28 + $0xb0] sm:$0xff]   ;;  %v2895_v27 = vld [vmem:[%s3049_s28 + $0x38] sm:$0xff]  }
  0x18   : > { %v2896_v28 = vld [vmem:[%s3049_s28 + $0xb8] sm:$0xff]   ;;  %v2897_v29 = vld [vmem:[%s3049_s28 + $0x40] sm:$0xff]   ;;  %v2899_v34 = vld [vmem:[%s3049_s28 + $0x48] sm:$0xff]  }
  0x19   : > { %v2898_v31 = vld [vmem:[%s3049_s28 + $0xc0] sm:$0xff]   ;;  %v2900_v35 = vld [vmem:[%s3049_s28 + $0xc8] sm:$0xff]   ;;  %v2901_v36 = vld [vmem:[%s3049_s28 + $0x50] sm:$0xff]  }
  0x1a   : > { %2622 = vmatpush3.bf16.msra.mxu0 %v2878_v3  ;;  %v2902_v37 = vld [vmem:[%s3049_s28 + $0xd0] sm:$0xff]   ;;  %v2903_v40 = vld [vmem:[%s3049_s28 + $0x58] sm:$0xff]   ;;  %v2905_v42 = vld [vmem:[%s3049_s28 + $0x60] sm:$0xff]  }
  0x1b   : > { %2687 = vmatprep.subr.bf16.mxu0 %v2911_v14  ;;  %v2904_v41 = vld [vmem:[%s3049_s28 + $0xd8] sm:$0xff]   ;;  %v2906_v43 = vld [vmem:[%s3049_s28 + $0xe0] sm:$0xff]   ;;  %v2907_v44 = vld [vmem:[%s3049_s28 + $0x68] sm:$0xff]  }
  0x1c   : > { %2656 = vmatmul.mubr.msk.bf16.gmra.mrb[4].mxu1 %vm469_vm0, %v2884_v16  ;;  %v2908_v45 = vld [vmem:[%s3049_s28 + $0xe8] sm:$0xff]   ;;  %v2909_v46 = vld [vmem:[%s3049_s28 + $0xf0] sm:$0xff]   ;;  %v2910_v47 = vld [vmem:[%s3049_s28 + $0xf8] sm:$0xff]  }
  0x1d   : > { %2624 = vmatmul.mubr.msk.bf16.vlgmr.msra.gmra.mrb[4].mxu0 %vm469_vm0, %v2883_v15  ;;  %2659 = vmatprep.mubr.msk.bf16.mxu1 %vm469_vm0, %v2886_v18 }
  0x1e   : > { %2627 = vmatprep.mubr.msk.bf16.mxu0 %vm469_vm0, %v2885_v17  ;;  %2688 = vmatpush3.bf16.msra.mxu0 %v2911_v14 }
  0x1f   : > { %2689 = vmatprep.subr.bf16.mxu0 %v2912_v30 }
  0x22   : > { %2690 = vmatpush3.bf16.msra.mxu0 %v2912_v30 }
  0x23   : > { %2691 = vmatprep.subr.bf16.mxu0 %v2913_v32 }
  0x24   : > { %2660 = vmatmul.mubr.msk.bf16.gmra.mrb[8].mxu1 %vm469_vm0, %v2888_v20 }
  0x25   : > { %2628 = vmatmul.mubr.msk.bf16.gmra.mrb[8].mxu0 %vm469_vm0, %v2887_v19  ;;  %2663 = vmatprep.mubr.msk.bf16.mxu1 %vm469_vm0, %v2890_v22 }
  0x26   : > { %2631 = vmatprep.mubr.msk.bf16.mxu0 %vm469_vm0, %v2889_v21  ;;  %2692 = vmatpush3.bf16.msra.mxu0 %v2913_v32 }
  0x27   : > { %2693 = vmatprep.subr.bf16.mxu0 %v2914_v33 }
  0x2a   : > { %2694 = vmatpush3.bf16.msra.mxu0 %v2914_v33 }
  0x2b   : > { %2695 = vmatprep.subr.bf16.mxu0 %v2915_v38 }
  0x2c   : > { %2664 = vmatmul.mubr.msk.bf16.gmra.mrb[12].mxu1 %vm469_vm0, %v2892_v24  ;;  %v2920_v24 = vld [vmem:[%s3514_s7 + $0x8] sm:$0xff]  }
  0x2d   : > { %2632 = vmatmul.mubr.msk.bf16.gmra.mrb[12].mxu0 %vm469_vm0, %v2891_v23  ;;  %2667 = vmatprep.mubr.msk.bf16.mxu1 %vm469_vm0, %v2894_v26  ;;  %v2919_v23 = vld [vmem:[%s3514_s7] sm:$0xff]  }
  0x2e   : > { %2635 = vmatprep.mubr.msk.bf16.mxu0 %vm469_vm0, %v2893_v25  ;;  %2696 = vmatpush3.bf16.msra.mxu0 %v2915_v38 }
  0x2f   : > { %2697 = vmatprep.subr.bf16.mxu0 %v2916_v39  ;;  %2767 = vmatprep.subr.bf16.mxu1 %v2919_v23 }
  0x30   : > { %2768 = vmatpush3.bf16.msra.mxu1 %v2919_v23 }
  0x31   : > { %2769 = vmatprep.subr.bf16.mxu1 %v2920_v24 }
  0x32   : > { %2698 = vmatpush3.bf16.msra.mxu0 %v2916_v39 }
  0x33   : > { %2699 = vmatprep.subr.bf16.mxu0 %v2917_v48 }
  0x34   : > { %2668 = vmatmul.mubr.msk.bf16.gmra.mrb[16].mxu1 %vm469_vm0, %v2896_v28 }
  0x35   : > { %2636 = vmatmul.mubr.msk.bf16.gmra.mrb[16].mxu0 %vm469_vm0, %v2895_v27  ;;  %2671 = vmatprep.mubr.msk.bf16.mxu1 %vm469_vm0, %v2898_v31 }
  0x36   : > { %2639 = vmatprep.mubr.msk.bf16.mxu0 %vm469_vm0, %v2897_v29  ;;  %2700 = vmatpush3.bf16.msra.mxu0 %v2917_v48 }
  0x37   : > { %2701 = vmatprep.subr.bf16.mxu0 %v2918_v49  ;;  %2770 = vmatpush3.bf16.msra.mxu1 %v2920_v24 }
  0x3a   : > { %2702 = vmatpush3.bf16.msra.mxu0 %v2918_v49 }
  0x3c   : > { %2672 = vmatmul.mubr.msk.bf16.gmra.mrb[20].mxu1 %vm469_vm0, %v2900_v35 }
  0x3d   : > { %2640 = vmatmul.mubr.msk.bf16.gmra.mrb[20].mxu0 %vm469_vm0, %v2899_v34  ;;  %2675 = vmatprep.mubr.msk.bf16.mxu1 %vm469_vm0, %v2902_v37  ;;  %v2921_v37 = vld [vmem:[%s3514_s7 + $0x10] sm:$0xff]  }
  0x3e   : > { %2643 = vmatprep.mubr.msk.bf16.mxu0 %vm469_vm0, %v2901_v36  ;;  %2771 = vmatprep.subr.bf16.mxu1 %v2921_v37 }
  0x3f   : > { %2772 = vmatpush3.bf16.msra.mxu1 %v2921_v37 }
  0x44   : > { %2676 = vmatmul.mubr.msk.bf16.gmra.mrb[24].mxu1 %vm469_vm0, %v2904_v41 }
  0x45   : > { %2644 = vmatmul.mubr.msk.bf16.gmra.mrb[24].mxu0 %vm469_vm0, %v2903_v40  ;;  %2679 = vmatprep.mubr.msk.bf16.mxu1 %vm469_vm0, %v2906_v43 }
  0x46   : > { %2647 = vmatprep.mubr.msk.bf16.mxu0 %vm469_vm0, %v2905_v42 }
  0x4c   : > { %2680 = vmatmul.mubr.msk.bf16.gmra.mrb[28].mxu1 %vm469_vm0, %v2908_v45 }
  0x4d   : > { %2648 = vmatmul.mubr.msk.bf16.gmra.mrb[28].mxu0 %vm469_vm0, %v2907_v44  ;;  %2683 = vmatprep.mubr.msk.bf16.mxu1 %vm469_vm0, %v2909_v46 }
  0x54   : > { %2684 = vmatmul.mubr.msk.bf16.gmra.mrb[32].mxu1 %vm469_vm0, %v2910_v47 }
  0xe7   : > { %v2653_v52 = vpop.f32.mrb[0].mxu1 }
  0xe8   : > { %v2617_v51 = vpop.f32.mrb[0].mxu0  ;;  %v1007_v55 = vpop.f32.mrb[1].mxu1 }
  0xe9   : > { %v3148_v53 = vadd.f32 %v2617_v51, %v2399_v50  ;;  %v510_v54 = vpop.f32.mrb[1].mxu0  ;;  %v2654_v58 = vpop.f32.mrb[2].mxu1 }
  0xea   : > { %v3150_v56 = vadd.f32 %v2399_v50, %v510_v54  ;;  %v2618_v57 = vpop.f32.mrb[2].mxu0  ;;  %v1010_v62 = vpop.f32.mrb[3].mxu1 }
  0xeb   : > { %v3152_v59 = vadd.f32 %v2618_v57, %v2399_v50  ;;  %v1180_v60 = vadd.f32 %v2653_v52, %v3148_v53  ;;  %v513_v61 = vpop.f32.mrb[3].mxu0 }
  0xec   : > { %v3155_v63 = vadd.f32 %v2399_v50, %v513_v61  ;;  %v1178_v0 = vadd.f32 %v1007_v55, %v3150_v56  ;;  %v2922_v55 = vld [vmem:[%s3514_s7 + $0x18] sm:$0xff]  }
  0xed   : > { %v1181_v1 = vadd.f32 %v2654_v58, %v3152_v59  ;;  %v1244_v3 = vmax.f32 %v1180_v60, 0.0  ;;  %2773 = vmatprep.subr.bf16.mxu1 %v2922_v55 }
  0xee   : > { %v1179_v2 = vadd.f32 %v1010_v62, %v3155_v63  ;;  %v1242_v5 = vmax.f32 %v1178_v0, 0.0  ;;  %2774 = vmatpush3.bf16.msra.mxu1 %v2922_v55 }
  0xef   : > { %v1245_v4 = vmax.f32 %v1181_v1, 0.0  ;;  %v2657_v8 = vpop.f32.mrb[4].mxu1 }
  0xf0   : > { %v1243_v6 = vmax.f32 %v1179_v2, 0.0  ;;  %v2625_v7 = vpop.f32.mrb[4].mxu0  ;;  %v1184_v11 = vadd.f32 %v2657_v8, %v3148_v53  ;;  %v1023_v13 = vpop.f32.mrb[5].mxu1 }
  0xf1   : > { %v3160_v9 = vpack.c.bf16 %v1245_v4, %v1244_v3  ;;  %v1152_v10 = vadd.f32 %v2625_v7, %v3148_v53  ;;  %v895_v12 = vpop.f32.mrb[5].mxu0  ;;  %v1182_v16 = vadd.f32 %v1023_v13, %v3150_v56  ;;  %v2658_v18 = vpop.f32.mrb[6].mxu1  ;;  %v2923_v7 = vld [vmem:[%s3514_s7 + $0x20] sm:$0xff]  }
  0xf2   : > { %v3164_v14 = vpack.c.bf16 %v1243_v6, %v1242_v5  ;;  %v1150_v15 = vadd.f32 %v895_v12, %v3150_v56  ;;  %v2626_v17 = vpop.f32.mrb[6].mxu0  ;;  %v1185_v20 = vadd.f32 %v2658_v18, %v3152_v59  ;;  %v1026_v22 = vpop.f32.mrb[7].mxu1  ;;  %v1248_v28 = vmax.f32 %v1184_v11, 0.0  ;;  %2775 = vmatprep.subr.bf16.mxu1 %v2923_v7 }
  0xf3   : > { %v1153_v19 = vadd.f32 %v2626_v17, %v3152_v59  ;;  %v898_v21 = vpop.f32.mrb[7].mxu0  ;;  %v1183_v26 = vadd.f32 %v1026_v22, %v3155_v63  ;;  %v1216_v27 = vmax.f32 %v1152_v10, 0.0  ;;  %v1246_v32 = vmax.f32 %v1182_v16, 0.0  ;;  %2776 = vmatpush3.bf16.msra.mxu1 %v2923_v7 }
  0xf4   : > { %v1151_v25 = vadd.f32 %v898_v21, %v3155_v63  ;;  %v1249_v30 = vmax.f32 %v1185_v20, 0.0  ;;  %v1214_v31 = vmax.f32 %v1150_v15, 0.0 }
  0xf5   : > { %v1217_v29 = vmax.f32 %v1153_v19, 0.0  ;;  %v1247_v34 = vmax.f32 %v1183_v26, 0.0  ;;  %v2924_v26 = vld [vmem:[%s3514_s7 + $0x28] sm:$0xff]  }
  0xf6   : > { %v1215_v33 = vmax.f32 %v1151_v25, 0.0  ;;  %v3178_v36 = vpack.c.bf16 %v1249_v30, %v1248_v28  ;;  %2777 = vmatprep.subr.bf16.mxu1 %v2924_v26 }
  0xf7   : > { %v1279_v35 = vpack.c.bf16 %v1217_v29, %v1216_v27  ;;  %v3183_v39 = vpack.c.bf16 %v1247_v34, %v1246_v32  ;;  %v2661_v41 = vpop.f32.mrb[8].mxu1  ;;  %2778 = vmatpush3.bf16.msra.mxu1 %v2924_v26 }
  0xf8   : > { %v1278_v38 = vpack.c.bf16 %v1215_v33, %v1214_v31  ;;  %v2629_v40 = vpop.f32.mrb[8].mxu0  ;;  %v1188_v43 = vadd.f32 %v2661_v41, %v3148_v53  ;;  %v1039_v45 = vpop.f32.mrb[9].mxu1  ;;  %v2925_v41 = vld [vmem:[%s3514_s7 + $0x30] sm:$0xff]  }
  0xf9   : > { %v1156_v42 = vadd.f32 %v2629_v40, %v3148_v53  ;;  %v911_v44 = vpop.f32.mrb[9].mxu0  ;;  %v1186_v47 = vadd.f32 %v1039_v45, %v3150_v56  ;;  %v2662_v49 = vpop.f32.mrb[10].mxu1  ;;  %2779 = vmatprep.subr.bf16.mxu1 %v2925_v41 }
  0xfa   : > { %v1154_v46 = vadd.f32 %v911_v44, %v3150_v56  ;;  %v2630_v48 = vpop.f32.mrb[10].mxu0  ;;  %2703 = vmatprep.mubr.bf16.mxu0 %v1278_v38  ;;  %v1189_v51 = vadd.f32 %v2662_v49, %v3152_v59  ;;  %v1042_v54 = vpop.f32.mrb[11].mxu1  ;;  %v1252_v61 = vmax.f32 %v1188_v43, 0.0 }
  0xfb   : > { %v1157_v50 = vadd.f32 %v2630_v48, %v3152_v59  ;;  %v914_v52 = vpop.f32.mrb[11].mxu0  ;;  %2704 = vmatmul.mubr.bf16.vlgmr.msra.gmra.mrb[32].mxu0 %v1279_v35  ;;  %v1187_v58 = vadd.f32 %v1042_v54, %v3155_v63  ;;  %v1220_v60 = vmax.f32 %v1156_v42, 0.0  ;;  %v1250_v2 = vmax.f32 %v1186_v47, 0.0  ;;  %2780 = vmatpush3.bf16.msra.mxu1 %v2925_v41 }
  0xfc   : > { %v1155_v57 = vadd.f32 %v914_v52, %v3155_v63  ;;  %v1253_v0 = vmax.f32 %v1189_v51, 0.0  ;;  %v1218_v1 = vmax.f32 %v1154_v46, 0.0 }
  0xfd   : > { %v1221_v62 = vmax.f32 %v1157_v50, 0.0  ;;  %v1251_v4 = vmax.f32 %v1187_v58, 0.0 }
  0xfe   : > { %v1219_v3 = vmax.f32 %v1155_v57, 0.0  ;;  %v3196_v6 = vpack.c.bf16 %v1253_v0, %v1252_v61 }
  0xff   : > { %v1281_v5 = vpack.c.bf16 %v1221_v62, %v1220_v60  ;;  %v3201_v10 = vpack.c.bf16 %v1251_v4, %v1250_v2  ;;  %v2665_v12 = vpop.f32.mrb[12].mxu1 }
 0x100   : > { %v1280_v8 = vpack.c.bf16 %v1219_v3, %v1218_v1  ;;  %v2633_v11 = vpop.f32.mrb[12].mxu0  ;;  %v1192_v15 = vadd.f32 %v2665_v12, %v3148_v53  ;;  %v1055_v17 = vpop.f32.mrb[13].mxu1 }
 0x101   : > { %v1160_v13 = vadd.f32 %v2633_v11, %v3148_v53  ;;  %v927_v16 = vpop.f32.mrb[13].mxu0  ;;  %v1190_v19 = vadd.f32 %v1055_v17, %v3150_v56  ;;  %v2666_v21 = vpop.f32.mrb[14].mxu1 }
 0x102   : > { %v1158_v18 = vadd.f32 %v927_v16, %v3150_v56  ;;  %v2634_v20 = vpop.f32.mrb[14].mxu0  ;;  %2707 = vmatprep.mubr.bf16.mxu0 %v1280_v8  ;;  %v1193_v23 = vadd.f32 %v2666_v21, %v3152_v59  ;;  %v1058_v25 = vpop.f32.mrb[15].mxu1  ;;  %v1256_v30 = vmax.f32 %v1192_v15, 0.0 }
 0x103   : > { %v1161_v22 = vadd.f32 %v2634_v20, %v3152_v59  ;;  %v930_v24 = vpop.f32.mrb[15].mxu0  ;;  %2708 = vmatmul.mubr.bf16.gmra.mrb[36].mxu0 %v1281_v5  ;;  %v1191_v28 = vadd.f32 %v1058_v25, %v3155_v63  ;;  %v1224_v29 = vmax.f32 %v1160_v13, 0.0  ;;  %v1254_v34 = vmax.f32 %v1190_v19, 0.0 }
 0x104   : > { %v1159_v27 = vadd.f32 %v930_v24, %v3155_v63  ;;  %v1257_v32 = vmax.f32 %v1193_v23, 0.0  ;;  %v1222_v33 = vmax.f32 %v1158_v18, 0.0 }
 0x105   : > { %v1225_v31 = vmax.f32 %v1161_v22, 0.0  ;;  %v1255_v37 = vmax.f32 %v1191_v28, 0.0 }
 0x106   : > { %v1223_v35 = vmax.f32 %v1159_v27, 0.0  ;;  %v3214_v40 = vpack.c.bf16 %v1257_v32, %v1256_v30 }
 0x107   : > { %v1283_v38 = vpack.c.bf16 %v1225_v31, %v1224_v29  ;;  %v3219_v43 = vpack.c.bf16 %v1255_v37, %v1254_v34  ;;  %v2669_v45 = vpop.f32.mrb[16].mxu1 }
 0x108   : > { %v1282_v42 = vpack.c.bf16 %v1223_v35, %v1222_v33  ;;  %v2637_v44 = vpop.f32.mrb[16].mxu0  ;;  %v1196_v47 = vadd.f32 %v2669_v45, %v3148_v53  ;;  %v1071_v49 = vpop.f32.mrb[17].mxu1 }
 0x109   : > { %v1164_v46 = vadd.f32 %v2637_v44, %v3148_v53  ;;  %v943_v48 = vpop.f32.mrb[17].mxu0  ;;  %v1194_v51 = vadd.f32 %v1071_v49, %v3150_v56  ;;  %v2670_v54 = vpop.f32.mrb[18].mxu1 }
 0x10a   : > { %v1162_v50 = vadd.f32 %v943_v48, %v3150_v56  ;;  %v2638_v52 = vpop.f32.mrb[18].mxu0  ;;  %2711 = vmatprep.mubr.bf16.mxu0 %v1282_v42  ;;  %v1197_v57 = vadd.f32 %v2670_v54, %v3152_v59  ;;  %v1074_v60 = vpop.f32.mrb[19].mxu1  ;;  %v1260_v1 = vmax.f32 %v1196_v47, 0.0 }
 0x10b   : > { %v1165_v55 = vadd.f32 %v2638_v52, %v3152_v59  ;;  %v946_v58 = vpop.f32.mrb[19].mxu0  ;;  %2712 = vmatmul.mubr.bf16.gmra.mrb[40].mxu0 %v1283_v38  ;;  %v1195_v62 = vadd.f32 %v1074_v60, %v3155_v63  ;;  %v1228_v0 = vmax.f32 %v1164_v46, 0.0  ;;  %v1258_v5 = vmax.f32 %v1194_v51, 0.0 }
 0x10c   : > { %v1163_v61 = vadd.f32 %v946_v58, %v3155_v63  ;;  %v1261_v3 = vmax.f32 %v1197_v57, 0.0  ;;  %v1226_v4 = vmax.f32 %v1162_v50, 0.0 }
 0x10d   : > { %v1229_v2 = vmax.f32 %v1165_v55, 0.0  ;;  %v1259_v8 = vmax.f32 %v1195_v62, 0.0 }
 0x10e   : > { %v1227_v7 = vmax.f32 %v1163_v61, 0.0  ;;  %v3229_v12 = vpack.c.bf16 %v1261_v3, %v1260_v1 }
 0x10f   : > { %v1285_v11 = vpack.c.bf16 %v1229_v2, %v1228_v0  ;;  %v3231_v15 = vpack.c.bf16 %v1259_v8, %v1258_v5  ;;  %v2673_v17 = vpop.f32.mrb[20].mxu1 }
 0x110   : > { %v1284_v13 = vpack.c.bf16 %v1227_v7, %v1226_v4  ;;  %v2641_v16 = vpop.f32.mrb[20].mxu0  ;;  %v1200_v19 = vadd.f32 %v2673_v17, %v3148_v53  ;;  %v1087_v21 = vpop.f32.mrb[21].mxu1 }
 0x111   : > { %v1168_v18 = vadd.f32 %v2641_v16, %v3148_v53  ;;  %v959_v20 = vpop.f32.mrb[21].mxu0  ;;  %v1198_v23 = vadd.f32 %v1087_v21, %v3150_v56  ;;  %v2674_v25 = vpop.f32.mrb[22].mxu1 }
 0x112   : > { %v1166_v22 = vadd.f32 %v959_v20, %v3150_v56  ;;  %v2642_v24 = vpop.f32.mrb[22].mxu0  ;;  %2715 = vmatprep.mubr.bf16.mxu0 %v1284_v13  ;;  %v1201_v27 = vadd.f32 %v2674_v25, %v3152_v59  ;;  %v1090_v29 = vpop.f32.mrb[23].mxu1  ;;  %v1264_v33 = vmax.f32 %v1200_v19, 0.0 }
 0x113   : > { %v1169_v26 = vadd.f32 %v2642_v24, %v3152_v59  ;;  %v962_v28 = vpop.f32.mrb[23].mxu0  ;;  %2716 = vmatmul.mubr.bf16.gmra.mrb[44].mxu0 %v1285_v11  ;;  %v1199_v31 = vadd.f32 %v1090_v29, %v3155_v63  ;;  %v1232_v32 = vmax.f32 %v1168_v18, 0.0  ;;  %v1262_v38 = vmax.f32 %v1198_v23, 0.0 }
 0x114   : > { %v1167_v30 = vadd.f32 %v962_v28, %v3155_v63  ;;  %v1265_v35 = vmax.f32 %v1201_v27, 0.0  ;;  %v1230_v37 = vmax.f32 %v1166_v22, 0.0 }
 0x115   : > { %v1233_v34 = vmax.f32 %v1169_v26, 0.0  ;;  %v1263_v42 = vmax.f32 %v1199_v31, 0.0 }
 0x116   : > { %v1231_v41 = vmax.f32 %v1167_v30, 0.0  ;;  %v3241_v45 = vpack.c.bf16 %v1265_v35, %v1264_v33 }
 0x117   : > { %v1287_v44 = vpack.c.bf16 %v1233_v34, %v1232_v32  ;;  %v3243_v47 = vpack.c.bf16 %v1263_v42, %v1262_v38  ;;  %v2677_v49 = vpop.f32.mrb[24].mxu1 }
 0x118   : > { %v1286_v46 = vpack.c.bf16 %v1231_v41, %v1230_v37  ;;  %v2645_v48 = vpop.f32.mrb[24].mxu0  ;;  %v1204_v51 = vadd.f32 %v2677_v49, %v3148_v53  ;;  %v1103_v54 = vpop.f32.mrb[25].mxu1 }
 0x119   : > { %v1172_v50 = vadd.f32 %v2645_v48, %v3148_v53  ;;  %v975_v52 = vpop.f32.mrb[25].mxu0  ;;  %v1202_v57 = vadd.f32 %v1103_v54, %v3150_v56  ;;  %v2678_v60 = vpop.f32.mrb[26].mxu1 }
 0x11a   : > { %v1170_v55 = vadd.f32 %v975_v52, %v3150_v56  ;;  %v2646_v58 = vpop.f32.mrb[26].mxu0  ;;  %2719 = vmatprep.mubr.bf16.mxu0 %v1286_v46  ;;  %v1205_v62 = vadd.f32 %v2678_v60, %v3152_v59  ;;  %v1106_v1 = vpop.f32.mrb[27].mxu1  ;;  %v1268_v5 = vmax.f32 %v1204_v51, 0.0 }
 0x11b   : > { %v1173_v61 = vadd.f32 %v2646_v58, %v3152_v59  ;;  %v978_v0 = vpop.f32.mrb[27].mxu0  ;;  %2720 = vmatmul.mubr.bf16.gmra.mrb[48].mxu0 %v1287_v44  ;;  %v1203_v3 = vadd.f32 %v1106_v1, %v3155_v63  ;;  %v1236_v4 = vmax.f32 %v1172_v50, 0.0  ;;  %v1266_v13 = vmax.f32 %v1202_v57, 0.0 }
 0x11c   : > { %v1171_v2 = vadd.f32 %v978_v0, %v3155_v63  ;;  %v1269_v8 = vmax.f32 %v1205_v62, 0.0  ;;  %v1234_v11 = vmax.f32 %v1170_v55, 0.0 }
 0x11d   : > { %v1237_v7 = vmax.f32 %v1173_v61, 0.0  ;;  %v1267_v17 = vmax.f32 %v1203_v3, 0.0 }
 0x11e   : > { %v1235_v16 = vmax.f32 %v1171_v2, 0.0  ;;  %v3253_v19 = vpack.c.bf16 %v1269_v8, %v1268_v5 }
 0x11f   : > { %v1289_v18 = vpack.c.bf16 %v1237_v7, %v1236_v4  ;;  %v1304_v21 = vpack.c.bf16 %v1267_v17, %v1266_v13  ;;  %v2681_v23 = vpop.f32.mrb[28].mxu1 }
 0x120   : > { %v1288_v20 = vpack.c.bf16 %v1235_v16, %v1234_v11  ;;  %v2649_v22 = vpop.f32.mrb[28].mxu0  ;;  %v1208_v25 = vadd.f32 %v2681_v23, %v3148_v53  ;;  %v1119_v27 = vpop.f32.mrb[29].mxu1 }
 0x121   : > { %v1176_v24 = vadd.f32 %v2649_v22, %v3148_v53  ;;  %v991_v26 = vpop.f32.mrb[29].mxu0  ;;  %v1206_v29 = vadd.f32 %v1119_v27, %v3150_v56  ;;  %v2682_v31 = vpop.f32.mrb[30].mxu1 }
 0x122   : > { %v1174_v28 = vadd.f32 %v991_v26, %v3150_v56  ;;  %v2650_v30 = vpop.f32.mrb[30].mxu0  ;;  %2723 = vmatprep.mubr.bf16.mxu0 %v1288_v20  ;;  %v1209_v33 = vadd.f32 %v2682_v31, %v3152_v59  ;;  %v1122_v35 = vpop.f32.mrb[31].mxu1  ;;  %v1272_v42 = vmax.f32 %v1208_v25, 0.0 }
 0x123   : > { %v1177_v32 = vadd.f32 %v2650_v30, %v3152_v59  ;;  %v994_v34 = vpop.f32.mrb[31].mxu0  ;;  %2724 = vmatmul.mubr.bf16.gmra.mrb[52].mxu0 %v1289_v18  ;;  %v1207_v38 = vadd.f32 %v1122_v35, %v3155_v63  ;;  %v1240_v41 = vmax.f32 %v1176_v24, 0.0  ;;  %v1270_v49 = vmax.f32 %v1206_v29, 0.0 }
 0x124   : > { %v1175_v37 = vadd.f32 %v994_v34, %v3155_v63  ;;  %v1273_v46 = vmax.f32 %v1209_v33, 0.0  ;;  %v1238_v48 = vmax.f32 %v1174_v28, 0.0 }
 0x125   : > { %v1241_v44 = vmax.f32 %v1177_v32, 0.0  ;;  %v1271_v51 = vmax.f32 %v1207_v38, 0.0 }
 0x126   : > { %v1239_v50 = vmax.f32 %v1175_v37, 0.0  ;;  %v1307_v54 = vpack.c.bf16 %v1273_v46, %v1272_v42 }
 0x127   : > { %v1291_v52 = vpack.c.bf16 %v1241_v44, %v1240_v41  ;;  %v1306_v57 = vpack.c.bf16 %v1271_v51, %v1270_v49  ;;  %v2685_v58 = vpop.f32.mrb[32].mxu1 }
 0x128   : > { %v1290_v55 = vpack.c.bf16 %v1239_v50, %v1238_v48  ;;  %v1212_v60 = vadd.f32 %v2685_v58, %v3148_v53  ;;  %v1135_v61 = vpop.f32.mrb[33].mxu1  ;;  %v2926_v53 = vld [vmem:[%s3514_s7 + $0x38] sm:$0xff]  }
 0x129   : > { %v1210_v62 = vadd.f32 %v1135_v61, %v3150_v56  ;;  %v2686_v0 = vpop.f32.mrb[34].mxu1  ;;  %2781 = vmatprep.subr.bf16.mxu1 %v2926_v53  ;;  %v3286_v56 = vld [vmem:[%s3513_s6] ss:$0 sm:$0xff] }
 0x12a   : > { %2727 = vmatprep.mubr.bf16.mxu0 %v1290_v55  ;;  %v1213_v1 = vadd.f32 %v2686_v0, %v3152_v59  ;;  %v1138_v2 = vpop.f32.mrb[35].mxu1  ;;  %v1276_v4 = vmax.f32 %v1212_v60, 0.0  ;;  %2782 = vmatpush3.bf16.msra.mxu1 %v2926_v53 }
 0x12b   : > { %2728 = vmatmul.mubr.bf16.gmra.mrb[56].mxu0 %v1291_v52  ;;  %v1211_v3 = vadd.f32 %v1138_v2, %v3155_v63  ;;  %v1274_v7 = vmax.f32 %v1210_v62, 0.0 }
 0x12c   : > { %2731 = vmatprep.mubr.bf16.mxu0 %v3164_v14  ;;  %v1277_v5 = vmax.f32 %v1213_v1, 0.0 }
 0x12d   : > { %v1275_v8 = vmax.f32 %v1211_v3, 0.0 }
 0x12e   : > { %v1309_v11 = vpack.c.bf16 %v1277_v5, %v1276_v4 }
 0x12f   : > { %v1308_v13 = vpack.c.bf16 %v1275_v8, %v1274_v7 }
 0x133   : > { %2732 = vmatmul.mubr.bf16.gmra.mrb[60].mxu0 %v3160_v9 }
 0x134   : > { %2735 = vmatprep.mubr.bf16.mxu0 %v3183_v39 }
 0x13b   : > { %2736 = vmatmul.mubr.bf16.gmra.mrb[64].mxu0 %v3178_v36 }
 0x13c   : > { %2739 = vmatprep.mubr.bf16.mxu0 %v3201_v10 }
 0x143   : > { %2740 = vmatmul.mubr.bf16.gmra.mrb[68].mxu0 %v3196_v6 }
 0x144   : > { %2743 = vmatprep.mubr.bf16.mxu0 %v3219_v43 }
 0x14b   : > { %2744 = vmatmul.mubr.bf16.gmra.mrb[72].mxu0 %v3214_v40 }
 0x14c   : > { %2747 = vmatprep.mubr.bf16.mxu0 %v3231_v15 }
 0x153   : > { %2748 = vmatmul.mubr.bf16.gmra.mrb[76].mxu0 %v3229_v12 }
 0x154   : > { %2751 = vmatprep.mubr.bf16.mxu0 %v3243_v47 }
 0x15b   : > { %2752 = vmatmul.mubr.bf16.gmra.mrb[80].mxu0 %v3241_v45 }
 0x15c   : > { %2755 = vmatprep.mubr.bf16.mxu0 %v1304_v21 }
 0x163   : > { %2756 = vmatmul.mubr.bf16.gmra.mrb[84].mxu0 %v3253_v19 }
 0x164   : > { %2759 = vmatprep.mubr.bf16.mxu0 %v1306_v57 }
 0x16b   : > { %2760 = vmatmul.mubr.bf16.gmra.mrb[88].mxu0 %v1307_v54 }
 0x16c   : > { %2763 = vmatprep.mubr.bf16.mxu0 %v1308_v13 }
 0x173   : > { %2764 = vmatmul.mubr.bf16.gmra.mrb[92].mxu0 %v1309_v11 }
 0x1ce   : > { %v2705_v59 = vpop.f32.mrb[32].mxu0 }
 0x1cf   : > { %v1424_v63 = vadd.f32 %v2705_v59, %v3286_v56  ;;  %v1415_v9 = vpop.f32.mrb[33].mxu0 }
 0x1d0   : > { %v1416_v14 = vadd.f32 %v3286_v56, %v1415_v9  ;;  %v2706_v36 = vpop.f32.mrb[34].mxu0 }
 0x1d1   : > { %v1427_v39 = vadd.f32 %v2706_v36, %v3286_v56  ;;  %v1418_v6 = vpop.f32.mrb[35].mxu0  ;;  %v1672_v40 = vmax.f32 %v1424_v63, 0.0 }
 0x1d2   : > { %v1419_v10 = vadd.f32 %v3286_v56, %v1418_v6  ;;  %v1670_v12 = vmax.f32 %v1416_v14, 0.0 }
 0x1d3   : > { %v1673_v43 = vmax.f32 %v1427_v39, 0.0 }
 0x1d4   : > { %v1671_v15 = vmax.f32 %v1419_v10, 0.0 }
 0x1d5   : > { %v1735_v45 = vpack.c.bf16 %v1673_v43, %v1672_v40 }
 0x1d6   : > { %v1734_v47 = vpack.c.bf16 %v1671_v15, %v1670_v12  ;;  %v2709_v16 = vpop.f32.mrb[36].mxu0 }
 0x1d7   : > { %v1440_v17 = vadd.f32 %v2709_v16, %v3286_v56  ;;  %v1431_v18 = vpop.f32.mrb[37].mxu0 }
 0x1d8   : > { %v1432_v19 = vadd.f32 %v3286_v56, %v1431_v18  ;;  %v2710_v20 = vpop.f32.mrb[38].mxu0  ;;  %2783 = vmatprep.mubr.bf16.mxu1 %v1734_v47 }
 0x1d9   : > { %v1443_v21 = vadd.f32 %v2710_v20, %v3286_v56  ;;  %v1434_v22 = vpop.f32.mrb[39].mxu0  ;;  %2784 = vmatmul.mubr.bf16.vlgmr.msra.gmra.mrb[36].mxu1 %v1735_v45  ;;  %v1676_v24 = vmax.f32 %v1440_v17, 0.0 }
 0x1da   : > { %v1435_v23 = vadd.f32 %v3286_v56, %v1434_v22  ;;  %v1674_v26 = vmax.f32 %v1432_v19, 0.0 }
 0x1db   : > { %v1677_v25 = vmax.f32 %v1443_v21, 0.0 }
 0x1dc   : > { %v1675_v27 = vmax.f32 %v1435_v23, 0.0 }
 0x1dd   : > { %v1737_v28 = vpack.c.bf16 %v1677_v25, %v1676_v24 }
 0x1de   : > { %v1736_v29 = vpack.c.bf16 %v1675_v27, %v1674_v26  ;;  %v2713_v30 = vpop.f32.mrb[40].mxu0 }
 0x1df   : > { %v1456_v31 = vadd.f32 %v2713_v30, %v3286_v56  ;;  %v1447_v32 = vpop.f32.mrb[41].mxu0 }
 0x1e0   : > { %v1448_v33 = vadd.f32 %v3286_v56, %v1447_v32  ;;  %v2714_v34 = vpop.f32.mrb[42].mxu0  ;;  %2787 = vmatprep.mubr.bf16.mxu1 %v1736_v29 }
 0x1e1   : > { %v1459_v35 = vadd.f32 %v2714_v34, %v3286_v56  ;;  %v1450_v37 = vpop.f32.mrb[43].mxu0  ;;  %2788 = vmatmul.mubr.bf16.gmra.mrb[40].mxu1 %v1737_v28  ;;  %v1680_v41 = vmax.f32 %v1456_v31, 0.0 }
 0x1e2   : > { %v1451_v38 = vadd.f32 %v3286_v56, %v1450_v37  ;;  %v1678_v44 = vmax.f32 %v1448_v33, 0.0 }
 0x1e3   : > { %v1681_v42 = vmax.f32 %v1459_v35, 0.0 }
 0x1e4   : > { %v1679_v46 = vmax.f32 %v1451_v38, 0.0 }
 0x1e5   : > { %v1739_v48 = vpack.c.bf16 %v1681_v42, %v1680_v41 }
 0x1e6   : > { %v1738_v49 = vpack.c.bf16 %v1679_v46, %v1678_v44  ;;  %v2717_v50 = vpop.f32.mrb[44].mxu0 }
 0x1e7   : > { %v1472_v51 = vadd.f32 %v2717_v50, %v3286_v56  ;;  %v1463_v52 = vpop.f32.mrb[45].mxu0 }
 0x1e8   : > { %v1464_v54 = vadd.f32 %v3286_v56, %v1463_v52  ;;  %v2718_v55 = vpop.f32.mrb[46].mxu0  ;;  %2791 = vmatprep.mubr.bf16.mxu1 %v1738_v49 }
 0x1e9   : > { %v1475_v57 = vadd.f32 %v2718_v55, %v3286_v56  ;;  %v1466_v58 = vpop.f32.mrb[47].mxu0  ;;  %2792 = vmatmul.mubr.bf16.gmra.mrb[44].mxu1 %v1739_v48  ;;  %v1684_v61 = vmax.f32 %v1472_v51, 0.0 }
 0x1ea   : > { %v1467_v60 = vadd.f32 %v3286_v56, %v1466_v58  ;;  %v1682_v0 = vmax.f32 %v1464_v54, 0.0 }
 0x1eb   : > { %v1685_v62 = vmax.f32 %v1475_v57, 0.0 }
 0x1ec   : > { %v1683_v1 = vmax.f32 %v1467_v60, 0.0 }
 0x1ed   : > { %v1741_v2 = vpack.c.bf16 %v1685_v62, %v1684_v61 }
 0x1ee   : > { %v1740_v3 = vpack.c.bf16 %v1683_v1, %v1682_v0  ;;  %v2721_v4 = vpop.f32.mrb[48].mxu0 }
 0x1ef   : > { %v1488_v5 = vadd.f32 %v2721_v4, %v3286_v56  ;;  %v1479_v7 = vpop.f32.mrb[49].mxu0 }
 0x1f0   : > { %v1480_v8 = vadd.f32 %v3286_v56, %v1479_v7  ;;  %v2722_v11 = vpop.f32.mrb[50].mxu0  ;;  %2795 = vmatprep.mubr.bf16.mxu1 %v1740_v3 }
 0x1f1   : > { %v1491_v13 = vadd.f32 %v2722_v11, %v3286_v56  ;;  %v1482_v53 = vpop.f32.mrb[51].mxu0  ;;  %2796 = vmatmul.mubr.bf16.gmra.mrb[48].mxu1 %v1741_v2  ;;  %v1688_v63 = vmax.f32 %v1488_v5, 0.0 }
 0x1f2   : > { %v1483_v59 = vadd.f32 %v3286_v56, %v1482_v53  ;;  %v1686_v14 = vmax.f32 %v1480_v8, 0.0 }
 0x1f3   : > { %v1689_v9 = vmax.f32 %v1491_v13, 0.0 }
 0x1f4   : > { %v1687_v36 = vmax.f32 %v1483_v59, 0.0 }
 0x1f5   : > { %v1743_v39 = vpack.c.bf16 %v1689_v9, %v1688_v63 }
 0x1f6   : > { %v1742_v6 = vpack.c.bf16 %v1687_v36, %v1686_v14  ;;  %v2725_v10 = vpop.f32.mrb[52].mxu0 }
 0x1f7   : > { %v1504_v40 = vadd.f32 %v2725_v10, %v3286_v56  ;;  %v1495_v43 = vpop.f32.mrb[53].mxu0 }
 0x1f8   : > { %v1496_v12 = vadd.f32 %v3286_v56, %v1495_v43  ;;  %v2726_v15 = vpop.f32.mrb[54].mxu0  ;;  %2799 = vmatprep.mubr.bf16.mxu1 %v1742_v6 }
 0x1f9   : > { %v1507_v45 = vadd.f32 %v2726_v15, %v3286_v56  ;;  %v1498_v47 = vpop.f32.mrb[55].mxu0  ;;  %2800 = vmatmul.mubr.bf16.gmra.mrb[52].mxu1 %v1743_v39  ;;  %v1692_v17 = vmax.f32 %v1504_v40, 0.0 }
 0x1fa   : > { %v1499_v16 = vadd.f32 %v3286_v56, %v1498_v47  ;;  %v1690_v19 = vmax.f32 %v1496_v12, 0.0 }
 0x1fb   : > { %v1693_v18 = vmax.f32 %v1507_v45, 0.0 }
 0x1fc   : > { %v1691_v20 = vmax.f32 %v1499_v16, 0.0 }
 0x1fd   : > { %v1745_v21 = vpack.c.bf16 %v1693_v18, %v1692_v17 }
 0x1fe   : > { %v1744_v22 = vpack.c.bf16 %v1691_v20, %v1690_v19  ;;  %v2729_v23 = vpop.f32.mrb[56].mxu0 }
 0x1ff   : > { %v1520_v24 = vadd.f32 %v2729_v23, %v3286_v56  ;;  %v1511_v25 = vpop.f32.mrb[57].mxu0 }
 0x200   : > { %v1512_v26 = vadd.f32 %v3286_v56, %v1511_v25  ;;  %v2730_v27 = vpop.f32.mrb[58].mxu0  ;;  %2803 = vmatprep.mubr.bf16.mxu1 %v1744_v22 }
 0x201   : > { %v1523_v28 = vadd.f32 %v2730_v27, %v3286_v56  ;;  %v1514_v29 = vpop.f32.mrb[59].mxu0  ;;  %2804 = vmatmul.mubr.bf16.gmra.mrb[56].mxu1 %v1745_v21  ;;  %v1696_v31 = vmax.f32 %v1520_v24, 0.0 }
 0x202   : > { %v1515_v30 = vadd.f32 %v3286_v56, %v1514_v29  ;;  %v1694_v33 = vmax.f32 %v1512_v26, 0.0 }
 0x203   : > { %v1697_v32 = vmax.f32 %v1523_v28, 0.0 }
 0x204   : > { %v1695_v34 = vmax.f32 %v1515_v30, 0.0 }
 0x205   : > { %v1747_v35 = vpack.c.bf16 %v1697_v32, %v1696_v31 }
 0x206   : > { %v1746_v37 = vpack.c.bf16 %v1695_v34, %v1694_v33  ;;  %v2733_v38 = vpop.f32.mrb[60].mxu0 }
 0x207   : > { %v1536_v41 = vadd.f32 %v2733_v38, %v3286_v56  ;;  %v1527_v42 = vpop.f32.mrb[61].mxu0 }
 0x208   : > { %v1528_v44 = vadd.f32 %v3286_v56, %v1527_v42  ;;  %v2734_v46 = vpop.f32.mrb[62].mxu0  ;;  %2807 = vmatprep.mubr.bf16.mxu1 %v1746_v37 }
 0x209   : > { %v1539_v48 = vadd.f32 %v2734_v46, %v3286_v56  ;;  %v1530_v49 = vpop.f32.mrb[63].mxu0  ;;  %2808 = vmatmul.mubr.bf16.gmra.mrb[60].mxu1 %v1747_v35  ;;  %v1700_v51 = vmax.f32 %v1536_v41, 0.0 }
 0x20a   : > { %v1531_v50 = vadd.f32 %v3286_v56, %v1530_v49  ;;  %v1698_v54 = vmax.f32 %v1528_v44, 0.0 }
 0x20b   : > { %v1701_v52 = vmax.f32 %v1539_v48, 0.0 }
 0x20c   : > { %v1699_v55 = vmax.f32 %v1531_v50, 0.0 }
 0x20d   : > { %v1749_v57 = vpack.c.bf16 %v1701_v52, %v1700_v51 }
 0x20e   : > { %v1748_v58 = vpack.c.bf16 %v1699_v55, %v1698_v54  ;;  %v2737_v60 = vpop.f32.mrb[64].mxu0 }
 0x20f   : > { %v1552_v61 = vadd.f32 %v2737_v60, %v3286_v56  ;;  %v1543_v62 = vpop.f32.mrb[65].mxu0 }
 0x210   : > { %v1544_v0 = vadd.f32 %v3286_v56, %v1543_v62  ;;  %v2738_v1 = vpop.f32.mrb[66].mxu0  ;;  %2811 = vmatprep.mubr.bf16.mxu1 %v1748_v58 }
 0x211   : > { %v1555_v2 = vadd.f32 %v2738_v1, %v3286_v56  ;;  %v1546_v3 = vpop.f32.mrb[67].mxu0  ;;  %2812 = vmatmul.mubr.bf16.gmra.mrb[64].mxu1 %v1749_v57  ;;  %v1704_v5 = vmax.f32 %v1552_v61, 0.0 }
 0x212   : > { %v1547_v4 = vadd.f32 %v3286_v56, %v1546_v3  ;;  %v1702_v8 = vmax.f32 %v1544_v0, 0.0 }
 0x213   : > { %v1705_v7 = vmax.f32 %v1555_v2, 0.0 }
 0x214   : > { %v1703_v11 = vmax.f32 %v1547_v4, 0.0 }
 0x215   : > { %v1751_v13 = vpack.c.bf16 %v1705_v7, %v1704_v5 }
 0x216   : > { %v1750_v53 = vpack.c.bf16 %v1703_v11, %v1702_v8  ;;  %v2741_v59 = vpop.f32.mrb[68].mxu0 }
 0x217   : > { %v1568_v63 = vadd.f32 %v2741_v59, %v3286_v56  ;;  %v1559_v9 = vpop.f32.mrb[69].mxu0 }
 0x218   : > { %v1560_v14 = vadd.f32 %v3286_v56, %v1559_v9  ;;  %v2742_v36 = vpop.f32.mrb[70].mxu0  ;;  %2815 = vmatprep.mubr.bf16.mxu1 %v1750_v53 }
 0x219   : > { %v1571_v39 = vadd.f32 %v2742_v36, %v3286_v56  ;;  %v1562_v6 = vpop.f32.mrb[71].mxu0  ;;  %2816 = vmatmul.mubr.bf16.gmra.mrb[68].mxu1 %v1751_v13  ;;  %v1708_v40 = vmax.f32 %v1568_v63, 0.0 }
 0x21a   : > { %v1563_v10 = vadd.f32 %v3286_v56, %v1562_v6  ;;  %v1706_v12 = vmax.f32 %v1560_v14, 0.0 }
 0x21b   : > { %v1709_v43 = vmax.f32 %v1571_v39, 0.0 }
 0x21c   : > { %v1707_v15 = vmax.f32 %v1563_v10, 0.0 }
 0x21d   : > { %v1753_v45 = vpack.c.bf16 %v1709_v43, %v1708_v40 }
 0x21e   : > { %v1752_v47 = vpack.c.bf16 %v1707_v15, %v1706_v12  ;;  %v2745_v16 = vpop.f32.mrb[72].mxu0 }
 0x21f   : > { %v1584_v17 = vadd.f32 %v2745_v16, %v3286_v56  ;;  %v1575_v18 = vpop.f32.mrb[73].mxu0 }
 0x220   : > { %v1576_v19 = vadd.f32 %v3286_v56, %v1575_v18  ;;  %v2746_v20 = vpop.f32.mrb[74].mxu0  ;;  %2819 = vmatprep.mubr.bf16.mxu1 %v1752_v47 }
 0x221   : > { %v1587_v21 = vadd.f32 %v2746_v20, %v3286_v56  ;;  %v1578_v22 = vpop.f32.mrb[75].mxu0  ;;  %2820 = vmatmul.mubr.bf16.gmra.mrb[72].mxu1 %v1753_v45  ;;  %v1712_v24 = vmax.f32 %v1584_v17, 0.0 }
 0x222   : > { %v1579_v23 = vadd.f32 %v3286_v56, %v1578_v22  ;;  %v1710_v26 = vmax.f32 %v1576_v19, 0.0 }
 0x223   : > { %v1713_v25 = vmax.f32 %v1587_v21, 0.0 }
 0x224   : > { %v1711_v27 = vmax.f32 %v1579_v23, 0.0 }
 0x225   : > { %v1755_v28 = vpack.c.bf16 %v1713_v25, %v1712_v24 }
 0x226   : > { %v1754_v29 = vpack.c.bf16 %v1711_v27, %v1710_v26  ;;  %v2749_v30 = vpop.f32.mrb[76].mxu0 }
 0x227   : > { %v1600_v31 = vadd.f32 %v2749_v30, %v3286_v56  ;;  %v1591_v32 = vpop.f32.mrb[77].mxu0 }
 0x228   : > { %v1592_v33 = vadd.f32 %v3286_v56, %v1591_v32  ;;  %v2750_v34 = vpop.f32.mrb[78].mxu0  ;;  %2823 = vmatprep.mubr.bf16.mxu1 %v1754_v29 }
 0x229   : > { %v1603_v35 = vadd.f32 %v2750_v34, %v3286_v56  ;;  %v1594_v37 = vpop.f32.mrb[79].mxu0  ;;  %2824 = vmatmul.mubr.bf16.gmra.mrb[76].mxu1 %v1755_v28  ;;  %v1716_v41 = vmax.f32 %v1600_v31, 0.0 }
 0x22a   : > { %v1595_v38 = vadd.f32 %v3286_v56, %v1594_v37  ;;  %v1714_v44 = vmax.f32 %v1592_v33, 0.0 }
 0x22b   : > { %v1717_v42 = vmax.f32 %v1603_v35, 0.0 }
 0x22c   : > { %v1715_v46 = vmax.f32 %v1595_v38, 0.0 }
 0x22d   : > { %v1757_v48 = vpack.c.bf16 %v1717_v42, %v1716_v41 }
 0x22e   : > { %v1756_v49 = vpack.c.bf16 %v1715_v46, %v1714_v44  ;;  %v2753_v50 = vpop.f32.mrb[80].mxu0  ;;  %v3355_v46 = vld [vmem:[%s3515_s8] ss:$0 sm:$0xff] }
 0x22f   : > { %v1616_v51 = vadd.f32 %v2753_v50, %v3286_v56  ;;  %v1607_v52 = vpop.f32.mrb[81].mxu0 }
 0x230   : > { %v1608_v54 = vadd.f32 %v3286_v56, %v1607_v52  ;;  %v2754_v55 = vpop.f32.mrb[82].mxu0  ;;  %2827 = vmatprep.mubr.bf16.mxu1 %v1756_v49 }
 0x231   : > { %v1619_v57 = vadd.f32 %v2754_v55, %v3286_v56  ;;  %v1610_v58 = vpop.f32.mrb[83].mxu0  ;;  %2828 = vmatmul.mubr.bf16.gmra.mrb[80].mxu1 %v1757_v48  ;;  %v1720_v61 = vmax.f32 %v1616_v51, 0.0 }
 0x232   : > { %v1611_v60 = vadd.f32 %v3286_v56, %v1610_v58  ;;  %v1718_v0 = vmax.f32 %v1608_v54, 0.0 }
 0x233   : > { %v1721_v62 = vmax.f32 %v1619_v57, 0.0 }
 0x234   : > { %v1719_v1 = vmax.f32 %v1611_v60, 0.0 }
 0x235   : > { %v1759_v2 = vpack.c.bf16 %v1721_v62, %v1720_v61 }
 0x236   : > { %v1758_v3 = vpack.c.bf16 %v1719_v1, %v1718_v0  ;;  %v2757_v4 = vpop.f32.mrb[84].mxu0 }
 0x237   : > { %v1632_v5 = vadd.f32 %v2757_v4, %v3286_v56  ;;  %v1623_v7 = vpop.f32.mrb[85].mxu0 }
 0x238   : > { %v1624_v8 = vadd.f32 %v3286_v56, %v1623_v7  ;;  %v2758_v11 = vpop.f32.mrb[86].mxu0  ;;  %2831 = vmatprep.mubr.bf16.mxu1 %v1758_v3 }
 0x239   : > { %v1635_v13 = vadd.f32 %v2758_v11, %v3286_v56  ;;  %v1626_v53 = vpop.f32.mrb[87].mxu0  ;;  %2832 = vmatmul.mubr.bf16.gmra.mrb[84].mxu1 %v1759_v2  ;;  %v1724_v63 = vmax.f32 %v1632_v5, 0.0 }
 0x23a   : > { %v1627_v59 = vadd.f32 %v3286_v56, %v1626_v53  ;;  %v1722_v14 = vmax.f32 %v1624_v8, 0.0 }
 0x23b   : > { %v1725_v9 = vmax.f32 %v1635_v13, 0.0 }
 0x23c   : > { %v1723_v36 = vmax.f32 %v1627_v59, 0.0 }
 0x23d   : > { %v1761_v39 = vpack.c.bf16 %v1725_v9, %v1724_v63 }
 0x23e   : > { %v1760_v6 = vpack.c.bf16 %v1723_v36, %v1722_v14  ;;  %v2761_v10 = vpop.f32.mrb[88].mxu0 }
 0x23f   : > { %v1648_v40 = vadd.f32 %v2761_v10, %v3286_v56  ;;  %v1639_v43 = vpop.f32.mrb[89].mxu0 }
 0x240   : > { %v1640_v12 = vadd.f32 %v3286_v56, %v1639_v43  ;;  %v2762_v15 = vpop.f32.mrb[90].mxu0  ;;  %2835 = vmatprep.mubr.bf16.mxu1 %v1760_v6 }
 0x241   : > { %v1651_v45 = vadd.f32 %v2762_v15, %v3286_v56  ;;  %v1642_v47 = vpop.f32.mrb[91].mxu0  ;;  %2836 = vmatmul.mubr.bf16.gmra.mrb[88].mxu1 %v1761_v39  ;;  %v1728_v17 = vmax.f32 %v1648_v40, 0.0 }
 0x242   : > { %v1643_v16 = vadd.f32 %v3286_v56, %v1642_v47  ;;  %v1726_v19 = vmax.f32 %v1640_v12, 0.0 }
 0x243   : > { %v1729_v18 = vmax.f32 %v1651_v45, 0.0 }
 0x244   : > { %v1727_v20 = vmax.f32 %v1643_v16, 0.0 }
 0x245   : > { %v1763_v21 = vpack.c.bf16 %v1729_v18, %v1728_v17 }
 0x246   : > { %v1762_v22 = vpack.c.bf16 %v1727_v20, %v1726_v19  ;;  %v2765_v23 = vpop.f32.mrb[92].mxu0 }
 0x247   : > { %v1664_v24 = vadd.f32 %v2765_v23, %v3286_v56  ;;  %v1655_v25 = vpop.f32.mrb[93].mxu0 }
 0x248   : > { %v1656_v26 = vadd.f32 %v3286_v56, %v1655_v25  ;;  %v2766_v27 = vpop.f32.mrb[94].mxu0  ;;  %2839 = vmatprep.mubr.bf16.mxu1 %v1762_v22 }
 0x249   : > { %v1667_v28 = vadd.f32 %v2766_v27, %v3286_v56  ;;  %v1658_v29 = vpop.f32.mrb[95].mxu0  ;;  %2840 = vmatmul.mubr.bf16.gmra.mrb[92].mxu1 %v1763_v21  ;;  %v1732_v31 = vmax.f32 %v1664_v24, 0.0 }
 0x24a   : > { %v1659_v30 = vadd.f32 %v3286_v56, %v1658_v29  ;;  %v1730_v33 = vmax.f32 %v1656_v26, 0.0 }
 0x24b   : > { %v1733_v32 = vmax.f32 %v1667_v28, 0.0 }
 0x24c   : > { %v1731_v34 = vmax.f32 %v1659_v30, 0.0 }
 0x24d   : > { %v1765_v35 = vpack.c.bf16 %v1733_v32, %v1732_v31 }
 0x24e   : > { %v1764_v37 = vpack.c.bf16 %v1731_v34, %v1730_v33 }
 0x250   : > { %2843 = vmatprep.mubr.bf16.mxu1 %v1764_v37 }
 0x251   : > { %2844 = vmatmul.mubr.bf16.gmra.mrb[96].mxu1 %v1765_v35 }
 0x2ac   : > { %v2785_v38 = vpop.f32.mrb[36].mxu1 }
 0x2ad   : > { %v1871_v41 = vpop.f32.mrb[37].mxu1  ;;  %v1880_v48 = vadd.f32 %v2785_v38, %v3355_v46 }
 0x2ae   : > { %v2786_v42 = vpop.f32.mrb[38].mxu1  ;;  %v1872_v56 = vadd.f32 %v3355_v46, %v1871_v41 }
 0x2af   : > { %v1874_v44 = vpop.f32.mrb[39].mxu1  ;;  %v1883_v50 = vadd.f32 %v2786_v42, %v3355_v46  ;;  %v2188_v58 = vsel %vm469_vm0, %v1880_v48, -inf }
 0x2b0   : > { %v1875_v54 = vadd.f32 %v3355_v46, %v1874_v44  ;;  %v2126_v0 = vsel %vm469_vm0, %v1872_v56, -inf }
 0x2b1   : > { %v2219_v4 = vsel %vm469_vm0, %v1883_v50, -inf }
 0x2b2   : > { %v2157_v8 = vsel %vm469_vm0, %v1875_v54, -inf }
 0x2b4   : > { %v2789_v49 = vpop.f32.mrb[40].mxu1 }
 0x2b5   : > { %v1896_v51 = vadd.f32 %v2789_v49, %v3355_v46  ;;  %v1887_v52 = vpop.f32.mrb[41].mxu1 }
 0x2b6   : > { %v1888_v55 = vadd.f32 %v3355_v46, %v1887_v52  ;;  %v2790_v57 = vpop.f32.mrb[42].mxu1 }
 0x2b7   : > { %v2189_v60 = vsel %vm469_vm0, %v1896_v51, -inf  ;;  %v1899_v61 = vadd.f32 %v2790_v57, %v3355_v46  ;;  %v1890_v62 = vpop.f32.mrb[43].mxu1 }
 0x2b8   : > { %v2190_v1 = vmax.f32 %v2188_v58, %v2189_v60  ;;  %v2127_v2 = vsel %vm469_vm0, %v1888_v55, -inf  ;;  %v1891_v3 = vadd.f32 %v3355_v46, %v1890_v62 }
 0x2b9   : > { %v2128_v5 = vmax.f32 %v2126_v0, %v2127_v2  ;;  %v2220_v7 = vsel %vm469_vm0, %v1899_v61, -inf }
 0x2ba   : > { %v2221_v11 = vmax.f32 %v2219_v4, %v2220_v7  ;;  %v2158_v13 = vsel %vm469_vm0, %v1891_v3, -inf }
 0x2bb   : > { %v2159_v53 = vmax.f32 %v2157_v8, %v2158_v13 }
 0x2bc   : > { %v2793_v59 = vpop.f32.mrb[44].mxu1 }
 0x2bd   : > { %v1912_v63 = vadd.f32 %v2793_v59, %v3355_v46  ;;  %v1903_v9 = vpop.f32.mrb[45].mxu1 }
 0x2be   : > { %v1904_v14 = vadd.f32 %v3355_v46, %v1903_v9  ;;  %v2794_v36 = vpop.f32.mrb[46].mxu1 }
 0x2bf   : > { %v2191_v39 = vsel %vm469_vm0, %v1912_v63, -inf  ;;  %v1915_v6 = vadd.f32 %v2794_v36, %v3355_v46  ;;  %v1906_v10 = vpop.f32.mrb[47].mxu1 }
 0x2c0   : > { %v2192_v40 = vmax.f32 %v2190_v1, %v2191_v39  ;;  %v2129_v43 = vsel %vm469_vm0, %v1904_v14, -inf  ;;  %v1907_v12 = vadd.f32 %v3355_v46, %v1906_v10 }
 0x2c1   : > { %v2130_v15 = vmax.f32 %v2128_v5, %v2129_v43  ;;  %v2222_v45 = vsel %vm469_vm0, %v1915_v6, -inf }
 0x2c2   : > { %v2223_v47 = vmax.f32 %v2221_v11, %v2222_v45  ;;  %v2160_v16 = vsel %vm469_vm0, %v1907_v12, -inf }
 0x2c3   : > { %v2161_v17 = vmax.f32 %v2159_v53, %v2160_v16 }
 0x2c4   : > { %v2797_v18 = vpop.f32.mrb[48].mxu1 }
 0x2c5   : > { %v1928_v19 = vadd.f32 %v2797_v18, %v3355_v46  ;;  %v1919_v20 = vpop.f32.mrb[49].mxu1 }
 0x2c6   : > { %v1920_v21 = vadd.f32 %v3355_v46, %v1919_v20  ;;  %v2798_v22 = vpop.f32.mrb[50].mxu1 }
 0x2c7   : > { %v2193_v23 = vsel %vm469_vm0, %v1928_v19, -inf  ;;  %v1931_v24 = vadd.f32 %v2798_v22, %v3355_v46  ;;  %v1922_v25 = vpop.f32.mrb[51].mxu1 }
 0x2c8   : > { %v2194_v26 = vmax.f32 %v2192_v40, %v2193_v23  ;;  %v2131_v27 = vsel %vm469_vm0, %v1920_v21, -inf  ;;  %v1923_v28 = vadd.f32 %v3355_v46, %v1922_v25 }
 0x2c9   : > { %v2132_v29 = vmax.f32 %v2130_v15, %v2131_v27  ;;  %v2224_v30 = vsel %vm469_vm0, %v1931_v24, -inf }
 0x2ca   : > { %v2225_v31 = vmax.f32 %v2223_v47, %v2224_v30  ;;  %v2162_v32 = vsel %vm469_vm0, %v1923_v28, -inf }
 0x2cb   : > { %v2163_v33 = vmax.f32 %v2161_v17, %v2162_v32 }
 0x2cc   : > { %v2801_v34 = vpop.f32.mrb[52].mxu1 }
 0x2cd   : > { %v1944_v35 = vadd.f32 %v2801_v34, %v3355_v46  ;;  %v1935_v37 = vpop.f32.mrb[53].mxu1 }
 0x2ce   : > { %v1936_v38 = vadd.f32 %v3355_v46, %v1935_v37  ;;  %v2802_v41 = vpop.f32.mrb[54].mxu1 }
 0x2cf   : > { %v2195_v42 = vsel %vm469_vm0, %v1944_v35, -inf  ;;  %v1947_v44 = vadd.f32 %v2802_v41, %v3355_v46  ;;  %v1938_v48 = vpop.f32.mrb[55].mxu1 }
 0x2d0   : > { %v2196_v56 = vmax.f32 %v2194_v26, %v2195_v42  ;;  %v2133_v49 = vsel %vm469_vm0, %v1936_v38, -inf  ;;  %v1939_v50 = vadd.f32 %v3355_v46, %v1938_v48 }
 0x2d1   : > { %v2134_v51 = vmax.f32 %v2132_v29, %v2133_v49  ;;  %v2226_v52 = vsel %vm469_vm0, %v1947_v44, -inf }
 0x2d2   : > { %v2227_v54 = vmax.f32 %v2225_v31, %v2226_v52  ;;  %v2164_v55 = vsel %vm469_vm0, %v1939_v50, -inf }
 0x2d3   : > { %v2165_v57 = vmax.f32 %v2163_v33, %v2164_v55 }
 0x2d4   : > { %v2805_v58 = vpop.f32.mrb[56].mxu1 }
 0x2d5   : > { %v1960_v60 = vadd.f32 %v2805_v58, %v3355_v46  ;;  %v1951_v61 = vpop.f32.mrb[57].mxu1 }
 0x2d6   : > { %v1952_v62 = vadd.f32 %v3355_v46, %v1951_v61  ;;  %v2806_v0 = vpop.f32.mrb[58].mxu1 }
 0x2d7   : > { %v2197_v1 = vsel %vm469_vm0, %v1960_v60, -inf  ;;  %v1963_v2 = vadd.f32 %v2806_v0, %v3355_v46  ;;  %v1954_v3 = vpop.f32.mrb[59].mxu1 }
 0x2d8   : > { %v2198_v4 = vmax.f32 %v2196_v56, %v2197_v1  ;;  %v2135_v5 = vsel %vm469_vm0, %v1952_v62, -inf  ;;  %v1955_v7 = vadd.f32 %v3355_v46, %v1954_v3 }
 0x2d9   : > { %v2136_v8 = vmax.f32 %v2134_v51, %v2135_v5  ;;  %v2228_v11 = vsel %vm469_vm0, %v1963_v2, -inf }
 0x2da   : > { %v2229_v13 = vmax.f32 %v2227_v54, %v2228_v11  ;;  %v2166_v53 = vsel %vm469_vm0, %v1955_v7, -inf }
 0x2db   : > { %v2167_v59 = vmax.f32 %v2165_v57, %v2166_v53 }
 0x2dc   : > { %v2809_v63 = vpop.f32.mrb[60].mxu1 }
 0x2dd   : > { %v1976_v9 = vadd.f32 %v2809_v63, %v3355_v46  ;;  %v1967_v14 = vpop.f32.mrb[61].mxu1 }
 0x2de   : > { %v1968_v36 = vadd.f32 %v3355_v46, %v1967_v14  ;;  %v2810_v39 = vpop.f32.mrb[62].mxu1 }
 0x2df   : > { %v2199_v6 = vsel %vm469_vm0, %v1976_v9, -inf  ;;  %v1979_v10 = vadd.f32 %v2810_v39, %v3355_v46  ;;  %v1970_v40 = vpop.f32.mrb[63].mxu1 }
 0x2e0   : > { %v2200_v43 = vmax.f32 %v2198_v4, %v2199_v6  ;;  %v2137_v12 = vsel %vm469_vm0, %v1968_v36, -inf  ;;  %v1971_v15 = vadd.f32 %v3355_v46, %v1970_v40 }
 0x2e1   : > { %v2138_v45 = vmax.f32 %v2136_v8, %v2137_v12  ;;  %v2230_v47 = vsel %vm469_vm0, %v1979_v10, -inf }
 0x2e2   : > { %v2231_v16 = vmax.f32 %v2229_v13, %v2230_v47  ;;  %v2168_v17 = vsel %vm469_vm0, %v1971_v15, -inf }
 0x2e3   : > { %v2169_v18 = vmax.f32 %v2167_v59, %v2168_v17 }
 0x2e4   : > { %v2813_v19 = vpop.f32.mrb[64].mxu1 }
 0x2e5   : > { %v1992_v20 = vadd.f32 %v2813_v19, %v3355_v46  ;;  %v1983_v21 = vpop.f32.mrb[65].mxu1 }
 0x2e6   : > { %v1984_v22 = vadd.f32 %v3355_v46, %v1983_v21  ;;  %v2814_v23 = vpop.f32.mrb[66].mxu1 }
 0x2e7   : > { %v2201_v24 = vsel %vm469_vm0, %v1992_v20, -inf  ;;  %v1995_v25 = vadd.f32 %v2814_v23, %v3355_v46  ;;  %v1986_v26 = vpop.f32.mrb[67].mxu1 }
 0x2e8   : > { %v2202_v27 = vmax.f32 %v2200_v43, %v2201_v24  ;;  %v2139_v28 = vsel %vm469_vm0, %v1984_v22, -inf  ;;  %v1987_v29 = vadd.f32 %v3355_v46, %v1986_v26 }
 0x2e9   : > { %v2140_v30 = vmax.f32 %v2138_v45, %v2139_v28  ;;  %v2232_v31 = vsel %vm469_vm0, %v1995_v25, -inf }
 0x2ea   : > { %v2233_v32 = vmax.f32 %v2231_v16, %v2232_v31  ;;  %v2170_v33 = vsel %vm469_vm0, %v1987_v29, -inf }
 0x2eb   : > { %v2171_v34 = vmax.f32 %v2169_v18, %v2170_v33 }
 0x2ec   : > { %v2817_v35 = vpop.f32.mrb[68].mxu1 }
 0x2ed   : > { %v2008_v37 = vadd.f32 %v2817_v35, %v3355_v46  ;;  %v1999_v38 = vpop.f32.mrb[69].mxu1 }
 0x2ee   : > { %v2000_v41 = vadd.f32 %v3355_v46, %v1999_v38  ;;  %v2818_v42 = vpop.f32.mrb[70].mxu1 }
 0x2ef   : > { %v2203_v44 = vsel %vm469_vm0, %v2008_v37, -inf  ;;  %v2011_v48 = vadd.f32 %v2818_v42, %v3355_v46  ;;  %v2002_v56 = vpop.f32.mrb[71].mxu1 }
 0x2f0   : > { %v2204_v49 = vmax.f32 %v2202_v27, %v2203_v44  ;;  %v2141_v50 = vsel %vm469_vm0, %v2000_v41, -inf  ;;  %v2003_v51 = vadd.f32 %v3355_v46, %v2002_v56 }
 0x2f1   : > { %v2142_v52 = vmax.f32 %v2140_v30, %v2141_v50  ;;  %v2234_v54 = vsel %vm469_vm0, %v2011_v48, -inf }
 0x2f2   : > { %v2235_v55 = vmax.f32 %v2233_v32, %v2234_v54  ;;  %v2172_v57 = vsel %vm469_vm0, %v2003_v51, -inf }
 0x2f3   : > { %v2173_v58 = vmax.f32 %v2171_v34, %v2172_v57 }
 0x2f4   : > { %v2821_v60 = vpop.f32.mrb[72].mxu1 }
 0x2f5   : > { %v2024_v61 = vadd.f32 %v2821_v60, %v3355_v46  ;;  %v2015_v62 = vpop.f32.mrb[73].mxu1 }
 0x2f6   : > { %v2016_v0 = vadd.f32 %v3355_v46, %v2015_v62  ;;  %v2822_v1 = vpop.f32.mrb[74].mxu1 }
 0x2f7   : > { %v2205_v2 = vsel %vm469_vm0, %v2024_v61, -inf  ;;  %v2027_v3 = vadd.f32 %v2822_v1, %v3355_v46  ;;  %v2018_v4 = vpop.f32.mrb[75].mxu1 }
 0x2f8   : > { %v2206_v5 = vmax.f32 %v2204_v49, %v2205_v2  ;;  %v2143_v7 = vsel %vm469_vm0, %v2016_v0, -inf  ;;  %v2019_v8 = vadd.f32 %v3355_v46, %v2018_v4 }
 0x2f9   : > { %v2144_v11 = vmax.f32 %v2142_v52, %v2143_v7  ;;  %v2236_v13 = vsel %vm469_vm0, %v2027_v3, -inf }
 0x2fa   : > { %v2237_v53 = vmax.f32 %v2235_v55, %v2236_v13  ;;  %v2174_v59 = vsel %vm469_vm0, %v2019_v8, -inf }
 0x2fb   : > { %v2175_v63 = vmax.f32 %v2173_v58, %v2174_v59 }
 0x2fc   : > { %v2825_v9 = vpop.f32.mrb[76].mxu1 }
 0x2fd   : > { %v2040_v14 = vadd.f32 %v2825_v9, %v3355_v46  ;;  %v2031_v36 = vpop.f32.mrb[77].mxu1 }
 0x2fe   : > { %v2032_v39 = vadd.f32 %v3355_v46, %v2031_v36  ;;  %v2826_v6 = vpop.f32.mrb[78].mxu1 }
 0x2ff   : > { %v2207_v10 = vsel %vm469_vm0, %v2040_v14, -inf  ;;  %v2043_v40 = vadd.f32 %v2826_v6, %v3355_v46  ;;  %v2034_v43 = vpop.f32.mrb[79].mxu1 }
 0x300   : > { %v2208_v12 = vmax.f32 %v2206_v5, %v2207_v10  ;;  %v2145_v15 = vsel %vm469_vm0, %v2032_v39, -inf  ;;  %v2035_v45 = vadd.f32 %v3355_v46, %v2034_v43 }
 0x301   : > { %v2146_v47 = vmax.f32 %v2144_v11, %v2145_v15  ;;  %v2238_v16 = vsel %vm469_vm0, %v2043_v40, -inf }
 0x302   : > { %v2239_v17 = vmax.f32 %v2237_v53, %v2238_v16  ;;  %v2176_v18 = vsel %vm469_vm0, %v2035_v45, -inf }
 0x303   : > { %v2177_v19 = vmax.f32 %v2175_v63, %v2176_v18 }
 0x304   : > { %v2829_v20 = vpop.f32.mrb[80].mxu1 }
 0x305   : > { %v2056_v21 = vadd.f32 %v2829_v20, %v3355_v46  ;;  %v2047_v22 = vpop.f32.mrb[81].mxu1 }
 0x306   : > { %v2048_v23 = vadd.f32 %v3355_v46, %v2047_v22  ;;  %v2830_v24 = vpop.f32.mrb[82].mxu1 }
 0x307   : > { %v2209_v25 = vsel %vm469_vm0, %v2056_v21, -inf  ;;  %v2059_v26 = vadd.f32 %v2830_v24, %v3355_v46  ;;  %v2050_v27 = vpop.f32.mrb[83].mxu1 }
 0x308   : > { %v2210_v28 = vmax.f32 %v2208_v12, %v2209_v25  ;;  %v2147_v29 = vsel %vm469_vm0, %v2048_v23, -inf  ;;  %v2051_v30 = vadd.f32 %v3355_v46, %v2050_v27 }
 0x309   : > { %v2148_v31 = vmax.f32 %v2146_v47, %v2147_v29  ;;  %v2240_v32 = vsel %vm469_vm0, %v2059_v26, -inf }
 0x30a   : > { %v2241_v33 = vmax.f32 %v2239_v17, %v2240_v32  ;;  %v2178_v34 = vsel %vm469_vm0, %v2051_v30, -inf }
 0x30b   : > { %v2179_v35 = vmax.f32 %v2177_v19, %v2178_v34  ;;  %v2927_v34 = vld [vmem:[%s3044_s25 + $0x10] sm:$0xff] }
 0x30c   : > { %v2833_v37 = vpop.f32.mrb[84].mxu1 }
 0x30d   : > { %v2072_v38 = vadd.f32 %v2833_v37, %v3355_v46  ;;  %v2063_v41 = vpop.f32.mrb[85].mxu1 }
 0x30e   : > { %v2064_v42 = vadd.f32 %v3355_v46, %v2063_v41  ;;  %v2834_v44 = vpop.f32.mrb[86].mxu1  ;;  %v2928_v41 = vld [vmem:[%s3044_s25] sm:$0xff] }
 0x30f   : > { %v2211_v48 = vsel %vm469_vm0, %v2072_v38, -inf  ;;  %v2075_v56 = vadd.f32 %v2834_v44, %v3355_v46  ;;  %v2066_v49 = vpop.f32.mrb[87].mxu1 }
 0x310   : > { %v2212_v50 = vmax.f32 %v2210_v28, %v2211_v48  ;;  %v2149_v51 = vsel %vm469_vm0, %v2064_v42, -inf  ;;  %v2067_v52 = vadd.f32 %v3355_v46, %v2066_v49  ;;  %v2929_v48 = vld [vmem:[%s3044_s25 + $0x18] sm:$0xff] }
 0x311   : > { %v2150_v54 = vmax.f32 %v2148_v31, %v2149_v51  ;;  %v2242_v55 = vsel %vm469_vm0, %v2075_v56, -inf  ;;  %v2930_v56 = vld [vmem:[%s3044_s25 + $0x8] sm:$0xff] }
 0x312   : > { %v2243_v57 = vmax.f32 %v2241_v33, %v2242_v55  ;;  %v2180_v58 = vsel %vm469_vm0, %v2067_v52, -inf }
 0x313   : > { %v2181_v60 = vmax.f32 %v2179_v35, %v2180_v58 }
 0x314   : > { %v2837_v61 = vpop.f32.mrb[88].mxu1 }
 0x315   : > { %v2088_v62 = vadd.f32 %v2837_v61, %v3355_v46  ;;  %v2079_v0 = vpop.f32.mrb[89].mxu1 }
 0x316   : > { %v2080_v1 = vadd.f32 %v3355_v46, %v2079_v0  ;;  %v2838_v2 = vpop.f32.mrb[90].mxu1 }
 0x317   : > { %v2213_v3 = vsel %vm469_vm0, %v2088_v62, -inf  ;;  %v2091_v4 = vadd.f32 %v2838_v2, %v3355_v46  ;;  %v2082_v5 = vpop.f32.mrb[91].mxu1 }
 0x318   : > { %v2214_v7 = vmax.f32 %v2212_v50, %v2213_v3  ;;  %v2151_v8 = vsel %vm469_vm0, %v2080_v1, -inf  ;;  %v2083_v11 = vadd.f32 %v3355_v46, %v2082_v5 }
 0x319   : > { %v2152_v13 = vmax.f32 %v2150_v54, %v2151_v8  ;;  %v2244_v53 = vsel %vm469_vm0, %v2091_v4, -inf }
 0x31a   : > { %v2245_v59 = vmax.f32 %v2243_v57, %v2244_v53  ;;  %v2182_v63 = vsel %vm469_vm0, %v2083_v11, -inf }
 0x31b   : > { %v2183_v9 = vmax.f32 %v2181_v60, %v2182_v63 }
 0x31c   : > { %v2841_v14 = vpop.f32.mrb[92].mxu1 }
 0x31d   : > { %v2104_v36 = vadd.f32 %v2841_v14, %v3355_v46  ;;  %v2095_v39 = vpop.f32.mrb[93].mxu1 }
 0x31e   : > { %v2096_v6 = vadd.f32 %v3355_v46, %v2095_v39  ;;  %v2842_v10 = vpop.f32.mrb[94].mxu1 }
 0x31f   : > { %v2215_v40 = vsel %vm469_vm0, %v2104_v36, -inf  ;;  %v2107_v43 = vadd.f32 %v2842_v10, %v3355_v46  ;;  %v2098_v12 = vpop.f32.mrb[95].mxu1 }
 0x320   : > { %v2216_v15 = vmax.f32 %v2214_v7, %v2215_v40  ;;  %v2153_v45 = vsel %vm469_vm0, %v2096_v6, -inf  ;;  %v2099_v47 = vadd.f32 %v3355_v46, %v2098_v12 }
 0x321   : > { %v2154_v16 = vmax.f32 %v2152_v13, %v2153_v45  ;;  %v2246_v17 = vsel %vm469_vm0, %v2107_v43, -inf }
 0x322   : > { %v2247_v18 = vmax.f32 %v2245_v59, %v2246_v17  ;;  %v2184_v19 = vsel %vm469_vm0, %v2099_v47, -inf }
 0x323   : > { %v2185_v20 = vmax.f32 %v2183_v9, %v2184_v19 }
 0x324   : > { %v2845_v21 = vpop.f32.mrb[96].mxu1 }
 0x325   : > { %v2120_v22 = vadd.f32 %v2845_v21, %v3355_v46  ;;  %v2111_v23 = vpop.f32.mrb[97].mxu1 }
 0x326   : > { %v2112_v24 = vadd.f32 %v3355_v46, %v2111_v23  ;;  %v2846_v25 = vpop.f32.mrb[98].mxu1 }
 0x327   : > { %v2217_v26 = vsel %vm469_vm0, %v2120_v22, -inf  ;;  %v2123_v27 = vadd.f32 %v2846_v25, %v3355_v46  ;;  %v2114_v28 = vpop.f32.mrb[99].mxu1 }
 0x328   : > { %v2218_v29 = vmax.f32 %v2216_v15, %v2217_v26  ;;  %v2155_v30 = vsel %vm469_vm0, %v2112_v24, -inf  ;;  %v2115_v31 = vadd.f32 %v3355_v46, %v2114_v28 }
 0x329   : > { %v2156_v32 = vmax.f32 %v2154_v16, %v2155_v30  ;;  %v2248_v33 = vsel %vm469_vm0, %v2123_v27, -inf }
 0x32a   : > { %v2252_v35 = vadd.f32 %v2927_v34, %v2218_v29  ;;  %v2249_v37 = vmax.f32 %v2247_v18, %v2248_v33  ;;  %v2186_v38 = vsel %vm469_vm0, %v2115_v31, -inf }
 0x32b   : > { %v2250_v42 = vadd.f32 %v2928_v41, %v2156_v32  ;;  %v2187_v44 = vmax.f32 %v2185_v20, %v2186_v38 }
 0x32c   : > { %2256 = vst.msk [vmem:[%s437_s23 + $0x10] sm:$0xff] %vm469_vm0, %v2252_v35  ;;  %v2253_v46 = vadd.f32 %v2929_v48, %v2249_v37 }
 0x32d   : > { %2254 = vst.msk [vmem:[%s437_s23] sm:$0xff] %vm469_vm0, %v2250_v42  ;;  %v2251_v49 = vadd.f32 %v2930_v56, %v2187_v44 }
 0x32e   : > { %2257 = vst.msk [vmem:[%s437_s23 + $0x18] sm:$0xff] %vm469_vm0, %v2253_v46 }
 0x32f   : > { %2255 = vst.msk [vmem:[%s437_s23 + $0x8] sm:$0xff] %vm469_vm0, %v2251_v49 }
 0x330 PF: > { %s19_s11 = sadd.s32 1, %s2953_s11   ;;  %s3517_s30 = smov %s2949_s10 }
 0x331   : > { %p16_p5 = scmp.ge.s32.totalorder %s19_s11, 4   ;;  %s3518_s10 = smov %s3520_s12 }
 0x333   :  { %18 = sbr.rel (!%p16_p5) target bundleno = 2 (0x2), region = 89 }

// kernel: feature_extraction_forward.15
= control target key start
LH: loop header
LB: loop body
LE: loop exit
PB: predicated region body
PF: predicated region fallthrough
CT: control target
= control target key end

     0   :  { %vm33_vm0 = vcmask 261120   ;;  %vm171_vm1 = vcmask 785408   ;;  %s336_s1 = inlined_call_operand.vmem [shape: f32[32,96], index: 1, kind: input, shape index: {}]   ;;  %s337_s0 = inlined_call_operand.vmem [shape: f32[64,32], index: 0, kind: input, shape index: {}]   ;;  %s338_s2 = inlined_call_operand.vmem [shape: f32[1,96], index: 2, kind: input, shape index: {}]   ;;  %s339_s3 = inlined_call_operand.vmem [shape: f32[64,96], index: 3, kind: output, shape index: {}]  }
   0x1   :  { %v22_v0 = vld [vmem:[%s336_s1] sm:$0xff]  ;;  %v23_v1 = vld [vmem:[%s336_s1 + $0x8] sm:$0xff]  ;;  %v24_v2 = vld [vmem:[%s336_s1 + $0x10] sm:$0xff] }
   0x2   :  { %v225_v3 = vpack.c.bf16 %v23_v1, %v22_v0  ;;  %v25_v4 = vld [vmem:[%s336_s1 + $0x18] sm:$0xff]  ;;  %v14_v5 = vld [vmem:[%s337_s0] sm:$0xff]  ;;  %v15_v8 = vld [vmem:[%s337_s0 + $0x8] sm:$0xff] }
   0x3   :  { %v18_v6 = vld [vmem:[%s337_s0 + $0x20] sm:$0xff]  ;;  %v229_v7 = vpack.c.bf16 %v25_v4, %v24_v2  ;;  %213 = vmatprep.mubr.msk.f32.mxu0 %vm33_vm0, %v14_v5  ;;  %v19_v9 = vld [vmem:[%s337_s0 + $0x28] sm:$0xff]  ;;  %v16_v10 = vld [vmem:[%s337_s0 + $0x10] sm:$0xff] }
   0x4   :  { %219 = vmatprep.mubr.msk.f32.mxu1 %vm33_vm0, %v18_v6  ;;  %226 = vmatprep.subr.bf16.mxu0 %v225_v3  ;;  %v20_v11 = vld [vmem:[%s337_s0 + $0x30] sm:$0xff]  ;;  %v17_v12 = vld [vmem:[%s337_s0 + $0x18] sm:$0xff]  ;;  %v184_v14 = vld [vmem:[%s338_s2] ss:$0 sm:$0xff] }
   0x5   :  { %233 = vmatprep.subr.bf16.mxu1 %v225_v3  ;;  %228 = vmatpush3.bf16.msra.mxu0 %v225_v3  ;;  %v21_v13 = vld [vmem:[%s337_s0 + $0x38] sm:$0xff] }
   0x6   :  { %235 = vmatpush3.bf16.msra.mxu1 %v225_v3  ;;  %230 = vmatprep.subr.bf16.mxu0 %v229_v7 }
   0x7   :  { %234 = vmatprep.subr.bf16.mxu1 %v229_v7 }
   0x9   :  { %232 = vmatpush3.bf16.msra.mxu0 %v229_v7 }
   0xa   :  { %236 = vmatpush3.bf16.msra.mxu1 %v229_v7 }
   0xc   :  { %214 = vmatmul.mubr.msk.f32.vlgmr.msra.gmra.mrb[0].mxu0 %vm33_vm0, %v15_v8 }
   0xd   :  { %220 = vmatmul.mubr.msk.f32.vlgmr.msra.gmra.mrb[0].mxu1 %vm33_vm0, %v19_v9  ;;  %216 = vmatprep.mubr.msk.f32.mxu0 %vm33_vm0, %v16_v10 }
   0xe   :  { %222 = vmatprep.mubr.msk.f32.mxu1 %vm33_vm0, %v20_v11 }
  0x10   :  { %217 = vmatmul.mubr.msk.f32.gmra.mrb[2].mxu0 %vm33_vm0, %v17_v12 }
  0x11   :  { %223 = vmatmul.mubr.msk.f32.gmra.mrb[2].mxu1 %vm33_vm0, %v21_v13 }
  0xdf   :  { %v215_v15 = vpop.f32.mrb[0].mxu0 }
  0xe0   :  { %v221_v16 = vpop.f32.mrb[0].mxu1  ;;  %v130_v17 = vadd.f32 %v215_v15, %v184_v14  ;;  %v124_v19 = vpop.f32.mrb[1].mxu0 }
  0xe1   :  { %v150_v18 = vadd.f32 %v221_v16, %v184_v14  ;;  %v144_v20 = vpop.f32.mrb[1].mxu1  ;;  %v125_v21 = vadd.f32 %v184_v14, %v124_v19 }
  0xe2   :  { %v145_v22 = vadd.f32 %v184_v14, %v144_v20  ;;  %v164_v23 = vmax.f32 %v130_v17, 0.0 }
  0xe3   :  { %v168_v24 = vmax.f32 %v150_v18, 0.0  ;;  %v163_v25 = vmax.f32 %v125_v21, 0.0  ;;  %v218_v27 = vpop.f32.mrb[2].mxu0 }
  0xe4   :  { %v167_v26 = vmax.f32 %v145_v22, 0.0  ;;  %v224_v28 = vpop.f32.mrb[2].mxu1  ;;  %173 = vst.msk [vmem:[%s339_s3 + $0x8] sm:$0xff] %vm171_vm1, %v164_v23  ;;  %v140_v29 = vadd.f32 %v218_v27, %v184_v14  ;;  %v134_v31 = vpop.f32.mrb[3].mxu0 }
  0xe5   :  { %177 = vst.msk [vmem:[%s339_s3 + $0x28] sm:$0xff] %vm171_vm1, %v168_v24  ;;  %v160_v30 = vadd.f32 %v224_v28, %v184_v14  ;;  %v154_v32 = vpop.f32.mrb[3].mxu1  ;;  %172 = vst.msk [vmem:[%s339_s3] sm:$0xff] %vm171_vm1, %v163_v25  ;;  %v135_v33 = vadd.f32 %v184_v14, %v134_v31 }
  0xe6   :  { %176 = vst.msk [vmem:[%s339_s3 + $0x20] sm:$0xff] %vm171_vm1, %v167_v26  ;;  %v155_v34 = vadd.f32 %v184_v14, %v154_v32  ;;  %v166_v35 = vmax.f32 %v140_v29, 0.0 }
  0xe7   :  { %v170_v36 = vmax.f32 %v160_v30, 0.0  ;;  %v165_v37 = vmax.f32 %v135_v33, 0.0 }
  0xe8   :  { %v169_v38 = vmax.f32 %v155_v34, 0.0  ;;  %175 = vst.msk [vmem:[%s339_s3 + $0x18] sm:$0xff] %vm171_vm1, %v166_v35 }
  0xe9   :  { %179 = vst.msk [vmem:[%s339_s3 + $0x38] sm:$0xff] %vm171_vm1, %v170_v36  ;;  %174 = vst.msk [vmem:[%s339_s3 + $0x10] sm:$0xff] %vm171_vm1, %v165_v37 }
  0xea   :  { %178 = vst.msk [vmem:[%s339_s3 + $0x30] sm:$0xff] %vm171_vm1, %v169_v38 }

// kernel: feature_extraction_forward.17
= control target key start
LH: loop header
LB: loop body
LE: loop exit
PB: predicated region body
PF: predicated region fallthrough
CT: control target
= control target key end

     0   :  { %s3039_s30 = smov 0   ;;  %s3041_s10 = smov 0   ;;  %s3565_s0 = inlined_call_operand.vmem [shape: f32[2,3,32,32], index: 0, kind: input, shape index: {}]   ;;  %s3566_s1 = inlined_call_operand.vmem [shape: bf16[2,16,32,32], index: 1, kind: input, shape index: {}]   ;;  %s3567_s2 = inlined_call_operand.vmem [shape: bf16[32,128], index: 2, kind: input, shape index: {}]   ;;  %s3568_s3 = inlined_call_operand.vmem [shape: bf16[32,128], index: 3, kind: input, shape index: {}]   ;;  %s3569_s4 = inlined_call_operand.vmem [shape: f32[1,128], index: 4, kind: input, shape index: {}]   ;;  %s3570_s5 = inlined_call_operand.vmem [shape: bf16[128,128], index: 5, kind: input, shape index: {}]   ;;  %s3571_s6 = inlined_call_operand.vmem [shape: f32[1,128], index: 6, kind: input, shape index: {}]   ;;  %s3572_s7 = inlined_call_operand.vmem [shape: bf16[128,32], index: 7, kind: input, shape index: {}]   ;;  %s3573_s8 = inlined_call_operand.vmem [shape: f32[1,32], index: 8, kind: input, shape index: {}]   ;;  %s3574_s9 = inlined_call_operand.vmem [shape: f32[2,3,32,32], index: 9, kind: output, shape index: {}]  }
   0x1   :  { %s3043_s11 = smov 0   ;;  %s3045_s12 = smov 0  }
   0x2   :  { %s3047_s13 = smov 0  }
   0x3 LB: > { %s31_s14 = sadd.s32 1, %s2979_s11  ;;  %s38_s15 = sadd.s32 1, %s2983_s12  ;;  %s2987_s13 = sphi %s3047_s13, %s19_s13   ;;  %s2983_s12 = sphi %s3045_s12, %s3578_s12   ;;  %s2979_s11 = sphi %s3043_s11, %s3577_s11   ;;  %s2975_s10 = sphi %s3041_s10, %s3576_s10   ;;  %s2971_s30 = sphi %s3039_s30, %s3575_s30  }
   0x4   : > { %p32_p0 = scmp.ge.s32.totalorder %s31_s14, 3  ;;  %p2395_p1 = scmp.ge.s32.totalorder %s2987_s13, 1 }
   0x5   : > { %p340_p2 = scmp.lt.s32.totalorder %s2987_s13, 7 }
   0x6   : > { %s3580_s14 = smov (%p32_p0, %s31_s14), 0  ;;  %s3582_s15 = smov (!%p32_p0, %s38_s15), %s2983_s12 }
   0x7   : > { %p341_p3 = pnand %p2395_p1, %p340_p2  ;;  %p40_p4 = scmp.ge.s32.totalorder %s3582_s15, 2 }
   0x8   : > { %v2893_v0 = vld [vmem:[%s3568_s3] sm:$0xff] (!%p341_p3)   ;;  %p402_p5 = scmp.lt.s32.totalorder (!%p341_p3), %s2975_s10, 1  ;;  %v2895_v2 = vld [vmem:[%s3568_s3 + $0x8] sm:$0xff] (!%p341_p3)   ;;  %p404_p6 = scmp.lt.s32.totalorder (!%p341_p3), %s2971_s30, 2  ;;  %vm469_vm0 = vcmask (!%p341_p3), 261120   ;;  %v2931_v30 = vld [vmem:[%s3570_s5 + $0x10] sm:$0xff] (!%p341_p3)  }
   0x9   : > { %s3584_s15 = smov (%p40_p4, %s3582_s15), 0  ;;  %344 = sbr.rel (%p341_p3) target bundleno = 821 (0x335), region = 56 }
   0xa   : > { %v2894_v1 = vld [vmem:[%s3567_s2] sm:$0xff] (!%p341_p3)   ;;  %2848 = vmatprep.subr.bf16.mxu1 (!%p341_p3), %v2893_v0  ;;  %v2896_v3 = vld [vmem:[%s3567_s2 + $0x8] sm:$0xff] (!%p341_p3)   ;;  %v2932_v33 = vld [vmem:[%s3570_s5 + $0x18] sm:$0xff] (!%p341_p3)  }
   0xb   : > { %2612 = vmatprep.subr.bf16.mxu0 (!%p341_p3), %v2894_v1  ;;  %2850 = vmatpush3.bf16.msra.mxu1 (!%p341_p3), %v2893_v0  ;;  %v2929_v16 = vld [vmem:[%s3570_s5] sm:$0xff] (!%p341_p3)   ;;  %v2930_v29 = vld [vmem:[%s3570_s5 + $0x8] sm:$0xff] (!%p341_p3)   ;;  %v2935_v48 = vld [vmem:[%s3570_s5 + $0x30] sm:$0xff] (!%p341_p3)  }
   0xc   : > { %2613 = vmatpush3.bf16.msra.mxu0 (!%p341_p3), %v2894_v1  ;;  %2849 = vmatprep.subr.bf16.mxu1 (!%p341_p3), %v2895_v2  ;;  %v2933_v36 = vld [vmem:[%s3570_s5 + $0x20] sm:$0xff] (!%p341_p3)   ;;  %v2934_v37 = vld [vmem:[%s3570_s5 + $0x28] sm:$0xff] (!%p341_p3)   ;;  %v2936_v49 = vld [vmem:[%s3570_s5 + $0x38] sm:$0xff] (!%p341_p3)  }
   0xd   : > { %2614 = vmatprep.subr.bf16.mxu0 (!%p341_p3), %v2896_v3  ;;  %v2402_v54 = vld [vmem:[%s3569_s4] ss:$0 sm:$0xff] (!%p341_p3) }
   0xf   : > { %2851 = vmatpush3.bf16.msra.mxu1 (!%p341_p3), %v2895_v2 }
  0x10   : > { %s3586_s10 = smov (!%p402_p5, %s2975_s10), 1  ;;  %s3588_s30 = smov (!%p404_p6, %s2971_s30), 2  ;;  %2615 = vmatpush3.bf16.msra.mxu0 %v2896_v3 }
  0x11   : > { %s2493_s24 = sshll.u32 %s3586_s10, 8  ;;  %s2852_s28 = smul.u32 12, %s3586_s10  ;;  %2620 = vmatprep.subr.bf16.mxu0 %v2893_v0 }
  0x12   : > { %s3087_s27 = scalar_lea.vmem %s3566_s1, %s2493_s24  ;;  %s2396_s29 = sshll.u32 %s3588_s30, 2 }
  0x13   : > { %v2897_v4 = vld [vmem:[%s3087_s27 + $0x70] sm:$0xff]   ;;  %v2898_v5 = vld [vmem:[%s3087_s27 + $0x78] sm:$0xff]   ;;  %v2899_v6 = vld [vmem:[%s3087_s27 + $0x80] sm:$0xff]   ;;  %s3094_s16 = sadd.s32 %s2852_s28, %s2396_s29 }
  0x14   : > { %2652 = vmatprep.mubr.msk.bf16.mxu1 %vm469_vm0, %v2897_v4  ;;  %s2397_s17 = sshll.u32 %s3094_s16, 3  ;;  %v2901_v7 = vld [vmem:[%s3087_s27] sm:$0xff]   ;;  %v2900_v14 = vld [vmem:[%s3087_s27 + $0x88] sm:$0xff]   ;;  %v2903_v15 = vld [vmem:[%s3087_s27 + $0x90] sm:$0xff]  }
  0x15   : > { %2653 = vmatmul.mubr.msk.bf16.vlgmr.msra.gmra.mrb[0].mxu1 %vm469_vm0, %v2898_v5  ;;  %s3103_s19 = scalar_lea.vmem %s3565_s0, %s2397_s17  ;;  %v2902_v17 = vld [vmem:[%s3087_s27 + $0x8] sm:$0xff]   ;;  %v2905_v18 = vld [vmem:[%s3087_s27 + $0x10] sm:$0xff]   ;;  %v2904_v19 = vld [vmem:[%s3087_s27 + $0x98] sm:$0xff]   ;;  %s437_s21 = scalar_lea.vmem %s3574_s9, %s2397_s17 }
  0x16   : > { %2656 = vmatprep.mubr.msk.bf16.mxu1 %vm469_vm0, %v2899_v6  ;;  %v440_v8 = vld [vmem:[%s3103_s19] sm:$0xff]  ;;  %v441_v9 = vld [vmem:[%s3103_s19 + $0x8] sm:$0xff]  ;;  %v442_v10 = vld [vmem:[%s3103_s19 + $0x10] sm:$0xff] }
  0x17   : > { %v444_v11 = vpack.c.bf16 %v441_v9, %v440_v8  ;;  %v443_v12 = vld [vmem:[%s3103_s19 + $0x18] sm:$0xff]  ;;  %v2907_v20 = vld [vmem:[%s3087_s27 + $0xa0] sm:$0xff]   ;;  %v2908_v23 = vld [vmem:[%s3087_s27 + $0xa8] sm:$0xff]  }
  0x18   : > { %v445_v13 = vpack.c.bf16 %v443_v12, %v442_v10  ;;  %v2906_v21 = vld [vmem:[%s3087_s27 + $0x18] sm:$0xff]   ;;  %v2909_v22 = vld [vmem:[%s3087_s27 + $0x20] sm:$0xff]   ;;  %v2911_v24 = vld [vmem:[%s3087_s27 + $0xb0] sm:$0xff]  }
  0x19   : > { %2616 = vmatprep.mubr.msk.bf16.mxu0 %vm469_vm0, %v444_v11  ;;  %v2910_v25 = vld [vmem:[%s3087_s27 + $0x28] sm:$0xff]   ;;  %v2913_v26 = vld [vmem:[%s3087_s27 + $0x30] sm:$0xff]   ;;  %v2912_v27 = vld [vmem:[%s3087_s27 + $0xb8] sm:$0xff]  }
  0x1a   : > { %2617 = vmatmul.mubr.msk.bf16.vlgmr.msra.gmra.mrb[0].mxu0 %vm469_vm0, %v445_v13  ;;  %v2915_v28 = vld [vmem:[%s3087_s27 + $0xc0] sm:$0xff]   ;;  %v2914_v31 = vld [vmem:[%s3087_s27 + $0x38] sm:$0xff]   ;;  %v2916_v34 = vld [vmem:[%s3087_s27 + $0xc8] sm:$0xff]  }
  0x1b   : > { %2621 = vmatpush3.bf16.msra.mxu0 %v2893_v0  ;;  %2624 = vmatprep.mubr.msk.bf16.mxu0 %vm469_vm0, %v2901_v7  ;;  %v2917_v32 = vld [vmem:[%s3087_s27 + $0x40] sm:$0xff]   ;;  %v2919_v35 = vld [vmem:[%s3087_s27 + $0xd0] sm:$0xff]   ;;  %v2918_v38 = vld [vmem:[%s3087_s27 + $0x48] sm:$0xff]  }
  0x1c   : > { %2622 = vmatprep.subr.bf16.mxu0 %v2895_v2  ;;  %v2921_v39 = vld [vmem:[%s3087_s27 + $0x50] sm:$0xff]   ;;  %v2920_v40 = vld [vmem:[%s3087_s27 + $0xd8] sm:$0xff]   ;;  %v2923_v41 = vld [vmem:[%s3087_s27 + $0xe0] sm:$0xff]  }
  0x1d   : > { %2657 = vmatmul.mubr.msk.bf16.gmra.mrb[4].mxu1 %vm469_vm0, %v2900_v14  ;;  %v2922_v42 = vld [vmem:[%s3087_s27 + $0x58] sm:$0xff]   ;;  %v2925_v43 = vld [vmem:[%s3087_s27 + $0x60] sm:$0xff]   ;;  %v2924_v44 = vld [vmem:[%s3087_s27 + $0xe8] sm:$0xff]  }
  0x1e   : > { %2660 = vmatprep.mubr.msk.bf16.mxu1 %vm469_vm0, %v2903_v15  ;;  %v2927_v45 = vld [vmem:[%s3087_s27 + $0xf0] sm:$0xff]   ;;  %v2926_v46 = vld [vmem:[%s3087_s27 + $0x68] sm:$0xff]   ;;  %v2928_v47 = vld [vmem:[%s3087_s27 + $0xf8] sm:$0xff]  }
  0x1f   : > { %2623 = vmatpush3.bf16.msra.mxu0 %v2895_v2 }
  0x20   : > { %2688 = vmatprep.subr.bf16.mxu0 %v2929_v16 }
  0x22   : > { %2625 = vmatmul.mubr.msk.bf16.vlgmr.msra.gmra.mrb[4].mxu0 %vm469_vm0, %v2902_v17 }
  0x23   : > { %2628 = vmatprep.mubr.msk.bf16.mxu0 %vm469_vm0, %v2905_v18  ;;  %2689 = vmatpush3.bf16.msra.mxu0 %v2929_v16 }
  0x24   : > { %2690 = vmatprep.subr.bf16.mxu0 %v2930_v29 }
  0x25   : > { %2661 = vmatmul.mubr.msk.bf16.gmra.mrb[8].mxu1 %vm469_vm0, %v2904_v19 }
  0x26   : > { %2664 = vmatprep.mubr.msk.bf16.mxu1 %vm469_vm0, %v2907_v20 }
  0x27   : > { %2691 = vmatpush3.bf16.msra.mxu0 %v2930_v29 }
  0x28   : > { %2692 = vmatprep.subr.bf16.mxu0 %v2931_v30 }
  0x2a   : > { %2629 = vmatmul.mubr.msk.bf16.gmra.mrb[8].mxu0 %vm469_vm0, %v2906_v21 }
  0x2b   : > { %2632 = vmatprep.mubr.msk.bf16.mxu0 %vm469_vm0, %v2909_v22  ;;  %2693 = vmatpush3.bf16.msra.mxu0 %v2931_v30 }
  0x2c   : > { %2694 = vmatprep.subr.bf16.mxu0 %v2932_v33 }
  0x2d   : > { %2665 = vmatmul.mubr.msk.bf16.gmra.mrb[12].mxu1 %vm469_vm0, %v2908_v23 }
  0x2e   : > { %2668 = vmatprep.mubr.msk.bf16.mxu1 %vm469_vm0, %v2911_v24 }
  0x2f   : > { %2695 = vmatpush3.bf16.msra.mxu0 %v2932_v33  ;;  %v2937_v33 = vld [vmem:[%s3572_s7] sm:$0xff]  }
  0x30   : > { %2696 = vmatprep.subr.bf16.mxu0 %v2933_v36  ;;  %2768 = vmatprep.subr.bf16.mxu1 %v2937_v33 }
  0x31   : > { %2769 = vmatpush3.bf16.msra.mxu1 %v2937_v33 }
  0x32   : > { %2633 = vmatmul.mubr.msk.bf16.gmra.mrb[12].mxu0 %vm469_vm0, %v2910_v25 }
  0x33   : > { %2636 = vmatprep.mubr.msk.bf16.mxu0 %vm469_vm0, %v2913_v26  ;;  %2697 = vmatpush3.bf16.msra.mxu0 %v2933_v36 }
  0x34   : > { %2698 = vmatprep.subr.bf16.mxu0 %v2934_v37 }
  0x35   : > { %2669 = vmatmul.mubr.msk.bf16.gmra.mrb[16].mxu1 %vm469_vm0, %v2912_v27 }
  0x36   : > { %2672 = vmatprep.mubr.msk.bf16.mxu1 %vm469_vm0, %v2915_v28 }
  0x37   : > { %2699 = vmatpush3.bf16.msra.mxu0 %v2934_v37 }
  0x38   : > { %2700 = vmatprep.subr.bf16.mxu0 %v2935_v48 }
  0x3a   : > { %2637 = vmatmul.mubr.msk.bf16.gmra.mrb[16].mxu0 %vm469_vm0, %v2914_v31 }
  0x3b   : > { %2640 = vmatprep.mubr.msk.bf16.mxu0 %vm469_vm0, %v2917_v32  ;;  %2701 = vmatpush3.bf16.msra.mxu0 %v2935_v48  ;;  %v2939_v48 = vld [vmem:[%s3572_s7 + $0x10] sm:$0xff]  }
  0x3c   : > { %2702 = vmatprep.subr.bf16.mxu0 %v2936_v49 }
  0x3d   : > { %2673 = vmatmul.mubr.msk.bf16.gmra.mrb[20].mxu1 %vm469_vm0, %v2916_v34  ;;  %v2938_v34 = vld [vmem:[%s3572_s7 + $0x8] sm:$0xff]  }
  0x3e   : > { %2676 = vmatprep.mubr.msk.bf16.mxu1 %vm469_vm0, %v2919_v35  ;;  %2770 = vmatprep.subr.bf16.mxu1 %v2938_v34 }
  0x3f   : > { %2703 = vmatpush3.bf16.msra.mxu0 %v2936_v49  ;;  %2771 = vmatpush3.bf16.msra.mxu1 %v2938_v34 }
  0x40   : > { %2772 = vmatprep.subr.bf16.mxu1 %v2939_v48 }
  0x42   : > { %2641 = vmatmul.mubr.msk.bf16.gmra.mrb[20].mxu0 %vm469_vm0, %v2918_v38 }
  0x43   : > { %2644 = vmatprep.mubr.msk.bf16.mxu0 %vm469_vm0, %v2921_v39  ;;  %2773 = vmatpush3.bf16.msra.mxu1 %v2939_v48 }
  0x45   : > { %2677 = vmatmul.mubr.msk.bf16.gmra.mrb[24].mxu1 %vm469_vm0, %v2920_v40 }
  0x46   : > { %2680 = vmatprep.mubr.msk.bf16.mxu1 %vm469_vm0, %v2923_v41 }
  0x4a   : > { %2645 = vmatmul.mubr.msk.bf16.gmra.mrb[24].mxu0 %vm469_vm0, %v2922_v42 }
  0x4b   : > { %2648 = vmatprep.mubr.msk.bf16.mxu0 %vm469_vm0, %v2925_v43 }
  0x4d   : > { %2681 = vmatmul.mubr.msk.bf16.gmra.mrb[28].mxu1 %vm469_vm0, %v2924_v44 }
  0x4e   : > { %2684 = vmatprep.mubr.msk.bf16.mxu1 %vm469_vm0, %v2927_v45 }
  0x52   : > { %2649 = vmatmul.mubr.msk.bf16.gmra.mrb[28].mxu0 %vm469_vm0, %v2926_v46 }
  0x55   : > { %2685 = vmatmul.mubr.msk.bf16.gmra.mrb[32].mxu1 %vm469_vm0, %v2928_v47 }
  0xe8   : > { %v2654_v50 = vpop.f32.mrb[0].mxu1 }
  0xe9   : > { %v1007_v51 = vpop.f32.mrb[1].mxu1 }
  0xea   : > { %v2655_v52 = vpop.f32.mrb[2].mxu1 }
  0xeb   : > { %v1010_v53 = vpop.f32.mrb[3].mxu1 }
  0xed   : > { %v2618_v55 = vpop.f32.mrb[0].mxu0 }
  0xee   : > { %v3197_v56 = vadd.f32 %v2618_v55, %v2402_v54  ;;  %v510_v57 = vpop.f32.mrb[1].mxu0 }
  0xef   : > { %v3199_v58 = vadd.f32 %v2402_v54, %v510_v57  ;;  %v2619_v59 = vpop.f32.mrb[2].mxu0 }
  0xf0   : > { %v2658_v60 = vpop.f32.mrb[4].mxu1  ;;  %v3201_v61 = vadd.f32 %v2619_v59, %v2402_v54  ;;  %v1180_v62 = vadd.f32 %v2654_v50, %v3197_v56  ;;  %v513_v63 = vpop.f32.mrb[3].mxu0 }
  0xf1   : > { %v1184_v0 = vadd.f32 %v2658_v60, %v3197_v56  ;;  %v1023_v1 = vpop.f32.mrb[5].mxu1  ;;  %v3205_v2 = vadd.f32 %v2402_v54, %v513_v63  ;;  %v1178_v3 = vadd.f32 %v1007_v51, %v3199_v58 }
  0xf2   : > { %v1182_v4 = vadd.f32 %v1023_v1, %v3199_v58  ;;  %v2659_v5 = vpop.f32.mrb[6].mxu1  ;;  %v1181_v6 = vadd.f32 %v2655_v52, %v3201_v61  ;;  %v1244_v11 = vmax.f32 %v1180_v62, 0.0 }
  0xf3   : > { %v1185_v7 = vadd.f32 %v2659_v5, %v3201_v61  ;;  %v1026_v8 = vpop.f32.mrb[7].mxu1  ;;  %v1179_v9 = vadd.f32 %v1010_v53, %v3205_v2  ;;  %v1248_v13 = vmax.f32 %v1184_v0, 0.0  ;;  %v1242_v15 = vmax.f32 %v1178_v3, 0.0 }
  0xf4   : > { %v1183_v10 = vadd.f32 %v1026_v8, %v3205_v2  ;;  %v1245_v12 = vmax.f32 %v1181_v6, 0.0  ;;  %v1246_v17 = vmax.f32 %v1182_v4, 0.0  ;;  %v2940_v4 = vld [vmem:[%s3572_s7 + $0x18] sm:$0xff]  }
  0xf5   : > { %v1249_v14 = vmax.f32 %v1185_v7, 0.0  ;;  %v1243_v16 = vmax.f32 %v1179_v9, 0.0  ;;  %v2626_v18 = vpop.f32.mrb[4].mxu0  ;;  %2774 = vmatprep.subr.bf16.mxu1 %v2940_v4 }
  0xf6   : > { %v1247_v19 = vmax.f32 %v1183_v10, 0.0  ;;  %v3213_v20 = vpack.c.bf16 %v1245_v12, %v1244_v11  ;;  %v1152_v21 = vadd.f32 %v2626_v18, %v3197_v56  ;;  %v895_v23 = vpop.f32.mrb[5].mxu0  ;;  %v2941_v18 = vld [vmem:[%s3572_s7 + $0x20] sm:$0xff]   ;;  %2775 = vmatpush3.bf16.msra.mxu1 %v2940_v4 }
  0xf7   : > { %v3216_v22 = vpack.c.bf16 %v1249_v14, %v1248_v13  ;;  %v3218_v24 = vpack.c.bf16 %v1243_v16, %v1242_v15  ;;  %v1150_v25 = vadd.f32 %v895_v23, %v3199_v58  ;;  %v2627_v27 = vpop.f32.mrb[6].mxu0  ;;  %2776 = vmatprep.subr.bf16.mxu1 %v2941_v18 }
  0xf8   : > { %v3221_v26 = vpack.c.bf16 %v1247_v19, %v1246_v17  ;;  %v2662_v28 = vpop.f32.mrb[8].mxu1  ;;  %v1153_v29 = vadd.f32 %v2627_v27, %v3201_v61  ;;  %v898_v30 = vpop.f32.mrb[7].mxu0  ;;  %v1216_v38 = vmax.f32 %v1152_v21, 0.0 }
  0xf9   : > { %v1188_v31 = vadd.f32 %v2662_v28, %v3197_v56  ;;  %v1039_v32 = vpop.f32.mrb[9].mxu1  ;;  %v1151_v35 = vadd.f32 %v898_v30, %v3205_v2  ;;  %v1214_v42 = vmax.f32 %v1150_v25, 0.0 }
  0xfa   : > { %v1186_v36 = vadd.f32 %v1039_v32, %v3199_v58  ;;  %v2663_v37 = vpop.f32.mrb[10].mxu1  ;;  %v1217_v39 = vmax.f32 %v1153_v29, 0.0  ;;  %2777 = vmatpush3.bf16.msra.mxu1 %v2941_v18 }
  0xfb   : > { %v1189_v40 = vadd.f32 %v2663_v37, %v3201_v61  ;;  %v1042_v41 = vpop.f32.mrb[11].mxu1  ;;  %v1215_v43 = vmax.f32 %v1151_v35, 0.0  ;;  %v1252_v46 = vmax.f32 %v1188_v31, 0.0 }
  0xfc   : > { %v1187_v44 = vadd.f32 %v1042_v41, %v3205_v2  ;;  %v1279_v45 = vpack.c.bf16 %v1217_v39, %v1216_v38  ;;  %v1250_v50 = vmax.f32 %v1186_v36, 0.0  ;;  %v2942_v38 = vld [vmem:[%s3572_s7 + $0x28] sm:$0xff]  }
  0xfd   : > { %v1253_v47 = vmax.f32 %v1189_v40, 0.0  ;;  %v1278_v49 = vpack.c.bf16 %v1215_v43, %v1214_v42  ;;  %v2630_v51 = vpop.f32.mrb[8].mxu0  ;;  %2778 = vmatprep.subr.bf16.mxu1 %v2942_v38 }
  0xfe   : > { %v1251_v52 = vmax.f32 %v1187_v44, 0.0  ;;  %v1156_v53 = vadd.f32 %v2630_v51, %v3197_v56  ;;  %v911_v55 = vpop.f32.mrb[9].mxu0  ;;  %2779 = vmatpush3.bf16.msra.mxu1 %v2942_v38 }
  0xff   : > { %v3239_v54 = vpack.c.bf16 %v1253_v47, %v1252_v46  ;;  %v1154_v57 = vadd.f32 %v911_v55, %v3199_v58  ;;  %v2631_v60 = vpop.f32.mrb[10].mxu0  ;;  %2704 = vmatprep.mubr.bf16.mxu0 %v1278_v49 }
 0x100   : > { %v3242_v59 = vpack.c.bf16 %v1251_v52, %v1250_v50  ;;  %v2666_v62 = vpop.f32.mrb[12].mxu1  ;;  %v1157_v63 = vadd.f32 %v2631_v60, %v3201_v61  ;;  %v914_v0 = vpop.f32.mrb[11].mxu0  ;;  %2705 = vmatmul.mubr.bf16.vlgmr.msra.gmra.mrb[32].mxu0 %v1279_v45  ;;  %v1220_v8 = vmax.f32 %v1156_v53, 0.0  ;;  %v2943_v52 = vld [vmem:[%s3572_s7 + $0x30] sm:$0xff]  }
 0x101   : > { %v1192_v1 = vadd.f32 %v2666_v62, %v3197_v56  ;;  %v1055_v3 = vpop.f32.mrb[13].mxu1  ;;  %v1155_v5 = vadd.f32 %v914_v0, %v3205_v2  ;;  %v1218_v12 = vmax.f32 %v1154_v57, 0.0  ;;  %2780 = vmatprep.subr.bf16.mxu1 %v2943_v52 }
 0x102   : > { %v1190_v6 = vadd.f32 %v1055_v3, %v3199_v58  ;;  %v2667_v7 = vpop.f32.mrb[14].mxu1  ;;  %v1221_v9 = vmax.f32 %v1157_v63, 0.0  ;;  %2781 = vmatpush3.bf16.msra.mxu1 %v2943_v52 }
 0x103   : > { %v1193_v10 = vadd.f32 %v2667_v7, %v3201_v61  ;;  %v1058_v11 = vpop.f32.mrb[15].mxu1  ;;  %v1219_v13 = vmax.f32 %v1155_v5, 0.0  ;;  %v1256_v16 = vmax.f32 %v1192_v1, 0.0 }
 0x104   : > { %v1191_v14 = vadd.f32 %v1058_v11, %v3205_v2  ;;  %v1281_v15 = vpack.c.bf16 %v1221_v9, %v1220_v8  ;;  %v1254_v21 = vmax.f32 %v1190_v6, 0.0 }
 0x105   : > { %v1257_v17 = vmax.f32 %v1193_v10, 0.0  ;;  %v1280_v19 = vpack.c.bf16 %v1219_v13, %v1218_v12  ;;  %v2634_v23 = vpop.f32.mrb[12].mxu0 }
 0x106   : > { %v1255_v25 = vmax.f32 %v1191_v14, 0.0  ;;  %v1160_v27 = vadd.f32 %v2634_v23, %v3197_v56  ;;  %v927_v29 = vpop.f32.mrb[13].mxu0 }
 0x107   : > { %v3257_v28 = vpack.c.bf16 %v1257_v17, %v1256_v16  ;;  %v1158_v30 = vadd.f32 %v927_v29, %v3199_v58  ;;  %v2635_v32 = vpop.f32.mrb[14].mxu0  ;;  %2708 = vmatprep.mubr.bf16.mxu0 %v1280_v19 }
 0x108   : > { %v3260_v31 = vpack.c.bf16 %v1255_v25, %v1254_v21  ;;  %v2670_v33 = vpop.f32.mrb[16].mxu1  ;;  %v1161_v34 = vadd.f32 %v2635_v32, %v3201_v61  ;;  %v930_v35 = vpop.f32.mrb[15].mxu0  ;;  %2709 = vmatmul.mubr.bf16.gmra.mrb[36].mxu0 %v1281_v15  ;;  %v1224_v42 = vmax.f32 %v1160_v27, 0.0 }
 0x109   : > { %v1196_v36 = vadd.f32 %v2670_v33, %v3197_v56  ;;  %v1071_v37 = vpop.f32.mrb[17].mxu1  ;;  %v1159_v39 = vadd.f32 %v930_v35, %v3205_v2  ;;  %v1222_v46 = vmax.f32 %v1158_v30, 0.0 }
 0x10a   : > { %v1194_v40 = vadd.f32 %v1071_v37, %v3199_v58  ;;  %v2671_v41 = vpop.f32.mrb[18].mxu1  ;;  %v1225_v43 = vmax.f32 %v1161_v34, 0.0 }
 0x10b   : > { %v1197_v44 = vadd.f32 %v2671_v41, %v3201_v61  ;;  %v1074_v45 = vpop.f32.mrb[19].mxu1  ;;  %v1223_v47 = vmax.f32 %v1159_v39, 0.0  ;;  %v1260_v50 = vmax.f32 %v1196_v36, 0.0 }
 0x10c   : > { %v1195_v48 = vadd.f32 %v1074_v45, %v3205_v2  ;;  %v1283_v49 = vpack.c.bf16 %v1225_v43, %v1224_v42  ;;  %v1258_v55 = vmax.f32 %v1194_v40, 0.0 }
 0x10d   : > { %v1261_v51 = vmax.f32 %v1197_v44, 0.0  ;;  %v1282_v53 = vpack.c.bf16 %v1223_v47, %v1222_v46  ;;  %v2638_v57 = vpop.f32.mrb[16].mxu0 }
 0x10e   : > { %v1259_v60 = vmax.f32 %v1195_v48, 0.0  ;;  %v1164_v62 = vadd.f32 %v2638_v57, %v3197_v56  ;;  %v943_v0 = vpop.f32.mrb[17].mxu0 }
 0x10f   : > { %v3275_v63 = vpack.c.bf16 %v1261_v51, %v1260_v50  ;;  %v1162_v1 = vadd.f32 %v943_v0, %v3199_v58  ;;  %v2639_v4 = vpop.f32.mrb[18].mxu0  ;;  %2712 = vmatprep.mubr.bf16.mxu0 %v1282_v53 }
 0x110   : > { %v3278_v3 = vpack.c.bf16 %v1259_v60, %v1258_v55  ;;  %v2674_v5 = vpop.f32.mrb[20].mxu1  ;;  %v1165_v6 = vadd.f32 %v2639_v4, %v3201_v61  ;;  %v946_v7 = vpop.f32.mrb[19].mxu0  ;;  %2713 = vmatmul.mubr.bf16.gmra.mrb[40].mxu0 %v1283_v49  ;;  %v1228_v13 = vmax.f32 %v1164_v62, 0.0 }
 0x111   : > { %v1200_v8 = vadd.f32 %v2674_v5, %v3197_v56  ;;  %v1087_v9 = vpop.f32.mrb[21].mxu1  ;;  %v1163_v10 = vadd.f32 %v946_v7, %v3205_v2  ;;  %v1226_v17 = vmax.f32 %v1162_v1, 0.0 }
 0x112   : > { %v1198_v11 = vadd.f32 %v1087_v9, %v3199_v58  ;;  %v2675_v12 = vpop.f32.mrb[22].mxu1  ;;  %v1229_v14 = vmax.f32 %v1165_v6, 0.0 }
 0x113   : > { %v1201_v15 = vadd.f32 %v2675_v12, %v3201_v61  ;;  %v1090_v16 = vpop.f32.mrb[23].mxu1  ;;  %v1227_v18 = vmax.f32 %v1163_v10, 0.0  ;;  %v1264_v23 = vmax.f32 %v1200_v8, 0.0 }
 0x114   : > { %v1199_v19 = vadd.f32 %v1090_v16, %v3205_v2  ;;  %v1285_v21 = vpack.c.bf16 %v1229_v14, %v1228_v13  ;;  %v1262_v29 = vmax.f32 %v1198_v11, 0.0 }
 0x115   : > { %v1265_v25 = vmax.f32 %v1201_v15, 0.0  ;;  %v1284_v27 = vpack.c.bf16 %v1227_v18, %v1226_v17  ;;  %v2642_v30 = vpop.f32.mrb[20].mxu0 }
 0x116   : > { %v1263_v32 = vmax.f32 %v1199_v19, 0.0  ;;  %v1168_v33 = vadd.f32 %v2642_v30, %v3197_v56  ;;  %v959_v35 = vpop.f32.mrb[21].mxu0 }
 0x117   : > { %v3287_v34 = vpack.c.bf16 %v1265_v25, %v1264_v23  ;;  %v1166_v36 = vadd.f32 %v959_v35, %v3199_v58  ;;  %v2643_v38 = vpop.f32.mrb[22].mxu0  ;;  %2716 = vmatprep.mubr.bf16.mxu0 %v1284_v27 }
 0x118   : > { %v3290_v37 = vpack.c.bf16 %v1263_v32, %v1262_v29  ;;  %v2678_v39 = vpop.f32.mrb[24].mxu1  ;;  %v1169_v40 = vadd.f32 %v2643_v38, %v3201_v61  ;;  %v962_v41 = vpop.f32.mrb[23].mxu0  ;;  %2717 = vmatmul.mubr.bf16.gmra.mrb[44].mxu0 %v1285_v21  ;;  %v1232_v47 = vmax.f32 %v1168_v33, 0.0 }
 0x119   : > { %v1204_v42 = vadd.f32 %v2678_v39, %v3197_v56  ;;  %v1103_v43 = vpop.f32.mrb[25].mxu1  ;;  %v1167_v44 = vadd.f32 %v962_v41, %v3205_v2  ;;  %v1230_v51 = vmax.f32 %v1166_v36, 0.0 }
 0x11a   : > { %v1202_v45 = vadd.f32 %v1103_v43, %v3199_v58  ;;  %v2679_v46 = vpop.f32.mrb[26].mxu1  ;;  %v1233_v48 = vmax.f32 %v1169_v40, 0.0 }
 0x11b   : > { %v1205_v49 = vadd.f32 %v2679_v46, %v3201_v61  ;;  %v1106_v50 = vpop.f32.mrb[27].mxu1  ;;  %v1231_v52 = vmax.f32 %v1167_v44, 0.0  ;;  %v1268_v57 = vmax.f32 %v1204_v42, 0.0 }
 0x11c   : > { %v1203_v53 = vadd.f32 %v1106_v50, %v3205_v2  ;;  %v1287_v55 = vpack.c.bf16 %v1233_v48, %v1232_v47  ;;  %v1266_v0 = vmax.f32 %v1202_v45, 0.0 }
 0x11d   : > { %v1269_v60 = vmax.f32 %v1205_v49, 0.0  ;;  %v1286_v62 = vpack.c.bf16 %v1231_v52, %v1230_v51  ;;  %v2646_v1 = vpop.f32.mrb[24].mxu0 }
 0x11e   : > { %v1267_v4 = vmax.f32 %v1203_v53, 0.0  ;;  %v1172_v5 = vadd.f32 %v2646_v1, %v3197_v56  ;;  %v975_v7 = vpop.f32.mrb[25].mxu0 }
 0x11f   : > { %v3299_v6 = vpack.c.bf16 %v1269_v60, %v1268_v57  ;;  %v1170_v8 = vadd.f32 %v975_v7, %v3199_v58  ;;  %v2647_v10 = vpop.f32.mrb[26].mxu0  ;;  %2720 = vmatprep.mubr.bf16.mxu0 %v1286_v62 }
 0x120   : > { %v3302_v9 = vpack.c.bf16 %v1267_v4, %v1266_v0  ;;  %v2682_v11 = vpop.f32.mrb[28].mxu1  ;;  %v1173_v12 = vadd.f32 %v2647_v10, %v3201_v61  ;;  %v978_v13 = vpop.f32.mrb[27].mxu0  ;;  %2721 = vmatmul.mubr.bf16.gmra.mrb[48].mxu0 %v1287_v55  ;;  %v1236_v19 = vmax.f32 %v1172_v5, 0.0 }
 0x121   : > { %v1208_v14 = vadd.f32 %v2682_v11, %v3197_v56  ;;  %v1119_v15 = vpop.f32.mrb[29].mxu1  ;;  %v1171_v16 = vadd.f32 %v978_v13, %v3205_v2  ;;  %v1234_v27 = vmax.f32 %v1170_v8, 0.0 }
 0x122   : > { %v1206_v17 = vadd.f32 %v1119_v15, %v3199_v58  ;;  %v2683_v18 = vpop.f32.mrb[30].mxu1  ;;  %v1237_v21 = vmax.f32 %v1173_v12, 0.0 }
 0x123   : > { %v1209_v23 = vadd.f32 %v2683_v18, %v3201_v61  ;;  %v1122_v25 = vpop.f32.mrb[31].mxu1  ;;  %v1235_v29 = vmax.f32 %v1171_v16, 0.0  ;;  %v1272_v33 = vmax.f32 %v1208_v14, 0.0 }
 0x124   : > { %v1207_v30 = vadd.f32 %v1122_v25, %v3205_v2  ;;  %v1289_v32 = vpack.c.bf16 %v1237_v21, %v1236_v19  ;;  %v1270_v38 = vmax.f32 %v1206_v17, 0.0 }
 0x125   : > { %v1273_v35 = vmax.f32 %v1209_v23, 0.0  ;;  %v1288_v36 = vpack.c.bf16 %v1235_v29, %v1234_v27  ;;  %v2650_v39 = vpop.f32.mrb[28].mxu0 }
 0x126   : > { %v1271_v40 = vmax.f32 %v1207_v30, 0.0  ;;  %v1176_v41 = vadd.f32 %v2650_v39, %v3197_v56  ;;  %v991_v43 = vpop.f32.mrb[29].mxu0 }
 0x127   : > { %v1307_v42 = vpack.c.bf16 %v1273_v35, %v1272_v33  ;;  %v1174_v44 = vadd.f32 %v991_v43, %v3199_v58  ;;  %v2651_v46 = vpop.f32.mrb[30].mxu0  ;;  %2724 = vmatprep.mubr.bf16.mxu0 %v1288_v36 }
 0x128   : > { %v1306_v45 = vpack.c.bf16 %v1271_v40, %v1270_v38  ;;  %v2686_v47 = vpop.f32.mrb[32].mxu1  ;;  %v1177_v48 = vadd.f32 %v2651_v46, %v3201_v61  ;;  %v994_v49 = vpop.f32.mrb[31].mxu0  ;;  %2725 = vmatmul.mubr.bf16.gmra.mrb[52].mxu0 %v1289_v32  ;;  %v1240_v57 = vmax.f32 %v1176_v41, 0.0 }
 0x129   : > { %v1212_v50 = vadd.f32 %v2686_v47, %v3197_v56  ;;  %v1135_v51 = vpop.f32.mrb[33].mxu1  ;;  %v1175_v52 = vadd.f32 %v994_v49, %v3205_v2  ;;  %v1238_v1 = vmax.f32 %v1174_v44, 0.0 }
 0x12a   : > { %v1210_v53 = vadd.f32 %v1135_v51, %v3199_v58  ;;  %v2687_v55 = vpop.f32.mrb[34].mxu1  ;;  %v1241_v60 = vmax.f32 %v1177_v48, 0.0  ;;  %v2944_v58 = vld [vmem:[%s3572_s7 + $0x38] sm:$0xff]  }
 0x12b   : > { %v1213_v62 = vadd.f32 %v2687_v55, %v3201_v61  ;;  %v1138_v0 = vpop.f32.mrb[35].mxu1  ;;  %v1239_v4 = vmax.f32 %v1175_v52, 0.0  ;;  %v1276_v8 = vmax.f32 %v1212_v50, 0.0  ;;  %2782 = vmatprep.subr.bf16.mxu1 %v2944_v58  ;;  %v3338_v61 = vld [vmem:[%s3571_s6] ss:$0 sm:$0xff] }
 0x12c   : > { %v1211_v5 = vadd.f32 %v1138_v0, %v3205_v2  ;;  %v1291_v7 = vpack.c.bf16 %v1241_v60, %v1240_v57  ;;  %v1274_v56 = vmax.f32 %v1210_v53, 0.0  ;;  %2783 = vmatpush3.bf16.msra.mxu1 %v2944_v58 }
 0x12d   : > { %v1277_v10 = vmax.f32 %v1213_v62, 0.0  ;;  %v1290_v11 = vpack.c.bf16 %v1239_v4, %v1238_v1 }
 0x12e   : > { %v1275_v12 = vmax.f32 %v1211_v5, 0.0 }
 0x12f   : > { %v1309_v13 = vpack.c.bf16 %v1277_v10, %v1276_v8  ;;  %2728 = vmatprep.mubr.bf16.mxu0 %v1290_v11 }
 0x130   : > { %v1308_v14 = vpack.c.bf16 %v1275_v12, %v1274_v56  ;;  %2729 = vmatmul.mubr.bf16.gmra.mrb[56].mxu0 %v1291_v7 }
 0x131   : > { %2732 = vmatprep.mubr.bf16.mxu0 %v3218_v24 }
 0x138   : > { %2733 = vmatmul.mubr.bf16.gmra.mrb[60].mxu0 %v3213_v20 }
 0x139   : > { %2736 = vmatprep.mubr.bf16.mxu0 %v3221_v26 }
 0x140   : > { %2737 = vmatmul.mubr.bf16.gmra.mrb[64].mxu0 %v3216_v22 }
 0x141   : > { %2740 = vmatprep.mubr.bf16.mxu0 %v3242_v59 }
 0x148   : > { %2741 = vmatmul.mubr.bf16.gmra.mrb[68].mxu0 %v3239_v54 }
 0x149   : > { %2744 = vmatprep.mubr.bf16.mxu0 %v3260_v31 }
 0x150   : > { %2745 = vmatmul.mubr.bf16.gmra.mrb[72].mxu0 %v3257_v28 }
 0x151   : > { %2748 = vmatprep.mubr.bf16.mxu0 %v3278_v3 }
 0x158   : > { %2749 = vmatmul.mubr.bf16.gmra.mrb[76].mxu0 %v3275_v63 }
 0x159   : > { %2752 = vmatprep.mubr.bf16.mxu0 %v3290_v37 }
 0x160   : > { %2753 = vmatmul.mubr.bf16.gmra.mrb[80].mxu0 %v3287_v34 }
 0x161   : > { %2756 = vmatprep.mubr.bf16.mxu0 %v3302_v9 }
 0x168   : > { %2757 = vmatmul.mubr.bf16.gmra.mrb[84].mxu0 %v3299_v6 }
 0x169   : > { %2760 = vmatprep.mubr.bf16.mxu0 %v1306_v45 }
 0x170   : > { %2761 = vmatmul.mubr.bf16.gmra.mrb[88].mxu0 %v1307_v42 }
 0x171   : > { %2764 = vmatprep.mubr.bf16.mxu0 %v1308_v14 }
 0x178   : > { %2765 = vmatmul.mubr.bf16.gmra.mrb[92].mxu0 %v1309_v13 }
 0x1d3   : > { %v2706_v2 = vpop.f32.mrb[32].mxu0 }
 0x1d4   : > { %v1424_v20 = vadd.f32 %v2706_v2, %v3338_v61  ;;  %v1415_v22 = vpop.f32.mrb[33].mxu0 }
 0x1d5   : > { %v1416_v24 = vadd.f32 %v3338_v61, %v1415_v22  ;;  %v2707_v26 = vpop.f32.mrb[34].mxu0 }
 0x1d6   : > { %v1427_v54 = vadd.f32 %v2707_v26, %v3338_v61  ;;  %v1418_v59 = vpop.f32.mrb[35].mxu0  ;;  %v1672_v31 = vmax.f32 %v1424_v20, 0.0 }
 0x1d7   : > { %v1419_v28 = vadd.f32 %v3338_v61, %v1418_v59  ;;  %v1670_v3 = vmax.f32 %v1416_v24, 0.0 }
 0x1d8   : > { %v1673_v63 = vmax.f32 %v1427_v54, 0.0 }
 0x1d9   : > { %v1671_v34 = vmax.f32 %v1419_v28, 0.0 }
 0x1da   : > { %v1735_v37 = vpack.c.bf16 %v1673_v63, %v1672_v31 }
 0x1db   : > { %v1734_v6 = vpack.c.bf16 %v1671_v34, %v1670_v3  ;;  %v2710_v9 = vpop.f32.mrb[36].mxu0 }
 0x1dc   : > { %v1440_v15 = vadd.f32 %v2710_v9, %v3338_v61  ;;  %v1431_v16 = vpop.f32.mrb[37].mxu0 }
 0x1dd   : > { %v1432_v17 = vadd.f32 %v3338_v61, %v1431_v16  ;;  %v2711_v18 = vpop.f32.mrb[38].mxu0  ;;  %2784 = vmatprep.mubr.bf16.mxu1 %v1734_v6 }
 0x1de   : > { %v1443_v19 = vadd.f32 %v2711_v18, %v3338_v61  ;;  %v1434_v21 = vpop.f32.mrb[39].mxu0  ;;  %2785 = vmatmul.mubr.bf16.vlgmr.msra.gmra.mrb[36].mxu1 %v1735_v37  ;;  %v1676_v25 = vmax.f32 %v1440_v15, 0.0 }
 0x1df   : > { %v1435_v23 = vadd.f32 %v3338_v61, %v1434_v21  ;;  %v1674_v29 = vmax.f32 %v1432_v17, 0.0 }
 0x1e0   : > { %v1677_v27 = vmax.f32 %v1443_v19, 0.0 }
 0x1e1   : > { %v1675_v30 = vmax.f32 %v1435_v23, 0.0 }
 0x1e2   : > { %v1737_v32 = vpack.c.bf16 %v1677_v27, %v1676_v25 }
 0x1e3   : > { %v1736_v33 = vpack.c.bf16 %v1675_v30, %v1674_v29  ;;  %v2714_v35 = vpop.f32.mrb[40].mxu0 }
 0x1e4   : > { %v1456_v36 = vadd.f32 %v2714_v35, %v3338_v61  ;;  %v1447_v38 = vpop.f32.mrb[41].mxu0 }
 0x1e5   : > { %v1448_v39 = vadd.f32 %v3338_v61, %v1447_v38  ;;  %v2715_v40 = vpop.f32.mrb[42].mxu0  ;;  %2788 = vmatprep.mubr.bf16.mxu1 %v1736_v33 }
 0x1e6   : > { %v1459_v41 = vadd.f32 %v2715_v40, %v3338_v61  ;;  %v1450_v42 = vpop.f32.mrb[43].mxu0  ;;  %2789 = vmatmul.mubr.bf16.gmra.mrb[40].mxu1 %v1737_v32  ;;  %v1680_v44 = vmax.f32 %v1456_v36, 0.0 }
 0x1e7   : > { %v1451_v43 = vadd.f32 %v3338_v61, %v1450_v42  ;;  %v1678_v46 = vmax.f32 %v1448_v39, 0.0 }
 0x1e8   : > { %v1681_v45 = vmax.f32 %v1459_v41, 0.0 }
 0x1e9   : > { %v1679_v47 = vmax.f32 %v1451_v43, 0.0 }
 0x1ea   : > { %v1739_v48 = vpack.c.bf16 %v1681_v45, %v1680_v44 }
 0x1eb   : > { %v1738_v49 = vpack.c.bf16 %v1679_v47, %v1678_v46  ;;  %v2718_v50 = vpop.f32.mrb[44].mxu0 }
 0x1ec   : > { %v1472_v51 = vadd.f32 %v2718_v50, %v3338_v61  ;;  %v1463_v52 = vpop.f32.mrb[45].mxu0 }
 0x1ed   : > { %v1464_v53 = vadd.f32 %v3338_v61, %v1463_v52  ;;  %v2719_v55 = vpop.f32.mrb[46].mxu0  ;;  %2792 = vmatprep.mubr.bf16.mxu1 %v1738_v49 }
 0x1ee   : > { %v1475_v57 = vadd.f32 %v2719_v55, %v3338_v61  ;;  %v1466_v60 = vpop.f32.mrb[47].mxu0  ;;  %2793 = vmatmul.mubr.bf16.gmra.mrb[44].mxu1 %v1739_v48  ;;  %v1684_v0 = vmax.f32 %v1472_v51, 0.0 }
 0x1ef   : > { %v1467_v62 = vadd.f32 %v3338_v61, %v1466_v60  ;;  %v1682_v4 = vmax.f32 %v1464_v53, 0.0 }
 0x1f0   : > { %v1685_v1 = vmax.f32 %v1475_v57, 0.0 }
 0x1f1   : > { %v1683_v5 = vmax.f32 %v1467_v62, 0.0 }
 0x1f2   : > { %v1741_v7 = vpack.c.bf16 %v1685_v1, %v1684_v0 }
 0x1f3   : > { %v1740_v8 = vpack.c.bf16 %v1683_v5, %v1682_v4  ;;  %v2722_v10 = vpop.f32.mrb[48].mxu0 }
 0x1f4   : > { %v1488_v11 = vadd.f32 %v2722_v10, %v3338_v61  ;;  %v1479_v56 = vpop.f32.mrb[49].mxu0 }
 0x1f5   : > { %v1480_v12 = vadd.f32 %v3338_v61, %v1479_v56  ;;  %v2723_v13 = vpop.f32.mrb[50].mxu0  ;;  %2796 = vmatprep.mubr.bf16.mxu1 %v1740_v8 }
 0x1f6   : > { %v1491_v14 = vadd.f32 %v2723_v13, %v3338_v61  ;;  %v1482_v58 = vpop.f32.mrb[51].mxu0  ;;  %2797 = vmatmul.mubr.bf16.gmra.mrb[48].mxu1 %v1741_v7  ;;  %v1688_v20 = vmax.f32 %v1488_v11, 0.0 }
 0x1f7   : > { %v1483_v2 = vadd.f32 %v3338_v61, %v1482_v58  ;;  %v1686_v24 = vmax.f32 %v1480_v12, 0.0 }
 0x1f8   : > { %v1689_v22 = vmax.f32 %v1491_v14, 0.0 }
 0x1f9   : > { %v1687_v26 = vmax.f32 %v1483_v2, 0.0 }
 0x1fa   : > { %v1743_v54 = vpack.c.bf16 %v1689_v22, %v1688_v20 }
 0x1fb   : > { %v1742_v59 = vpack.c.bf16 %v1687_v26, %v1686_v24  ;;  %v2726_v28 = vpop.f32.mrb[52].mxu0 }
 0x1fc   : > { %v1504_v31 = vadd.f32 %v2726_v28, %v3338_v61  ;;  %v1495_v63 = vpop.f32.mrb[53].mxu0 }
 0x1fd   : > { %v1496_v3 = vadd.f32 %v3338_v61, %v1495_v63  ;;  %v2727_v34 = vpop.f32.mrb[54].mxu0  ;;  %2800 = vmatprep.mubr.bf16.mxu1 %v1742_v59 }
 0x1fe   : > { %v1507_v37 = vadd.f32 %v2727_v34, %v3338_v61  ;;  %v1498_v6 = vpop.f32.mrb[55].mxu0  ;;  %2801 = vmatmul.mubr.bf16.gmra.mrb[52].mxu1 %v1743_v54  ;;  %v1692_v15 = vmax.f32 %v1504_v31, 0.0 }
 0x1ff   : > { %v1499_v9 = vadd.f32 %v3338_v61, %v1498_v6  ;;  %v1690_v17 = vmax.f32 %v1496_v3, 0.0 }
 0x200   : > { %v1693_v16 = vmax.f32 %v1507_v37, 0.0 }
 0x201   : > { %v1691_v18 = vmax.f32 %v1499_v9, 0.0 }
 0x202   : > { %v1745_v19 = vpack.c.bf16 %v1693_v16, %v1692_v15 }
 0x203   : > { %v1744_v21 = vpack.c.bf16 %v1691_v18, %v1690_v17  ;;  %v2730_v23 = vpop.f32.mrb[56].mxu0 }
 0x204   : > { %v1520_v25 = vadd.f32 %v2730_v23, %v3338_v61  ;;  %v1511_v27 = vpop.f32.mrb[57].mxu0 }
 0x205   : > { %v1512_v29 = vadd.f32 %v3338_v61, %v1511_v27  ;;  %v2731_v30 = vpop.f32.mrb[58].mxu0  ;;  %2804 = vmatprep.mubr.bf16.mxu1 %v1744_v21 }
 0x206   : > { %v1523_v32 = vadd.f32 %v2731_v30, %v3338_v61  ;;  %v1514_v33 = vpop.f32.mrb[59].mxu0  ;;  %2805 = vmatmul.mubr.bf16.gmra.mrb[56].mxu1 %v1745_v19  ;;  %v1696_v36 = vmax.f32 %v1520_v25, 0.0 }
 0x207   : > { %v1515_v35 = vadd.f32 %v3338_v61, %v1514_v33  ;;  %v1694_v39 = vmax.f32 %v1512_v29, 0.0 }
 0x208   : > { %v1697_v38 = vmax.f32 %v1523_v32, 0.0 }
 0x209   : > { %v1695_v40 = vmax.f32 %v1515_v35, 0.0 }
 0x20a   : > { %v1747_v41 = vpack.c.bf16 %v1697_v38, %v1696_v36 }
 0x20b   : > { %v1746_v42 = vpack.c.bf16 %v1695_v40, %v1694_v39  ;;  %v2734_v43 = vpop.f32.mrb[60].mxu0 }
 0x20c   : > { %v1536_v44 = vadd.f32 %v2734_v43, %v3338_v61  ;;  %v1527_v45 = vpop.f32.mrb[61].mxu0 }
 0x20d   : > { %v1528_v46 = vadd.f32 %v3338_v61, %v1527_v45  ;;  %v2735_v47 = vpop.f32.mrb[62].mxu0  ;;  %2808 = vmatprep.mubr.bf16.mxu1 %v1746_v42 }
 0x20e   : > { %v1539_v48 = vadd.f32 %v2735_v47, %v3338_v61  ;;  %v1530_v49 = vpop.f32.mrb[63].mxu0  ;;  %2809 = vmatmul.mubr.bf16.gmra.mrb[60].mxu1 %v1747_v41  ;;  %v1700_v51 = vmax.f32 %v1536_v44, 0.0 }
 0x20f   : > { %v1531_v50 = vadd.f32 %v3338_v61, %v1530_v49  ;;  %v1698_v53 = vmax.f32 %v1528_v46, 0.0 }
 0x210   : > { %v1701_v52 = vmax.f32 %v1539_v48, 0.0 }
 0x211   : > { %v1699_v55 = vmax.f32 %v1531_v50, 0.0 }
 0x212   : > { %v1749_v57 = vpack.c.bf16 %v1701_v52, %v1700_v51 }
 0x213   : > { %v1748_v60 = vpack.c.bf16 %v1699_v55, %v1698_v53  ;;  %v2738_v62 = vpop.f32.mrb[64].mxu0 }
 0x214   : > { %v1552_v0 = vadd.f32 %v2738_v62, %v3338_v61  ;;  %v1543_v1 = vpop.f32.mrb[65].mxu0 }
 0x215   : > { %v1544_v4 = vadd.f32 %v3338_v61, %v1543_v1  ;;  %v2739_v5 = vpop.f32.mrb[66].mxu0  ;;  %2812 = vmatprep.mubr.bf16.mxu1 %v1748_v60 }
 0x216   : > { %v1555_v7 = vadd.f32 %v2739_v5, %v3338_v61  ;;  %v1546_v8 = vpop.f32.mrb[67].mxu0  ;;  %2813 = vmatmul.mubr.bf16.gmra.mrb[64].mxu1 %v1749_v57  ;;  %v1704_v11 = vmax.f32 %v1552_v0, 0.0 }
 0x217   : > { %v1547_v10 = vadd.f32 %v3338_v61, %v1546_v8  ;;  %v1702_v12 = vmax.f32 %v1544_v4, 0.0 }
 0x218   : > { %v1705_v56 = vmax.f32 %v1555_v7, 0.0 }
 0x219   : > { %v1703_v13 = vmax.f32 %v1547_v10, 0.0 }
 0x21a   : > { %v1751_v14 = vpack.c.bf16 %v1705_v56, %v1704_v11 }
 0x21b   : > { %v1750_v58 = vpack.c.bf16 %v1703_v13, %v1702_v12  ;;  %v2742_v2 = vpop.f32.mrb[68].mxu0 }
 0x21c   : > { %v1568_v20 = vadd.f32 %v2742_v2, %v3338_v61  ;;  %v1559_v22 = vpop.f32.mrb[69].mxu0 }
 0x21d   : > { %v1560_v24 = vadd.f32 %v3338_v61, %v1559_v22  ;;  %v2743_v26 = vpop.f32.mrb[70].mxu0  ;;  %2816 = vmatprep.mubr.bf16.mxu1 %v1750_v58 }
 0x21e   : > { %v1571_v54 = vadd.f32 %v2743_v26, %v3338_v61  ;;  %v1562_v59 = vpop.f32.mrb[71].mxu0  ;;  %2817 = vmatmul.mubr.bf16.gmra.mrb[68].mxu1 %v1751_v14  ;;  %v1708_v31 = vmax.f32 %v1568_v20, 0.0 }
 0x21f   : > { %v1563_v28 = vadd.f32 %v3338_v61, %v1562_v59  ;;  %v1706_v3 = vmax.f32 %v1560_v24, 0.0 }
 0x220   : > { %v1709_v63 = vmax.f32 %v1571_v54, 0.0 }
 0x221   : > { %v1707_v34 = vmax.f32 %v1563_v28, 0.0 }
 0x222   : > { %v1753_v37 = vpack.c.bf16 %v1709_v63, %v1708_v31 }
 0x223   : > { %v1752_v6 = vpack.c.bf16 %v1707_v34, %v1706_v3  ;;  %v2746_v9 = vpop.f32.mrb[72].mxu0 }
 0x224   : > { %v1584_v15 = vadd.f32 %v2746_v9, %v3338_v61  ;;  %v1575_v16 = vpop.f32.mrb[73].mxu0 }
 0x225   : > { %v1576_v17 = vadd.f32 %v3338_v61, %v1575_v16  ;;  %v2747_v18 = vpop.f32.mrb[74].mxu0  ;;  %2820 = vmatprep.mubr.bf16.mxu1 %v1752_v6 }
 0x226   : > { %v1587_v19 = vadd.f32 %v2747_v18, %v3338_v61  ;;  %v1578_v21 = vpop.f32.mrb[75].mxu0  ;;  %2821 = vmatmul.mubr.bf16.gmra.mrb[72].mxu1 %v1753_v37  ;;  %v1712_v25 = vmax.f32 %v1584_v15, 0.0 }
 0x227   : > { %v1579_v23 = vadd.f32 %v3338_v61, %v1578_v21  ;;  %v1710_v29 = vmax.f32 %v1576_v17, 0.0 }
 0x228   : > { %v1713_v27 = vmax.f32 %v1587_v19, 0.0 }
 0x229   : > { %v1711_v30 = vmax.f32 %v1579_v23, 0.0 }
 0x22a   : > { %v1755_v32 = vpack.c.bf16 %v1713_v27, %v1712_v25 }
 0x22b   : > { %v1754_v33 = vpack.c.bf16 %v1711_v30, %v1710_v29  ;;  %v2750_v35 = vpop.f32.mrb[76].mxu0 }
 0x22c   : > { %v1600_v36 = vadd.f32 %v2750_v35, %v3338_v61  ;;  %v1591_v38 = vpop.f32.mrb[77].mxu0 }
 0x22d   : > { %v1592_v39 = vadd.f32 %v3338_v61, %v1591_v38  ;;  %v2751_v40 = vpop.f32.mrb[78].mxu0  ;;  %2824 = vmatprep.mubr.bf16.mxu1 %v1754_v33 }
 0x22e   : > { %v1603_v41 = vadd.f32 %v2751_v40, %v3338_v61  ;;  %v1594_v42 = vpop.f32.mrb[79].mxu0  ;;  %2825 = vmatmul.mubr.bf16.gmra.mrb[76].mxu1 %v1755_v32  ;;  %v1716_v44 = vmax.f32 %v1600_v36, 0.0 }
 0x22f   : > { %v1595_v43 = vadd.f32 %v3338_v61, %v1594_v42  ;;  %v1714_v46 = vmax.f32 %v1592_v39, 0.0 }
 0x230   : > { %v1717_v45 = vmax.f32 %v1603_v41, 0.0 }
 0x231   : > { %v1715_v47 = vmax.f32 %v1595_v43, 0.0 }
 0x232   : > { %v1757_v48 = vpack.c.bf16 %v1717_v45, %v1716_v44 }
 0x233   : > { %v1756_v49 = vpack.c.bf16 %v1715_v47, %v1714_v46  ;;  %v2754_v50 = vpop.f32.mrb[80].mxu0  ;;  %v3407_v47 = vld [vmem:[%s3573_s8] ss:$0 sm:$0xff] }
 0x234   : > { %v1616_v51 = vadd.f32 %v2754_v50, %v3338_v61  ;;  %v1607_v52 = vpop.f32.mrb[81].mxu0 }
 0x235   : > { %v1608_v53 = vadd.f32 %v3338_v61, %v1607_v52  ;;  %v2755_v55 = vpop.f32.mrb[82].mxu0  ;;  %2828 = vmatprep.mubr.bf16.mxu1 %v1756_v49 }
 0x236   : > { %v1619_v57 = vadd.f32 %v2755_v55, %v3338_v61  ;;  %v1610_v60 = vpop.f32.mrb[83].mxu0  ;;  %2829 = vmatmul.mubr.bf16.gmra.mrb[80].mxu1 %v1757_v48  ;;  %v1720_v0 = vmax.f32 %v1616_v51, 0.0 }
 0x237   : > { %v1611_v62 = vadd.f32 %v3338_v61, %v1610_v60  ;;  %v1718_v4 = vmax.f32 %v1608_v53, 0.0 }
 0x238   : > { %v1721_v1 = vmax.f32 %v1619_v57, 0.0 }
 0x239   : > { %v1719_v5 = vmax.f32 %v1611_v62, 0.0 }
 0x23a   : > { %v1759_v7 = vpack.c.bf16 %v1721_v1, %v1720_v0 }
 0x23b   : > { %v1758_v8 = vpack.c.bf16 %v1719_v5, %v1718_v4  ;;  %v2758_v10 = vpop.f32.mrb[84].mxu0 }
 0x23c   : > { %v1632_v11 = vadd.f32 %v2758_v10, %v3338_v61  ;;  %v1623_v56 = vpop.f32.mrb[85].mxu0 }
 0x23d   : > { %v1624_v12 = vadd.f32 %v3338_v61, %v1623_v56  ;;  %v2759_v13 = vpop.f32.mrb[86].mxu0  ;;  %2832 = vmatprep.mubr.bf16.mxu1 %v1758_v8 }
 0x23e   : > { %v1635_v14 = vadd.f32 %v2759_v13, %v3338_v61  ;;  %v1626_v58 = vpop.f32.mrb[87].mxu0  ;;  %2833 = vmatmul.mubr.bf16.gmra.mrb[84].mxu1 %v1759_v7  ;;  %v1724_v20 = vmax.f32 %v1632_v11, 0.0 }
 0x23f   : > { %v1627_v2 = vadd.f32 %v3338_v61, %v1626_v58  ;;  %v1722_v24 = vmax.f32 %v1624_v12, 0.0 }
 0x240   : > { %v1725_v22 = vmax.f32 %v1635_v14, 0.0 }
 0x241   : > { %v1723_v26 = vmax.f32 %v1627_v2, 0.0 }
 0x242   : > { %v1761_v54 = vpack.c.bf16 %v1725_v22, %v1724_v20 }
 0x243   : > { %v1760_v59 = vpack.c.bf16 %v1723_v26, %v1722_v24  ;;  %v2762_v28 = vpop.f32.mrb[88].mxu0 }
 0x244   : > { %v1648_v31 = vadd.f32 %v2762_v28, %v3338_v61  ;;  %v1639_v63 = vpop.f32.mrb[89].mxu0 }
 0x245   : > { %v1640_v3 = vadd.f32 %v3338_v61, %v1639_v63  ;;  %v2763_v34 = vpop.f32.mrb[90].mxu0  ;;  %2836 = vmatprep.mubr.bf16.mxu1 %v1760_v59 }
 0x246   : > { %v1651_v37 = vadd.f32 %v2763_v34, %v3338_v61  ;;  %v1642_v6 = vpop.f32.mrb[91].mxu0  ;;  %2837 = vmatmul.mubr.bf16.gmra.mrb[88].mxu1 %v1761_v54  ;;  %v1728_v15 = vmax.f32 %v1648_v31, 0.0 }
 0x247   : > { %v1643_v9 = vadd.f32 %v3338_v61, %v1642_v6  ;;  %v1726_v17 = vmax.f32 %v1640_v3, 0.0 }
 0x248   : > { %v1729_v16 = vmax.f32 %v1651_v37, 0.0 }
 0x249   : > { %v1727_v18 = vmax.f32 %v1643_v9, 0.0 }
 0x24a   : > { %v1763_v19 = vpack.c.bf16 %v1729_v16, %v1728_v15 }
 0x24b   : > { %v1762_v21 = vpack.c.bf16 %v1727_v18, %v1726_v17  ;;  %v2766_v23 = vpop.f32.mrb[92].mxu0 }
 0x24c   : > { %v1664_v25 = vadd.f32 %v2766_v23, %v3338_v61  ;;  %v1655_v27 = vpop.f32.mrb[93].mxu0 }
 0x24d   : > { %v1656_v29 = vadd.f32 %v3338_v61, %v1655_v27  ;;  %v2767_v30 = vpop.f32.mrb[94].mxu0  ;;  %2840 = vmatprep.mubr.bf16.mxu1 %v1762_v21 }
 0x24e   : > { %v1667_v32 = vadd.f32 %v2767_v30, %v3338_v61  ;;  %v1658_v33 = vpop.f32.mrb[95].mxu0  ;;  %2841 = vmatmul.mubr.bf16.gmra.mrb[92].mxu1 %v1763_v19  ;;  %v1732_v36 = vmax.f32 %v1664_v25, 0.0 }
 0x24f   : > { %v1659_v35 = vadd.f32 %v3338_v61, %v1658_v33  ;;  %v1730_v39 = vmax.f32 %v1656_v29, 0.0 }
 0x250   : > { %v1733_v38 = vmax.f32 %v1667_v32, 0.0 }
 0x251   : > { %v1731_v40 = vmax.f32 %v1659_v35, 0.0 }
 0x252   : > { %v1765_v41 = vpack.c.bf16 %v1733_v38, %v1732_v36 }
 0x253   : > { %v1764_v42 = vpack.c.bf16 %v1731_v40, %v1730_v39 }
 0x255   : > { %2844 = vmatprep.mubr.bf16.mxu1 %v1764_v42 }
 0x256   : > { %2845 = vmatmul.mubr.bf16.gmra.mrb[96].mxu1 %v1765_v41 }
 0x2b1   : > { %v2786_v43 = vpop.f32.mrb[36].mxu1 }
 0x2b2   : > { %v1871_v44 = vpop.f32.mrb[37].mxu1  ;;  %v1880_v48 = vadd.f32 %v2786_v43, %v3407_v47 }
 0x2b3   : > { %v2787_v45 = vpop.f32.mrb[38].mxu1  ;;  %v1872_v61 = vadd.f32 %v3407_v47, %v1871_v44 }
 0x2b4   : > { %v1874_v46 = vpop.f32.mrb[39].mxu1  ;;  %v1883_v50 = vadd.f32 %v2787_v45, %v3407_v47  ;;  %v2188_v60 = vsel %vm469_vm0, %v1880_v48, -inf }
 0x2b5   : > { %v1875_v53 = vadd.f32 %v3407_v47, %v1874_v46  ;;  %v2126_v4 = vsel %vm469_vm0, %v1872_v61, -inf }
 0x2b6   : > { %v2219_v10 = vsel %vm469_vm0, %v1883_v50, -inf }
 0x2b7   : > { %v2157_v12 = vsel %vm469_vm0, %v1875_v53, -inf }
 0x2b9   : > { %v2790_v49 = vpop.f32.mrb[40].mxu1 }
 0x2ba   : > { %v1896_v51 = vadd.f32 %v2790_v49, %v3407_v47  ;;  %v1887_v52 = vpop.f32.mrb[41].mxu1 }
 0x2bb   : > { %v1888_v55 = vadd.f32 %v3407_v47, %v1887_v52  ;;  %v2791_v57 = vpop.f32.mrb[42].mxu1 }
 0x2bc   : > { %v2189_v62 = vsel %vm469_vm0, %v1896_v51, -inf  ;;  %v1899_v0 = vadd.f32 %v2791_v57, %v3407_v47  ;;  %v1890_v1 = vpop.f32.mrb[43].mxu1 }
 0x2bd   : > { %v2190_v5 = vmax.f32 %v2188_v60, %v2189_v62  ;;  %v2127_v7 = vsel %vm469_vm0, %v1888_v55, -inf  ;;  %v1891_v8 = vadd.f32 %v3407_v47, %v1890_v1 }
 0x2be   : > { %v2128_v11 = vmax.f32 %v2126_v4, %v2127_v7  ;;  %v2220_v56 = vsel %vm469_vm0, %v1899_v0, -inf }
 0x2bf   : > { %v2221_v13 = vmax.f32 %v2219_v10, %v2220_v56  ;;  %v2158_v14 = vsel %vm469_vm0, %v1891_v8, -inf }
 0x2c0   : > { %v2159_v58 = vmax.f32 %v2157_v12, %v2158_v14 }
 0x2c1   : > { %v2794_v2 = vpop.f32.mrb[44].mxu1 }
 0x2c2   : > { %v1912_v20 = vadd.f32 %v2794_v2, %v3407_v47  ;;  %v1903_v22 = vpop.f32.mrb[45].mxu1 }
 0x2c3   : > { %v1904_v24 = vadd.f32 %v3407_v47, %v1903_v22  ;;  %v2795_v26 = vpop.f32.mrb[46].mxu1 }
 0x2c4   : > { %v2191_v54 = vsel %vm469_vm0, %v1912_v20, -inf  ;;  %v1915_v59 = vadd.f32 %v2795_v26, %v3407_v47  ;;  %v1906_v28 = vpop.f32.mrb[47].mxu1 }
 0x2c5   : > { %v2192_v31 = vmax.f32 %v2190_v5, %v2191_v54  ;;  %v2129_v63 = vsel %vm469_vm0, %v1904_v24, -inf  ;;  %v1907_v3 = vadd.f32 %v3407_v47, %v1906_v28 }
 0x2c6   : > { %v2130_v34 = vmax.f32 %v2128_v11, %v2129_v63  ;;  %v2222_v37 = vsel %vm469_vm0, %v1915_v59, -inf }
 0x2c7   : > { %v2223_v6 = vmax.f32 %v2221_v13, %v2222_v37  ;;  %v2160_v9 = vsel %vm469_vm0, %v1907_v3, -inf }
 0x2c8   : > { %v2161_v15 = vmax.f32 %v2159_v58, %v2160_v9 }
 0x2c9   : > { %v2798_v16 = vpop.f32.mrb[48].mxu1 }
 0x2ca   : > { %v1928_v17 = vadd.f32 %v2798_v16, %v3407_v47  ;;  %v1919_v18 = vpop.f32.mrb[49].mxu1 }
 0x2cb   : > { %v1920_v19 = vadd.f32 %v3407_v47, %v1919_v18  ;;  %v2799_v21 = vpop.f32.mrb[50].mxu1 }
 0x2cc   : > { %v2193_v23 = vsel %vm469_vm0, %v1928_v17, -inf  ;;  %v1931_v25 = vadd.f32 %v2799_v21, %v3407_v47  ;;  %v1922_v27 = vpop.f32.mrb[51].mxu1 }
 0x2cd   : > { %v2194_v29 = vmax.f32 %v2192_v31, %v2193_v23  ;;  %v2131_v30 = vsel %vm469_vm0, %v1920_v19, -inf  ;;  %v1923_v32 = vadd.f32 %v3407_v47, %v1922_v27 }
 0x2ce   : > { %v2132_v33 = vmax.f32 %v2130_v34, %v2131_v30  ;;  %v2224_v35 = vsel %vm469_vm0, %v1931_v25, -inf }
 0x2cf   : > { %v2225_v36 = vmax.f32 %v2223_v6, %v2224_v35  ;;  %v2162_v38 = vsel %vm469_vm0, %v1923_v32, -inf }
 0x2d0   : > { %v2163_v39 = vmax.f32 %v2161_v15, %v2162_v38 }
 0x2d1   : > { %v2802_v40 = vpop.f32.mrb[52].mxu1 }
 0x2d2   : > { %v1944_v41 = vadd.f32 %v2802_v40, %v3407_v47  ;;  %v1935_v42 = vpop.f32.mrb[53].mxu1 }
 0x2d3   : > { %v1936_v43 = vadd.f32 %v3407_v47, %v1935_v42  ;;  %v2803_v44 = vpop.f32.mrb[54].mxu1 }
 0x2d4   : > { %v2195_v45 = vsel %vm469_vm0, %v1944_v41, -inf  ;;  %v1947_v46 = vadd.f32 %v2803_v44, %v3407_v47  ;;  %v1938_v48 = vpop.f32.mrb[55].mxu1 }
 0x2d5   : > { %v2196_v61 = vmax.f32 %v2194_v29, %v2195_v45  ;;  %v2133_v49 = vsel %vm469_vm0, %v1936_v43, -inf  ;;  %v1939_v50 = vadd.f32 %v3407_v47, %v1938_v48 }
 0x2d6   : > { %v2134_v51 = vmax.f32 %v2132_v33, %v2133_v49  ;;  %v2226_v52 = vsel %vm469_vm0, %v1947_v46, -inf }
 0x2d7   : > { %v2227_v53 = vmax.f32 %v2225_v36, %v2226_v52  ;;  %v2164_v55 = vsel %vm469_vm0, %v1939_v50, -inf }
 0x2d8   : > { %v2165_v57 = vmax.f32 %v2163_v39, %v2164_v55 }
 0x2d9   : > { %v2806_v60 = vpop.f32.mrb[56].mxu1 }
 0x2da   : > { %v1960_v62 = vadd.f32 %v2806_v60, %v3407_v47  ;;  %v1951_v0 = vpop.f32.mrb[57].mxu1 }
 0x2db   : > { %v1952_v1 = vadd.f32 %v3407_v47, %v1951_v0  ;;  %v2807_v4 = vpop.f32.mrb[58].mxu1 }
 0x2dc   : > { %v2197_v5 = vsel %vm469_vm0, %v1960_v62, -inf  ;;  %v1963_v7 = vadd.f32 %v2807_v4, %v3407_v47  ;;  %v1954_v8 = vpop.f32.mrb[59].mxu1 }
 0x2dd   : > { %v2198_v10 = vmax.f32 %v2196_v61, %v2197_v5  ;;  %v2135_v11 = vsel %vm469_vm0, %v1952_v1, -inf  ;;  %v1955_v56 = vadd.f32 %v3407_v47, %v1954_v8 }
 0x2de   : > { %v2136_v12 = vmax.f32 %v2134_v51, %v2135_v11  ;;  %v2228_v13 = vsel %vm469_vm0, %v1963_v7, -inf }
 0x2df   : > { %v2229_v14 = vmax.f32 %v2227_v53, %v2228_v13  ;;  %v2166_v58 = vsel %vm469_vm0, %v1955_v56, -inf }
 0x2e0   : > { %v2167_v2 = vmax.f32 %v2165_v57, %v2166_v58 }
 0x2e1   : > { %v2810_v20 = vpop.f32.mrb[60].mxu1 }
 0x2e2   : > { %v1976_v22 = vadd.f32 %v2810_v20, %v3407_v47  ;;  %v1967_v24 = vpop.f32.mrb[61].mxu1 }
 0x2e3   : > { %v1968_v26 = vadd.f32 %v3407_v47, %v1967_v24  ;;  %v2811_v54 = vpop.f32.mrb[62].mxu1 }
 0x2e4   : > { %v2199_v59 = vsel %vm469_vm0, %v1976_v22, -inf  ;;  %v1979_v28 = vadd.f32 %v2811_v54, %v3407_v47  ;;  %v1970_v31 = vpop.f32.mrb[63].mxu1 }
 0x2e5   : > { %v2200_v63 = vmax.f32 %v2198_v10, %v2199_v59  ;;  %v2137_v3 = vsel %vm469_vm0, %v1968_v26, -inf  ;;  %v1971_v34 = vadd.f32 %v3407_v47, %v1970_v31 }
 0x2e6   : > { %v2138_v37 = vmax.f32 %v2136_v12, %v2137_v3  ;;  %v2230_v6 = vsel %vm469_vm0, %v1979_v28, -inf }
 0x2e7   : > { %v2231_v9 = vmax.f32 %v2229_v14, %v2230_v6  ;;  %v2168_v15 = vsel %vm469_vm0, %v1971_v34, -inf }
 0x2e8   : > { %v2169_v16 = vmax.f32 %v2167_v2, %v2168_v15 }
 0x2e9   : > { %v2814_v17 = vpop.f32.mrb[64].mxu1 }
 0x2ea   : > { %v1992_v18 = vadd.f32 %v2814_v17, %v3407_v47  ;;  %v1983_v19 = vpop.f32.mrb[65].mxu1 }
 0x2eb   : > { %v1984_v21 = vadd.f32 %v3407_v47, %v1983_v19  ;;  %v2815_v23 = vpop.f32.mrb[66].mxu1 }
 0x2ec   : > { %v2201_v25 = vsel %vm469_vm0, %v1992_v18, -inf  ;;  %v1995_v27 = vadd.f32 %v2815_v23, %v3407_v47  ;;  %v1986_v29 = vpop.f32.mrb[67].mxu1 }
 0x2ed   : > { %v2202_v30 = vmax.f32 %v2200_v63, %v2201_v25  ;;  %v2139_v32 = vsel %vm469_vm0, %v1984_v21, -inf  ;;  %v1987_v33 = vadd.f32 %v3407_v47, %v1986_v29 }
 0x2ee   : > { %v2140_v35 = vmax.f32 %v2138_v37, %v2139_v32  ;;  %v2232_v36 = vsel %vm469_vm0, %v1995_v27, -inf }
 0x2ef   : > { %v2233_v38 = vmax.f32 %v2231_v9, %v2232_v36  ;;  %v2170_v39 = vsel %vm469_vm0, %v1987_v33, -inf }
 0x2f0   : > { %v2171_v40 = vmax.f32 %v2169_v16, %v2170_v39 }
 0x2f1   : > { %v2818_v41 = vpop.f32.mrb[68].mxu1 }
 0x2f2   : > { %v2008_v42 = vadd.f32 %v2818_v41, %v3407_v47  ;;  %v1999_v43 = vpop.f32.mrb[69].mxu1 }
 0x2f3   : > { %v2000_v44 = vadd.f32 %v3407_v47, %v1999_v43  ;;  %v2819_v45 = vpop.f32.mrb[70].mxu1 }
 0x2f4   : > { %v2203_v46 = vsel %vm469_vm0, %v2008_v42, -inf  ;;  %v2011_v48 = vadd.f32 %v2819_v45, %v3407_v47  ;;  %v2002_v61 = vpop.f32.mrb[71].mxu1 }
 0x2f5   : > { %v2204_v49 = vmax.f32 %v2202_v30, %v2203_v46  ;;  %v2141_v50 = vsel %vm469_vm0, %v2000_v44, -inf  ;;  %v2003_v51 = vadd.f32 %v3407_v47, %v2002_v61 }
 0x2f6   : > { %v2142_v52 = vmax.f32 %v2140_v35, %v2141_v50  ;;  %v2234_v53 = vsel %vm469_vm0, %v2011_v48, -inf }
 0x2f7   : > { %v2235_v55 = vmax.f32 %v2233_v38, %v2234_v53  ;;  %v2172_v57 = vsel %vm469_vm0, %v2003_v51, -inf }
 0x2f8   : > { %v2173_v60 = vmax.f32 %v2171_v40, %v2172_v57 }
 0x2f9   : > { %v2822_v62 = vpop.f32.mrb[72].mxu1 }
 0x2fa   : > { %v2024_v0 = vadd.f32 %v2822_v62, %v3407_v47  ;;  %v2015_v1 = vpop.f32.mrb[73].mxu1 }
 0x2fb   : > { %v2016_v4 = vadd.f32 %v3407_v47, %v2015_v1  ;;  %v2823_v5 = vpop.f32.mrb[74].mxu1 }
 0x2fc   : > { %v2205_v7 = vsel %vm469_vm0, %v2024_v0, -inf  ;;  %v2027_v8 = vadd.f32 %v2823_v5, %v3407_v47  ;;  %v2018_v10 = vpop.f32.mrb[75].mxu1 }
 0x2fd   : > { %v2206_v11 = vmax.f32 %v2204_v49, %v2205_v7  ;;  %v2143_v56 = vsel %vm469_vm0, %v2016_v4, -inf  ;;  %v2019_v12 = vadd.f32 %v3407_v47, %v2018_v10 }
 0x2fe   : > { %v2144_v13 = vmax.f32 %v2142_v52, %v2143_v56  ;;  %v2236_v14 = vsel %vm469_vm0, %v2027_v8, -inf }
 0x2ff   : > { %v2237_v58 = vmax.f32 %v2235_v55, %v2236_v14  ;;  %v2174_v2 = vsel %vm469_vm0, %v2019_v12, -inf }
 0x300   : > { %v2175_v20 = vmax.f32 %v2173_v60, %v2174_v2 }
 0x301   : > { %v2826_v22 = vpop.f32.mrb[76].mxu1 }
 0x302   : > { %v2040_v24 = vadd.f32 %v2826_v22, %v3407_v47  ;;  %v2031_v26 = vpop.f32.mrb[77].mxu1 }
 0x303   : > { %v2032_v54 = vadd.f32 %v3407_v47, %v2031_v26  ;;  %v2827_v59 = vpop.f32.mrb[78].mxu1 }
 0x304   : > { %v2207_v28 = vsel %vm469_vm0, %v2040_v24, -inf  ;;  %v2043_v31 = vadd.f32 %v2827_v59, %v3407_v47  ;;  %v2034_v63 = vpop.f32.mrb[79].mxu1 }
 0x305   : > { %v2208_v3 = vmax.f32 %v2206_v11, %v2207_v28  ;;  %v2145_v34 = vsel %vm469_vm0, %v2032_v54, -inf  ;;  %v2035_v37 = vadd.f32 %v3407_v47, %v2034_v63 }
 0x306   : > { %v2146_v6 = vmax.f32 %v2144_v13, %v2145_v34  ;;  %v2238_v9 = vsel %vm469_vm0, %v2043_v31, -inf }
 0x307   : > { %v2239_v15 = vmax.f32 %v2237_v58, %v2238_v9  ;;  %v2176_v16 = vsel %vm469_vm0, %v2035_v37, -inf }
 0x308   : > { %v2177_v17 = vmax.f32 %v2175_v20, %v2176_v16 }
 0x309   : > { %v2830_v18 = vpop.f32.mrb[80].mxu1 }
 0x30a   : > { %v2056_v19 = vadd.f32 %v2830_v18, %v3407_v47  ;;  %v2047_v21 = vpop.f32.mrb[81].mxu1 }
 0x30b   : > { %v2048_v23 = vadd.f32 %v3407_v47, %v2047_v21  ;;  %v2831_v25 = vpop.f32.mrb[82].mxu1 }
 0x30c   : > { %v2209_v27 = vsel %vm469_vm0, %v2056_v19, -inf  ;;  %v2059_v29 = vadd.f32 %v2831_v25, %v3407_v47  ;;  %v2050_v30 = vpop.f32.mrb[83].mxu1 }
 0x30d   : > { %v2210_v32 = vmax.f32 %v2208_v3, %v2209_v27  ;;  %v2147_v33 = vsel %vm469_vm0, %v2048_v23, -inf  ;;  %v2051_v35 = vadd.f32 %v3407_v47, %v2050_v30 }
 0x30e   : > { %v2148_v36 = vmax.f32 %v2146_v6, %v2147_v33  ;;  %v2240_v38 = vsel %vm469_vm0, %v2059_v29, -inf }
 0x30f   : > { %v2241_v39 = vmax.f32 %v2239_v15, %v2240_v38  ;;  %v2178_v40 = vsel %vm469_vm0, %v2051_v35, -inf }
 0x310   : > { %v2179_v41 = vmax.f32 %v2177_v17, %v2178_v40  ;;  %v2945_v40 = vld [vmem:[%s3103_s19 + $0x10] sm:$0xff] }
 0x311   : > { %v2834_v42 = vpop.f32.mrb[84].mxu1 }
 0x312   : > { %v2072_v43 = vadd.f32 %v2834_v42, %v3407_v47  ;;  %v2063_v44 = vpop.f32.mrb[85].mxu1 }
 0x313   : > { %v2064_v45 = vadd.f32 %v3407_v47, %v2063_v44  ;;  %v2835_v46 = vpop.f32.mrb[86].mxu1  ;;  %v2946_v44 = vld [vmem:[%s3103_s19] sm:$0xff] }
 0x314   : > { %v2211_v48 = vsel %vm469_vm0, %v2072_v43, -inf  ;;  %v2075_v61 = vadd.f32 %v2835_v46, %v3407_v47  ;;  %v2066_v49 = vpop.f32.mrb[87].mxu1 }
 0x315   : > { %v2212_v50 = vmax.f32 %v2210_v32, %v2211_v48  ;;  %v2149_v51 = vsel %vm469_vm0, %v2064_v45, -inf  ;;  %v2067_v52 = vadd.f32 %v3407_v47, %v2066_v49  ;;  %v2947_v48 = vld [vmem:[%s3103_s19 + $0x18] sm:$0xff] }
 0x316   : > { %v2150_v53 = vmax.f32 %v2148_v36, %v2149_v51  ;;  %v2242_v55 = vsel %vm469_vm0, %v2075_v61, -inf  ;;  %v2948_v61 = vld [vmem:[%s3103_s19 + $0x8] sm:$0xff] }
 0x317   : > { %v2243_v57 = vmax.f32 %v2241_v39, %v2242_v55  ;;  %v2180_v60 = vsel %vm469_vm0, %v2067_v52, -inf }
 0x318   : > { %v2181_v62 = vmax.f32 %v2179_v41, %v2180_v60 }
 0x319   : > { %v2838_v0 = vpop.f32.mrb[88].mxu1 }
 0x31a   : > { %v2088_v1 = vadd.f32 %v2838_v0, %v3407_v47  ;;  %v2079_v4 = vpop.f32.mrb[89].mxu1 }
 0x31b   : > { %v2080_v5 = vadd.f32 %v3407_v47, %v2079_v4  ;;  %v2839_v7 = vpop.f32.mrb[90].mxu1 }
 0x31c   : > { %v2213_v8 = vsel %vm469_vm0, %v2088_v1, -inf  ;;  %v2091_v10 = vadd.f32 %v2839_v7, %v3407_v47  ;;  %v2082_v11 = vpop.f32.mrb[91].mxu1 }
 0x31d   : > { %v2214_v56 = vmax.f32 %v2212_v50, %v2213_v8  ;;  %v2151_v12 = vsel %vm469_vm0, %v2080_v5, -inf  ;;  %v2083_v13 = vadd.f32 %v3407_v47, %v2082_v11 }
 0x31e   : > { %v2152_v14 = vmax.f32 %v2150_v53, %v2151_v12  ;;  %v2244_v58 = vsel %vm469_vm0, %v2091_v10, -inf }
 0x31f   : > { %v2245_v2 = vmax.f32 %v2243_v57, %v2244_v58  ;;  %v2182_v20 = vsel %vm469_vm0, %v2083_v13, -inf }
 0x320   : > { %v2183_v22 = vmax.f32 %v2181_v62, %v2182_v20 }
 0x321   : > { %v2842_v24 = vpop.f32.mrb[92].mxu1 }
 0x322   : > { %v2104_v26 = vadd.f32 %v2842_v24, %v3407_v47  ;;  %v2095_v54 = vpop.f32.mrb[93].mxu1 }
 0x323   : > { %v2096_v59 = vadd.f32 %v3407_v47, %v2095_v54  ;;  %v2843_v28 = vpop.f32.mrb[94].mxu1 }
 0x324   : > { %v2215_v31 = vsel %vm469_vm0, %v2104_v26, -inf  ;;  %v2107_v63 = vadd.f32 %v2843_v28, %v3407_v47  ;;  %v2098_v3 = vpop.f32.mrb[95].mxu1 }
 0x325   : > { %v2216_v34 = vmax.f32 %v2214_v56, %v2215_v31  ;;  %v2153_v37 = vsel %vm469_vm0, %v2096_v59, -inf  ;;  %v2099_v6 = vadd.f32 %v3407_v47, %v2098_v3 }
 0x326   : > { %v2154_v9 = vmax.f32 %v2152_v14, %v2153_v37  ;;  %v2246_v15 = vsel %vm469_vm0, %v2107_v63, -inf }
 0x327   : > { %v2247_v16 = vmax.f32 %v2245_v2, %v2246_v15  ;;  %v2184_v17 = vsel %vm469_vm0, %v2099_v6, -inf }
 0x328   : > { %v2185_v18 = vmax.f32 %v2183_v22, %v2184_v17 }
 0x329   : > { %v2846_v19 = vpop.f32.mrb[96].mxu1 }
 0x32a   : > { %v2120_v21 = vadd.f32 %v2846_v19, %v3407_v47  ;;  %v2111_v23 = vpop.f32.mrb[97].mxu1 }
 0x32b   : > { %v2112_v25 = vadd.f32 %v3407_v47, %v2111_v23  ;;  %v2847_v27 = vpop.f32.mrb[98].mxu1 }
 0x32c   : > { %v2217_v29 = vsel %vm469_vm0, %v2120_v21, -inf  ;;  %v2123_v30 = vadd.f32 %v2847_v27, %v3407_v47  ;;  %v2114_v32 = vpop.f32.mrb[99].mxu1 }
 0x32d   : > { %v2218_v33 = vmax.f32 %v2216_v34, %v2217_v29  ;;  %v2155_v35 = vsel %vm469_vm0, %v2112_v25, -inf  ;;  %v2115_v36 = vadd.f32 %v3407_v47, %v2114_v32 }
 0x32e   : > { %v2156_v38 = vmax.f32 %v2154_v9, %v2155_v35  ;;  %v2248_v39 = vsel %vm469_vm0, %v2123_v30, -inf }
 0x32f   : > { %v2252_v41 = vadd.f32 %v2945_v40, %v2218_v33  ;;  %v2249_v42 = vmax.f32 %v2247_v16, %v2248_v39  ;;  %v2186_v43 = vsel %vm469_vm0, %v2115_v36, -inf }
 0x330   : > { %v2250_v45 = vadd.f32 %v2946_v44, %v2156_v38  ;;  %v2187_v46 = vmax.f32 %v2185_v18, %v2186_v43 }
 0x331   : > { %2256 = vst.msk [vmem:[%s437_s21 + $0x10] sm:$0xff] %vm469_vm0, %v2252_v41  ;;  %v2253_v47 = vadd.f32 %v2947_v48, %v2249_v42 }
 0x332   : > { %2254 = vst.msk [vmem:[%s437_s21] sm:$0xff] %vm469_vm0, %v2250_v45  ;;  %v2251_v49 = vadd.f32 %v2948_v61, %v2187_v46 }
 0x333   : > { %2257 = vst.msk [vmem:[%s437_s21 + $0x18] sm:$0xff] %vm469_vm0, %v2253_v47 }
 0x334   : > { %2255 = vst.msk [vmem:[%s437_s21 + $0x8] sm:$0xff] %vm469_vm0, %v2251_v49 }
 0x335 PF: > { %s19_s13 = sadd.s32 1, %s2987_s13   ;;  %s3575_s30 = smov %s2979_s11 }
 0x336   : > { %p16_p7 = scmp.ge.s32.totalorder %s19_s13, 8   ;;  %s3576_s10 = smov %s2983_s12 }
 0x337   : > { %s3577_s11 = smov %s3580_s14  ;;  %s3578_s12 = smov %s3584_s15 }
 0x338   :  { %18 = sbr.rel (!%p16_p7) target bundleno = 3 (0x3), region = 89 }

</bundles_post_ra>
